<compile_context>
chip_gen: v7x
topology: tpu7x:2x2x1
jax: 0.10.0
libtpu: 0.0.40
codegen_flags: <defaults>
</compile_context>

<pallas_src>
import jax
import jax.numpy as jnp
from jax import lax
from jax.experimental import pallas as pl
from jax.experimental.pallas import tpu as pltpu


_COMPILER_PARAMS = pltpu.CompilerParams(
    dimension_semantics=("parallel",),
    vmem_limit_bytes=32 * 1024 * 1024,   # fits v5e / v6e / v7x scoped VMEM
)


# ------------- fused 5x5 conv + bias + ReLU + 2x2 max-pool (per image) ------------- #

def _conv5x5_relu_pool_kernel(x_ref, w_ref, b_ref, o_ref):
    """One batch element per grid step.

    x_ref: (H, W, Cin)      NHWC input tile
    w_ref: (25*Cin, Cout)   im2col weight matrix, rows ordered (kh, kw, cin)
    b_ref: (1, Cout)        f32 bias
    o_ref: (PH, PW, Cout)   pooled output, PH=(H-4)//2, PW=(W-4)//2
    """
    H, W, Cin = x_ref.shape
    PH, PW, Cout = o_ref.shape
    OW = 2 * PW

    w = w_ref[...]
    bias = b_ref[...].astype(jnp.float32)
    # Per-tap weight blocks (static slices of the loaded value, hoisted).
    w_taps = [w[t * Cin:(t + 1) * Cin, :] for t in range(25)]

    def conv_row(oh):
        # One conv output row (OW, Cout) in f32, bias+ReLU applied.
        acc = jnp.zeros((OW, Cout), jnp.float32)
        t = 0
        for kh in range(5):
            for kw in range(5):
                tap = x_ref[pl.ds(oh + kh, 1), kw:kw + OW, :][0]   # (OW, Cin)
                if Cin == 1:
                    # VPU path: (OW,1)*(1,Cout) broadcast MAC (K=1 matmuls
                    # would leave the MXU ~empty).
                    acc = acc + (tap.astype(jnp.float32)
                                 * w_taps[t].astype(jnp.float32))
                else:
                    # MXU path: bf16 operands, f32 accumulation.
                    acc = acc + jnp.dot(tap, w_taps[t],
                                        preferred_element_type=jnp.float32)
                t += 1
        return jnp.maximum(acc + bias, 0.0)

    def body(ph, carry):
        r = jnp.maximum(conv_row(2 * ph), conv_row(2 * ph + 1))   # vertical pool
        pooled = jnp.concatenate(
            [jnp.maximum(r[2 * i:2 * i + 1, :], r[2 * i + 1:2 * i + 2, :])
             for i in range(PW)], axis=0)                          # horizontal pool
        o_ref[pl.ds(ph, 1)] = pooled[None].astype(o_ref.dtype)
        return carry

    lax.fori_loop(0, PH, body, 0)


def conv5x5_relu_pool(x, w_mat, bias, cout, out_dtype=jnp.bfloat16):
    n, h, w, cin = x.shape
    ph, pw = (h - 4) // 2, (w - 4) // 2
    return pl.pallas_call(
        _conv5x5_relu_pool_kernel,
        out_shape=jax.ShapeDtypeStruct((n, ph, pw, cout), out_dtype),
        grid=(n,),
        in_specs=[
            pl.BlockSpec((None, h, w, cin), lambda i: (i, 0, 0, 0)),
            pl.BlockSpec((25 * cin, cout), lambda i: (0, 0)),
            pl.BlockSpec((1, cout), lambda i: (0, 0)),
        ],
        out_specs=pl.BlockSpec((None, ph, pw, cout), lambda i: (i, 0, 0, 0)),
        compiler_params=_COMPILER_PARAMS,
    )(x, w_mat, bias)


# ---------------- fused linear1 + ReLU + (dropout) + linear2 ---------------- #

def _mlp_kernel(x_ref, w1_ref, b1_ref, w2_ref, b2_ref, o_ref):
    h = jnp.dot(x_ref[...], w1_ref[...], preferred_element_type=jnp.float32)
    h = jnp.maximum(h + b1_ref[...], 0.0)
    # TODO(synk): Dropout(0.5) is stochastic in PyTorch train mode; implemented
    # as eval-mode identity here.
    h = h.astype(jnp.bfloat16)
    o = jnp.dot(h, w2_ref[...], preferred_element_type=jnp.float32) + b2_ref[...]
    o_ref[...] = o.astype(o_ref.dtype)


def fused_mlp(x, w1t, b1, w2t, b2):
    n, k = x.shape
    hdim = w1t.shape[1]
    odim = w2t.shape[1]
    tm = n if n <= 256 else 256
    return pl.pallas_call(
        _mlp_kernel,
        out_shape=jax.ShapeDtypeStruct((n, odim), jnp.float32),
        grid=(pl.cdiv(n, tm),),
        in_specs=[
            pl.BlockSpec((tm, k), lambda i: (i, 0)),
            pl.BlockSpec((k, hdim), lambda i: (0, 0)),
            pl.BlockSpec((1, hdim), lambda i: (0, 0)),
            pl.BlockSpec((hdim, odim), lambda i: (0, 0)),
            pl.BlockSpec((1, odim), lambda i: (0, 0)),
        ],
        out_specs=pl.BlockSpec((tm, odim), lambda i: (i, 0)),
        compiler_params=_COMPILER_PARAMS,
    )(x, w1t, b1, w2t, b2)


# ------------------------ one-time parameter re-layout ------------------------ #

def prepare_params(p):
    """PyTorch-layout params -> kernel-ready layouts (done ONCE, outside jit)."""
    # Conv weights -> im2col matrices with rows in (kh, kw, cin) order.
    c1w = jnp.transpose(p["conv1_w"], (2, 3, 1, 0)).reshape(25 * 1, 20)
    c1w = c1w.astype(jnp.float32)                       # VPU path stays f32
    c1b = p["conv1_b"].reshape(1, 20).astype(jnp.float32)
    c2w = jnp.transpose(p["conv2_w"], (2, 3, 1, 0)).reshape(25 * 20, 50)
    c2w = c2w.astype(jnp.bfloat16)                      # MXU operands in bf16
    c2b = p["conv2_b"].reshape(1, 50).astype(jnp.float32)

    # Fold PyTorch's NCHW flatten (index c*16 + h*4 + w) into a one-time
    # permutation of linear1's columns so the kernel consumes the pooled NHWC
    # activation (index (h*4 + w)*50 + c) directly — no runtime transpose.
    w1 = p["lin1_w"].reshape(500, 50, 4, 4)             # [j, c, h, w]
    w1 = jnp.transpose(w1, (0, 2, 3, 1)).reshape(500, 800)   # [j, (h,w,c)]
    w1t = jnp.transpose(w1).astype(jnp.bfloat16)        # (800, 500)
    b1 = p["lin1_b"].reshape(1, 500).astype(jnp.float32)
    w2t = jnp.transpose(p["lin2_w"]).astype(jnp.bfloat16)    # (500, 10)
    b2 = p["lin2_b"].reshape(1, 10).astype(jnp.float32)

    return {"c1w": c1w, "c1b": c1b, "c2w": c2w, "c2b": c2b,
            "w1t": w1t, "b1": b1, "w2t": w2t, "b2": b2}


# -------------------------------- forward pass -------------------------------- #

def classify_cnn_forward(x_nchw, kp):
    n = x_nchw.shape[0]
    # NCHW -> NHWC is a free view because Cin == 1.
    x = x_nchw.reshape(n, 28, 28, 1).astype(jnp.float32)
    y = conv5x5_relu_pool(x, kp["c1w"], kp["c1b"], 20)        # (N,12,12,20) bf16
    y = conv5x5_relu_pool(y, kp["c2w"], kp["c2b"], 50)        # (N, 4, 4,50) bf16
    y = y.reshape(n, 800)                                     # free row-major view
    return fused_mlp(y, kp["w1t"], kp["b1"], kp["w2t"], kp["b2"])   # (N,10) f32


# --------------------------------- param init --------------------------------- #

def init_params(key):
    ks = jax.random.split(key, 8)
    s = 0.05
    return {
        "conv1_w": s * jax.random.normal(ks[0], (20, 1, 5, 5), jnp.float32),
        "conv1_b": s * jax.random.normal(ks[1], (20,), jnp.float32),
        "conv2_w": s * jax.random.normal(ks[2], (50, 20, 5, 5), jnp.float32),
        "conv2_b": s * jax.random.normal(ks[3], (50,), jnp.float32),
        "lin1_w": s * jax.random.normal(ks[4], (500, 800), jnp.float32),
        "lin1_b": s * jax.random.normal(ks[5], (500,), jnp.float32),
        "lin2_w": s * jax.random.normal(ks[6], (10, 500), jnp.float32),
        "lin2_b": s * jax.random.normal(ks[7], (10,), jnp.float32),
    }


if __name__ == "__main__":
    root = jax.random.PRNGKey(0)
    k_params, k_x = jax.random.split(root)
    params = init_params(k_params)
    kparams = prepare_params(params)          # one-time weight re-layout / cast

    # 28x28 input is required by the module's 50*4*4 flatten; small batch = 2.
    x = jax.random.normal(k_x, (2, 1, 28, 28), jnp.float32)

    fwd = jax.jit(classify_cnn_forward)
    out = fwd(x, kparams)
    jax.block_until_ready(out)
    assert out.shape == (2, 10) and out.dtype == jnp.float32
    print("KERNEL_OK")
</pallas_src>

<mosaic_0001>
module attributes {stable_mosaic.version = 11 : i64} {
  func.func @_conv5x5_relu_pool_kernel(%arg0: i32, %arg1: memref<1x28x28x1xf32, #tpu.memory_space<vmem>>, %arg2: memref<25x20xf32, #tpu.memory_space<vmem>>, %arg3: memref<1x20xf32, #tpu.memory_space<vmem>>, %arg4: memref<1x12x12x20xbf16, #tpu.memory_space<vmem>>) attributes {dimension_semantics = [#tpu.dimension_semantics<parallel>], iteration_bounds = array<i64: 2>, scalar_prefetch = 0 : i64, scratch_operands = 0 : i64, tpu.core_type = #tpu.core_type<tc>, window_params = [{transform_indices = @transform_0, window_bounds = array<i64: 1, 28, 28, 1>}, {pipeline_mode = #tpu.pipeline_mode<synchronous>, transform_indices = @transform_1, window_bounds = array<i64: 25, 20>}, {pipeline_mode = #tpu.pipeline_mode<synchronous>, transform_indices = @transform_2, window_bounds = array<i64: 1, 20>}, {transform_indices = @transform_3, window_bounds = array<i64: 1, 12, 12, 20>}]} {
    %c0 = arith.constant 0 : index
    %c0_0 = arith.constant 0 : index
    %0 = vector.load %arg2[%c0, %c0_0] : memref<25x20xf32, #tpu.memory_space<vmem>>, vector<25x20xf32>
    %c0_1 = arith.constant 0 : index
    %c0_2 = arith.constant 0 : index
    %1 = vector.load %arg3[%c0_1, %c0_2] : memref<1x20xf32, #tpu.memory_space<vmem>>, vector<1x20xf32>
    %2 = vector.extract_strided_slice %0 {offsets = [0, 0], sizes = [1, 20], strides = [1, 1]} : vector<25x20xf32> to vector<1x20xf32>
    %3 = vector.extract_strided_slice %0 {offsets = [1, 0], sizes = [1, 20], strides = [1, 1]} : vector<25x20xf32> to vector<1x20xf32>
    %4 = vector.extract_strided_slice %0 {offsets = [2, 0], sizes = [1, 20], strides = [1, 1]} : vector<25x20xf32> to vector<1x20xf32>
    %5 = vector.extract_strided_slice %0 {offsets = [3, 0], sizes = [1, 20], strides = [1, 1]} : vector<25x20xf32> to vector<1x20xf32>
    %6 = vector.extract_strided_slice %0 {offsets = [4, 0], sizes = [1, 20], strides = [1, 1]} : vector<25x20xf32> to vector<1x20xf32>
    %7 = vector.extract_strided_slice %0 {offsets = [5, 0], sizes = [1, 20], strides = [1, 1]} : vector<25x20xf32> to vector<1x20xf32>
    %8 = vector.extract_strided_slice %0 {offsets = [6, 0], sizes = [1, 20], strides = [1, 1]} : vector<25x20xf32> to vector<1x20xf32>
    %9 = vector.extract_strided_slice %0 {offsets = [7, 0], sizes = [1, 20], strides = [1, 1]} : vector<25x20xf32> to vector<1x20xf32>
    %10 = vector.extract_strided_slice %0 {offsets = [8, 0], sizes = [1, 20], strides = [1, 1]} : vector<25x20xf32> to vector<1x20xf32>
    %11 = vector.extract_strided_slice %0 {offsets = [9, 0], sizes = [1, 20], strides = [1, 1]} : vector<25x20xf32> to vector<1x20xf32>
    %12 = vector.extract_strided_slice %0 {offsets = [10, 0], sizes = [1, 20], strides = [1, 1]} : vector<25x20xf32> to vector<1x20xf32>
    %13 = vector.extract_strided_slice %0 {offsets = [11, 0], sizes = [1, 20], strides = [1, 1]} : vector<25x20xf32> to vector<1x20xf32>
    %14 = vector.extract_strided_slice %0 {offsets = [12, 0], sizes = [1, 20], strides = [1, 1]} : vector<25x20xf32> to vector<1x20xf32>
    %15 = vector.extract_strided_slice %0 {offsets = [13, 0], sizes = [1, 20], strides = [1, 1]} : vector<25x20xf32> to vector<1x20xf32>
    %16 = vector.extract_strided_slice %0 {offsets = [14, 0], sizes = [1, 20], strides = [1, 1]} : vector<25x20xf32> to vector<1x20xf32>
    %17 = vector.extract_strided_slice %0 {offsets = [15, 0], sizes = [1, 20], strides = [1, 1]} : vector<25x20xf32> to vector<1x20xf32>
    %18 = vector.extract_strided_slice %0 {offsets = [16, 0], sizes = [1, 20], strides = [1, 1]} : vector<25x20xf32> to vector<1x20xf32>
    %19 = vector.extract_strided_slice %0 {offsets = [17, 0], sizes = [1, 20], strides = [1, 1]} : vector<25x20xf32> to vector<1x20xf32>
    %20 = vector.extract_strided_slice %0 {offsets = [18, 0], sizes = [1, 20], strides = [1, 1]} : vector<25x20xf32> to vector<1x20xf32>
    %21 = vector.extract_strided_slice %0 {offsets = [19, 0], sizes = [1, 20], strides = [1, 1]} : vector<25x20xf32> to vector<1x20xf32>
    %22 = vector.extract_strided_slice %0 {offsets = [20, 0], sizes = [1, 20], strides = [1, 1]} : vector<25x20xf32> to vector<1x20xf32>
    %23 = vector.extract_strided_slice %0 {offsets = [21, 0], sizes = [1, 20], strides = [1, 1]} : vector<25x20xf32> to vector<1x20xf32>
    %24 = vector.extract_strided_slice %0 {offsets = [22, 0], sizes = [1, 20], strides = [1, 1]} : vector<25x20xf32> to vector<1x20xf32>
    %25 = vector.extract_strided_slice %0 {offsets = [23, 0], sizes = [1, 20], strides = [1, 1]} : vector<25x20xf32> to vector<1x20xf32>
    %26 = vector.extract_strided_slice %0 {offsets = [24, 0], sizes = [1, 20], strides = [1, 1]} : vector<25x20xf32> to vector<1x20xf32>
    %c0_i32 = arith.constant 0 : i32
    %c12_i32 = arith.constant 12 : i32
    %27 = arith.addi %c0_i32, %c12_i32 : i32
    %c1_i32 = arith.constant 1 : i32
    scf.for %arg5 = %c0_i32 to %27 step %c1_i32  : i32 {
      %c2_i32 = arith.constant 2 : i32
      %28 = arith.muli %c2_i32, %arg5 : i32
      %cst = arith.constant 0.000000e+00 : f32
      %29 = vector.broadcast %cst : f32 to vector<24x20xf32>
      %c0_i32_4 = arith.constant 0 : i32
      %30 = arith.addi %28, %c0_i32_4 : i32
      %c0_5 = arith.constant 0 : index
      %31 = arith.index_cast %30 : i32 to index
      %c0_6 = arith.constant 0 : index
      %c0_7 = arith.constant 0 : index
      %32 = vector.load %arg1[%c0_5, %31, %c0_6, %c0_7] : memref<1x28x28x1xf32, #tpu.memory_space<vmem>>, vector<1x1x24x1xf32>
      %33 = vector.shape_cast %32 : vector<1x1x24x1xf32> to vector<1x24x1xf32>
      %34 = vector.shape_cast %33 : vector<1x24x1xf32> to vector<24x1xf32>
      %35 = vector.broadcast %34 : vector<24x1xf32> to vector<24x20xf32>
      %36 = vector.broadcast %2 : vector<1x20xf32> to vector<24x20xf32>
      %37 = arith.mulf %35, %36 : vector<24x20xf32>
      %38 = arith.addf %29, %37 : vector<24x20xf32>
      %c0_i32_8 = arith.constant 0 : i32
      %39 = arith.addi %28, %c0_i32_8 : i32
      %c0_9 = arith.constant 0 : index
      %40 = arith.index_cast %39 : i32 to index
      %c1 = arith.constant 1 : index
      %c0_10 = arith.constant 0 : index
      %41 = vector.load %arg1[%c0_9, %40, %c1, %c0_10] : memref<1x28x28x1xf32, #tpu.memory_space<vmem>>, vector<1x1x24x1xf32>
      %42 = vector.shape_cast %41 : vector<1x1x24x1xf32> to vector<1x24x1xf32>
      %43 = vector.shape_cast %42 : vector<1x24x1xf32> to vector<24x1xf32>
      %44 = vector.broadcast %43 : vector<24x1xf32> to vector<24x20xf32>
      %45 = vector.broadcast %3 : vector<1x20xf32> to vector<24x20xf32>
      %46 = arith.mulf %44, %45 : vector<24x20xf32>
      %47 = arith.addf %38, %46 : vector<24x20xf32>
      %c0_i32_11 = arith.constant 0 : i32
      %48 = arith.addi %28, %c0_i32_11 : i32
      %c0_12 = arith.constant 0 : index
      %49 = arith.index_cast %48 : i32 to index
      %c2 = arith.constant 2 : index
      %c0_13 = arith.constant 0 : index
      %50 = vector.load %arg1[%c0_12, %49, %c2, %c0_13] : memref<1x28x28x1xf32, #tpu.memory_space<vmem>>, vector<1x1x24x1xf32>
      %51 = vector.shape_cast %50 : vector<1x1x24x1xf32> to vector<1x24x1xf32>
      %52 = vector.shape_cast %51 : vector<1x24x1xf32> to vector<24x1xf32>
      %53 = vector.broadcast %52 : vector<24x1xf32> to vector<24x20xf32>
      %54 = vector.broadcast %4 : vector<1x20xf32> to vector<24x20xf32>
      %55 = arith.mulf %53, %54 : vector<24x20xf32>
      %56 = arith.addf %47, %55 : vector<24x20xf32>
      %c0_i32_14 = arith.constant 0 : i32
      %57 = arith.addi %28, %c0_i32_14 : i32
      %c0_15 = arith.constant 0 : index
      %58 = arith.index_cast %57 : i32 to index
      %c3 = arith.constant 3 : index
      %c0_16 = arith.constant 0 : index
      %59 = vector.load %arg1[%c0_15, %58, %c3, %c0_16] : memref<1x28x28x1xf32, #tpu.memory_space<vmem>>, vector<1x1x24x1xf32>
      %60 = vector.shape_cast %59 : vector<1x1x24x1xf32> to vector<1x24x1xf32>
      %61 = vector.shape_cast %60 : vector<1x24x1xf32> to vector<24x1xf32>
      %62 = vector.broadcast %61 : vector<24x1xf32> to vector<24x20xf32>
      %63 = vector.broadcast %5 : vector<1x20xf32> to vector<24x20xf32>
      %64 = arith.mulf %62, %63 : vector<24x20xf32>
      %65 = arith.addf %56, %64 : vector<24x20xf32>
      %c0_i32_17 = arith.constant 0 : i32
      %66 = arith.addi %28, %c0_i32_17 : i32
      %c0_18 = arith.constant 0 : index
      %67 = arith.index_cast %66 : i32 to index
      %c4 = arith.constant 4 : index
      %c0_19 = arith.constant 0 : index
      %68 = vector.load %arg1[%c0_18, %67, %c4, %c0_19] : memref<1x28x28x1xf32, #tpu.memory_space<vmem>>, vector<1x1x24x1xf32>
      %69 = vector.shape_cast %68 : vector<1x1x24x1xf32> to vector<1x24x1xf32>
      %70 = vector.shape_cast %69 : vector<1x24x1xf32> to vector<24x1xf32>
      %71 = vector.broadcast %70 : vector<24x1xf32> to vector<24x20xf32>
      %72 = vector.broadcast %6 : vector<1x20xf32> to vector<24x20xf32>
      %73 = arith.mulf %71, %72 : vector<24x20xf32>
      %74 = arith.addf %65, %73 : vector<24x20xf32>
      %c1_i32_20 = arith.constant 1 : i32
      %75 = arith.addi %28, %c1_i32_20 : i32
      %c0_21 = arith.constant 0 : index
      %76 = arith.index_cast %75 : i32 to index
      %c0_22 = arith.constant 0 : index
      %c0_23 = arith.constant 0 : index
      %77 = vector.load %arg1[%c0_21, %76, %c0_22, %c0_23] : memref<1x28x28x1xf32, #tpu.memory_space<vmem>>, vector<1x1x24x1xf32>
      %78 = vector.shape_cast %77 : vector<1x1x24x1xf32> to vector<1x24x1xf32>
      %79 = vector.shape_cast %78 : vector<1x24x1xf32> to vector<24x1xf32>
      %80 = vector.broadcast %79 : vector<24x1xf32> to vector<24x20xf32>
      %81 = vector.broadcast %7 : vector<1x20xf32> to vector<24x20xf32>
      %82 = arith.mulf %80, %81 : vector<24x20xf32>
      %83 = arith.addf %74, %82 : vector<24x20xf32>
      %c1_i32_24 = arith.constant 1 : i32
      %84 = arith.addi %28, %c1_i32_24 : i32
      %c0_25 = arith.constant 0 : index
      %85 = arith.index_cast %84 : i32 to index
      %c1_26 = arith.constant 1 : index
      %c0_27 = arith.constant 0 : index
      %86 = vector.load %arg1[%c0_25, %85, %c1_26, %c0_27] : memref<1x28x28x1xf32, #tpu.memory_space<vmem>>, vector<1x1x24x1xf32>
      %87 = vector.shape_cast %86 : vector<1x1x24x1xf32> to vector<1x24x1xf32>
      %88 = vector.shape_cast %87 : vector<1x24x1xf32> to vector<24x1xf32>
      %89 = vector.broadcast %88 : vector<24x1xf32> to vector<24x20xf32>
      %90 = vector.broadcast %8 : vector<1x20xf32> to vector<24x20xf32>
      %91 = arith.mulf %89, %90 : vector<24x20xf32>
      %92 = arith.addf %83, %91 : vector<24x20xf32>
      %c1_i32_28 = arith.constant 1 : i32
      %93 = arith.addi %28, %c1_i32_28 : i32
      %c0_29 = arith.constant 0 : index
      %94 = arith.index_cast %93 : i32 to index
      %c2_30 = arith.constant 2 : index
      %c0_31 = arith.constant 0 : index
      %95 = vector.load %arg1[%c0_29, %94, %c2_30, %c0_31] : memref<1x28x28x1xf32, #tpu.memory_space<vmem>>, vector<1x1x24x1xf32>
      %96 = vector.shape_cast %95 : vector<1x1x24x1xf32> to vector<1x24x1xf32>
      %97 = vector.shape_cast %96 : vector<1x24x1xf32> to vector<24x1xf32>
      %98 = vector.broadcast %97 : vector<24x1xf32> to vector<24x20xf32>
      %99 = vector.broadcast %9 : vector<1x20xf32> to vector<24x20xf32>
      %100 = arith.mulf %98, %99 : vector<24x20xf32>
      %101 = arith.addf %92, %100 : vector<24x20xf32>
      %c1_i32_32 = arith.constant 1 : i32
      %102 = arith.addi %28, %c1_i32_32 : i32
      %c0_33 = arith.constant 0 : index
      %103 = arith.index_cast %102 : i32 to index
      %c3_34 = arith.constant 3 : index
      %c0_35 = arith.constant 0 : index
      %104 = vector.load %arg1[%c0_33, %103, %c3_34, %c0_35] : memref<1x28x28x1xf32, #tpu.memory_space<vmem>>, vector<1x1x24x1xf32>
      %105 = vector.shape_cast %104 : vector<1x1x24x1xf32> to vector<1x24x1xf32>
      %106 = vector.shape_cast %105 : vector<1x24x1xf32> to vector<24x1xf32>
      %107 = vector.broadcast %106 : vector<24x1xf32> to vector<24x20xf32>
      %108 = vector.broadcast %10 : vector<1x20xf32> to vector<24x20xf32>
      %109 = arith.mulf %107, %108 : vector<24x20xf32>
      %110 = arith.addf %101, %109 : vector<24x20xf32>
      %c1_i32_36 = arith.constant 1 : i32
      %111 = arith.addi %28, %c1_i32_36 : i32
      %c0_37 = arith.constant 0 : index
      %112 = arith.index_cast %111 : i32 to index
      %c4_38 = arith.constant 4 : index
      %c0_39 = arith.constant 0 : index
      %113 = vector.load %arg1[%c0_37, %112, %c4_38, %c0_39] : memref<1x28x28x1xf32, #tpu.memory_space<vmem>>, vector<1x1x24x1xf32>
      %114 = vector.shape_cast %113 : vector<1x1x24x1xf32> to vector<1x24x1xf32>
      %115 = vector.shape_cast %114 : vector<1x24x1xf32> to vector<24x1xf32>
      %116 = vector.broadcast %115 : vector<24x1xf32> to vector<24x20xf32>
      %117 = vector.broadcast %11 : vector<1x20xf32> to vector<24x20xf32>
      %118 = arith.mulf %116, %117 : vector<24x20xf32>
      %119 = arith.addf %110, %118 : vector<24x20xf32>
      %c2_i32_40 = arith.constant 2 : i32
      %120 = arith.addi %28, %c2_i32_40 : i32
      %c0_41 = arith.constant 0 : index
      %121 = arith.index_cast %120 : i32 to index
      %c0_42 = arith.constant 0 : index
      %c0_43 = arith.constant 0 : index
      %122 = vector.load %arg1[%c0_41, %121, %c0_42, %c0_43] : memref<1x28x28x1xf32, #tpu.memory_space<vmem>>, vector<1x1x24x1xf32>
      %123 = vector.shape_cast %122 : vector<1x1x24x1xf32> to vector<1x24x1xf32>
      %124 = vector.shape_cast %123 : vector<1x24x1xf32> to vector<24x1xf32>
      %125 = vector.broadcast %124 : vector<24x1xf32> to vector<24x20xf32>
      %126 = vector.broadcast %12 : vector<1x20xf32> to vector<24x20xf32>
      %127 = arith.mulf %125, %126 : vector<24x20xf32>
      %128 = arith.addf %119, %127 : vector<24x20xf32>
      %c2_i32_44 = arith.constant 2 : i32
      %129 = arith.addi %28, %c2_i32_44 : i32
      %c0_45 = arith.constant 0 : index
      %130 = arith.index_cast %129 : i32 to index
      %c1_46 = arith.constant 1 : index
      %c0_47 = arith.constant 0 : index
      %131 = vector.load %arg1[%c0_45, %130, %c1_46, %c0_47] : memref<1x28x28x1xf32, #tpu.memory_space<vmem>>, vector<1x1x24x1xf32>
      %132 = vector.shape_cast %131 : vector<1x1x24x1xf32> to vector<1x24x1xf32>
      %133 = vector.shape_cast %132 : vector<1x24x1xf32> to vector<24x1xf32>
      %134 = vector.broadcast %133 : vector<24x1xf32> to vector<24x20xf32>
      %135 = vector.broadcast %13 : vector<1x20xf32> to vector<24x20xf32>
      %136 = arith.mulf %134, %135 : vector<24x20xf32>
      %137 = arith.addf %128, %136 : vector<24x20xf32>
      %c2_i32_48 = arith.constant 2 : i32
      %138 = arith.addi %28, %c2_i32_48 : i32
      %c0_49 = arith.constant 0 : index
      %139 = arith.index_cast %138 : i32 to index
      %c2_50 = arith.constant 2 : index
      %c0_51 = arith.constant 0 : index
      %140 = vector.load %arg1[%c0_49, %139, %c2_50, %c0_51] : memref<1x28x28x1xf32, #tpu.memory_space<vmem>>, vector<1x1x24x1xf32>
      %141 = vector.shape_cast %140 : vector<1x1x24x1xf32> to vector<1x24x1xf32>
      %142 = vector.shape_cast %141 : vector<1x24x1xf32> to vector<24x1xf32>
      %143 = vector.broadcast %142 : vector<24x1xf32> to vector<24x20xf32>
      %144 = vector.broadcast %14 : vector<1x20xf32> to vector<24x20xf32>
      %145 = arith.mulf %143, %144 : vector<24x20xf32>
      %146 = arith.addf %137, %145 : vector<24x20xf32>
      %c2_i32_52 = arith.constant 2 : i32
      %147 = arith.addi %28, %c2_i32_52 : i32
      %c0_53 = arith.constant 0 : index
      %148 = arith.index_cast %147 : i32 to index
      %c3_54 = arith.constant 3 : index
      %c0_55 = arith.constant 0 : index
      %149 = vector.load %arg1[%c0_53, %148, %c3_54, %c0_55] : memref<1x28x28x1xf32, #tpu.memory_space<vmem>>, vector<1x1x24x1xf32>
      %150 = vector.shape_cast %149 : vector<1x1x24x1xf32> to vector<1x24x1xf32>
      %151 = vector.shape_cast %150 : vector<1x24x1xf32> to vector<24x1xf32>
      %152 = vector.broadcast %151 : vector<24x1xf32> to vector<24x20xf32>
      %153 = vector.broadcast %15 : vector<1x20xf32> to vector<24x20xf32>
      %154 = arith.mulf %152, %153 : vector<24x20xf32>
      %155 = arith.addf %146, %154 : vector<24x20xf32>
      %c2_i32_56 = arith.constant 2 : i32
      %156 = arith.addi %28, %c2_i32_56 : i32
      %c0_57 = arith.constant 0 : index
      %157 = arith.index_cast %156 : i32 to index
      %c4_58 = arith.constant 4 : index
      %c0_59 = arith.constant 0 : index
      %158 = vector.load %arg1[%c0_57, %157, %c4_58, %c0_59] : memref<1x28x28x1xf32, #tpu.memory_space<vmem>>, vector<1x1x24x1xf32>
      %159 = vector.shape_cast %158 : vector<1x1x24x1xf32> to vector<1x24x1xf32>
      %160 = vector.shape_cast %159 : vector<1x24x1xf32> to vector<24x1xf32>
      %161 = vector.broadcast %160 : vector<24x1xf32> to vector<24x20xf32>
      %162 = vector.broadcast %16 : vector<1x20xf32> to vector<24x20xf32>
      %163 = arith.mulf %161, %162 : vector<24x20xf32>
      %164 = arith.addf %155, %163 : vector<24x20xf32>
      %c3_i32 = arith.constant 3 : i32
      %165 = arith.addi %28, %c3_i32 : i32
      %c0_60 = arith.constant 0 : index
      %166 = arith.index_cast %165 : i32 to index
      %c0_61 = arith.constant 0 : index
      %c0_62 = arith.constant 0 : index
      %167 = vector.load %arg1[%c0_60, %166, %c0_61, %c0_62] : memref<1x28x28x1xf32, #tpu.memory_space<vmem>>, vector<1x1x24x1xf32>
      %168 = vector.shape_cast %167 : vector<1x1x24x1xf32> to vector<1x24x1xf32>
      %169 = vector.shape_cast %168 : vector<1x24x1xf32> to vector<24x1xf32>
      %170 = vector.broadcast %169 : vector<24x1xf32> to vector<24x20xf32>
      %171 = vector.broadcast %17 : vector<1x20xf32> to vector<24x20xf32>
      %172 = arith.mulf %170, %171 : vector<24x20xf32>
      %173 = arith.addf %164, %172 : vector<24x20xf32>
      %c3_i32_63 = arith.constant 3 : i32
      %174 = arith.addi %28, %c3_i32_63 : i32
      %c0_64 = arith.constant 0 : index
      %175 = arith.index_cast %174 : i32 to index
      %c1_65 = arith.constant 1 : index
      %c0_66 = arith.constant 0 : index
      %176 = vector.load %arg1[%c0_64, %175, %c1_65, %c0_66] : memref<1x28x28x1xf32, #tpu.memory_space<vmem>>, vector<1x1x24x1xf32>
      %177 = vector.shape_cast %176 : vector<1x1x24x1xf32> to vector<1x24x1xf32>
      %178 = vector.shape_cast %177 : vector<1x24x1xf32> to vector<24x1xf32>
      %179 = vector.broadcast %178 : vector<24x1xf32> to vector<24x20xf32>
      %180 = vector.broadcast %18 : vector<1x20xf32> to vector<24x20xf32>
      %181 = arith.mulf %179, %180 : vector<24x20xf32>
      %182 = arith.addf %173, %181 : vector<24x20xf32>
      %c3_i32_67 = arith.constant 3 : i32
      %183 = arith.addi %28, %c3_i32_67 : i32
      %c0_68 = arith.constant 0 : index
      %184 = arith.index_cast %183 : i32 to index
      %c2_69 = arith.constant 2 : index
      %c0_70 = arith.constant 0 : index
      %185 = vector.load %arg1[%c0_68, %184, %c2_69, %c0_70] : memref<1x28x28x1xf32, #tpu.memory_space<vmem>>, vector<1x1x24x1xf32>
      %186 = vector.shape_cast %185 : vector<1x1x24x1xf32> to vector<1x24x1xf32>
      %187 = vector.shape_cast %186 : vector<1x24x1xf32> to vector<24x1xf32>
      %188 = vector.broadcast %187 : vector<24x1xf32> to vector<24x20xf32>
      %189 = vector.broadcast %19 : vector<1x20xf32> to vector<24x20xf32>
      %190 = arith.mulf %188, %189 : vector<24x20xf32>
      %191 = arith.addf %182, %190 : vector<24x20xf32>
      %c3_i32_71 = arith.constant 3 : i32
      %192 = arith.addi %28, %c3_i32_71 : i32
      %c0_72 = arith.constant 0 : index
      %193 = arith.index_cast %192 : i32 to index
      %c3_73 = arith.constant 3 : index
      %c0_74 = arith.constant 0 : index
      %194 = vector.load %arg1[%c0_72, %193, %c3_73, %c0_74] : memref<1x28x28x1xf32, #tpu.memory_space<vmem>>, vector<1x1x24x1xf32>
      %195 = vector.shape_cast %194 : vector<1x1x24x1xf32> to vector<1x24x1xf32>
      %196 = vector.shape_cast %195 : vector<1x24x1xf32> to vector<24x1xf32>
      %197 = vector.broadcast %196 : vector<24x1xf32> to vector<24x20xf32>
      %198 = vector.broadcast %20 : vector<1x20xf32> to vector<24x20xf32>
      %199 = arith.mulf %197, %198 : vector<24x20xf32>
      %200 = arith.addf %191, %199 : vector<24x20xf32>
      %c3_i32_75 = arith.constant 3 : i32
      %201 = arith.addi %28, %c3_i32_75 : i32
      %c0_76 = arith.constant 0 : index
      %202 = arith.index_cast %201 : i32 to index
      %c4_77 = arith.constant 4 : index
      %c0_78 = arith.constant 0 : index
      %203 = vector.load %arg1[%c0_76, %202, %c4_77, %c0_78] : memref<1x28x28x1xf32, #tpu.memory_space<vmem>>, vector<1x1x24x1xf32>
      %204 = vector.shape_cast %203 : vector<1x1x24x1xf32> to vector<1x24x1xf32>
      %205 = vector.shape_cast %204 : vector<1x24x1xf32> to vector<24x1xf32>
      %206 = vector.broadcast %205 : vector<24x1xf32> to vector<24x20xf32>
      %207 = vector.broadcast %21 : vector<1x20xf32> to vector<24x20xf32>
      %208 = arith.mulf %206, %207 : vector<24x20xf32>
      %209 = arith.addf %200, %208 : vector<24x20xf32>
      %c4_i32 = arith.constant 4 : i32
      %210 = arith.addi %28, %c4_i32 : i32
      %c0_79 = arith.constant 0 : index
      %211 = arith.index_cast %210 : i32 to index
      %c0_80 = arith.constant 0 : index
      %c0_81 = arith.constant 0 : index
      %212 = vector.load %arg1[%c0_79, %211, %c0_80, %c0_81] : memref<1x28x28x1xf32, #tpu.memory_space<vmem>>, vector<1x1x24x1xf32>
      %213 = vector.shape_cast %212 : vector<1x1x24x1xf32> to vector<1x24x1xf32>
      %214 = vector.shape_cast %213 : vector<1x24x1xf32> to vector<24x1xf32>
      %215 = vector.broadcast %214 : vector<24x1xf32> to vector<24x20xf32>
      %216 = vector.broadcast %22 : vector<1x20xf32> to vector<24x20xf32>
      %217 = arith.mulf %215, %216 : vector<24x20xf32>
      %218 = arith.addf %209, %217 : vector<24x20xf32>
      %c4_i32_82 = arith.constant 4 : i32
      %219 = arith.addi %28, %c4_i32_82 : i32
      %c0_83 = arith.constant 0 : index
      %220 = arith.index_cast %219 : i32 to index
      %c1_84 = arith.constant 1 : index
      %c0_85 = arith.constant 0 : index
      %221 = vector.load %arg1[%c0_83, %220, %c1_84, %c0_85] : memref<1x28x28x1xf32, #tpu.memory_space<vmem>>, vector<1x1x24x1xf32>
      %222 = vector.shape_cast %221 : vector<1x1x24x1xf32> to vector<1x24x1xf32>
      %223 = vector.shape_cast %222 : vector<1x24x1xf32> to vector<24x1xf32>
      %224 = vector.broadcast %223 : vector<24x1xf32> to vector<24x20xf32>
      %225 = vector.broadcast %23 : vector<1x20xf32> to vector<24x20xf32>
      %226 = arith.mulf %224, %225 : vector<24x20xf32>
      %227 = arith.addf %218, %226 : vector<24x20xf32>
      %c4_i32_86 = arith.constant 4 : i32
      %228 = arith.addi %28, %c4_i32_86 : i32
      %c0_87 = arith.constant 0 : index
      %229 = arith.index_cast %228 : i32 to index
      %c2_88 = arith.constant 2 : index
      %c0_89 = arith.constant 0 : index
      %230 = vector.load %arg1[%c0_87, %229, %c2_88, %c0_89] : memref<1x28x28x1xf32, #tpu.memory_space<vmem>>, vector<1x1x24x1xf32>
      %231 = vector.shape_cast %230 : vector<1x1x24x1xf32> to vector<1x24x1xf32>
      %232 = vector.shape_cast %231 : vector<1x24x1xf32> to vector<24x1xf32>
      %233 = vector.broadcast %232 : vector<24x1xf32> to vector<24x20xf32>
      %234 = vector.broadcast %24 : vector<1x20xf32> to vector<24x20xf32>
      %235 = arith.mulf %233, %234 : vector<24x20xf32>
      %236 = arith.addf %227, %235 : vector<24x20xf32>
      %c4_i32_90 = arith.constant 4 : i32
      %237 = arith.addi %28, %c4_i32_90 : i32
      %c0_91 = arith.constant 0 : index
      %238 = arith.index_cast %237 : i32 to index
      %c3_92 = arith.constant 3 : index
      %c0_93 = arith.constant 0 : index
      %239 = vector.load %arg1[%c0_91, %238, %c3_92, %c0_93] : memref<1x28x28x1xf32, #tpu.memory_space<vmem>>, vector<1x1x24x1xf32>
      %240 = vector.shape_cast %239 : vector<1x1x24x1xf32> to vector<1x24x1xf32>
      %241 = vector.shape_cast %240 : vector<1x24x1xf32> to vector<24x1xf32>
      %242 = vector.broadcast %241 : vector<24x1xf32> to vector<24x20xf32>
      %243 = vector.broadcast %25 : vector<1x20xf32> to vector<24x20xf32>
      %244 = arith.mulf %242, %243 : vector<24x20xf32>
      %245 = arith.addf %236, %244 : vector<24x20xf32>
      %c4_i32_94 = arith.constant 4 : i32
      %246 = arith.addi %28, %c4_i32_94 : i32
      %c0_95 = arith.constant 0 : index
      %247 = arith.index_cast %246 : i32 to index
      %c4_96 = arith.constant 4 : index
      %c0_97 = arith.constant 0 : index
      %248 = vector.load %arg1[%c0_95, %247, %c4_96, %c0_97] : memref<1x28x28x1xf32, #tpu.memory_space<vmem>>, vector<1x1x24x1xf32>
      %249 = vector.shape_cast %248 : vector<1x1x24x1xf32> to vector<1x24x1xf32>
      %250 = vector.shape_cast %249 : vector<1x24x1xf32> to vector<24x1xf32>
      %251 = vector.broadcast %250 : vector<24x1xf32> to vector<24x20xf32>
      %252 = vector.broadcast %26 : vector<1x20xf32> to vector<24x20xf32>
      %253 = arith.mulf %251, %252 : vector<24x20xf32>
      %254 = arith.addf %245, %253 : vector<24x20xf32>
      %255 = vector.broadcast %1 : vector<1x20xf32> to vector<24x20xf32>
      %256 = arith.addf %254, %255 : vector<24x20xf32>
      %cst_98 = arith.constant 0.000000e+00 : f32
      %257 = vector.broadcast %cst_98 : f32 to vector<24x20xf32>
      %258 = arith.maximumf %256, %257 : vector<24x20xf32>
      %c2_i32_99 = arith.constant 2 : i32
      %259 = arith.muli %c2_i32_99, %arg5 : i32
      %c1_i32_100 = arith.constant 1 : i32
      %260 = arith.addi %259, %c1_i32_100 : i32
      %cst_101 = arith.constant 0.000000e+00 : f32
      %261 = vector.broadcast %cst_101 : f32 to vector<24x20xf32>
      %c0_i32_102 = arith.constant 0 : i32
      %262 = arith.addi %260, %c0_i32_102 : i32
      %c0_103 = arith.constant 0 : index
      %263 = arith.index_cast %262 : i32 to index
      %c0_104 = arith.constant 0 : index
      %c0_105 = arith.constant 0 : index
      %264 = vector.load %arg1[%c0_103, %263, %c0_104, %c0_105] : memref<1x28x28x1xf32, #tpu.memory_space<vmem>>, vector<1x1x24x1xf32>
      %265 = vector.shape_cast %264 : vector<1x1x24x1xf32> to vector<1x24x1xf32>
      %266 = vector.shape_cast %265 : vector<1x24x1xf32> to vector<24x1xf32>
      %267 = vector.broadcast %266 : vector<24x1xf32> to vector<24x20xf32>
      %268 = vector.broadcast %2 : vector<1x20xf32> to vector<24x20xf32>
      %269 = arith.mulf %267, %268 : vector<24x20xf32>
      %270 = arith.addf %261, %269 : vector<24x20xf32>
      %c0_i32_106 = arith.constant 0 : i32
      %271 = arith.addi %260, %c0_i32_106 : i32
      %c0_107 = arith.constant 0 : index
      %272 = arith.index_cast %271 : i32 to index
      %c1_108 = arith.constant 1 : index
      %c0_109 = arith.constant 0 : index
      %273 = vector.load %arg1[%c0_107, %272, %c1_108, %c0_109] : memref<1x28x28x1xf32, #tpu.memory_space<vmem>>, vector<1x1x24x1xf32>
      %274 = vector.shape_cast %273 : vector<1x1x24x1xf32> to vector<1x24x1xf32>
      %275 = vector.shape_cast %274 : vector<1x24x1xf32> to vector<24x1xf32>
      %276 = vector.broadcast %275 : vector<24x1xf32> to vector<24x20xf32>
      %277 = vector.broadcast %3 : vector<1x20xf32> to vector<24x20xf32>
      %278 = arith.mulf %276, %277 : vector<24x20xf32>
      %279 = arith.addf %270, %278 : vector<24x20xf32>
      %c0_i32_110 = arith.constant 0 : i32
      %280 = arith.addi %260, %c0_i32_110 : i32
      %c0_111 = arith.constant 0 : index
      %281 = arith.index_cast %280 : i32 to index
      %c2_112 = arith.constant 2 : index
      %c0_113 = arith.constant 0 : index
      %282 = vector.load %arg1[%c0_111, %281, %c2_112, %c0_113] : memref<1x28x28x1xf32, #tpu.memory_space<vmem>>, vector<1x1x24x1xf32>
      %283 = vector.shape_cast %282 : vector<1x1x24x1xf32> to vector<1x24x1xf32>
      %284 = vector.shape_cast %283 : vector<1x24x1xf32> to vector<24x1xf32>
      %285 = vector.broadcast %284 : vector<24x1xf32> to vector<24x20xf32>
      %286 = vector.broadcast %4 : vector<1x20xf32> to vector<24x20xf32>
      %287 = arith.mulf %285, %286 : vector<24x20xf32>
      %288 = arith.addf %279, %287 : vector<24x20xf32>
      %c0_i32_114 = arith.constant 0 : i32
      %289 = arith.addi %260, %c0_i32_114 : i32
      %c0_115 = arith.constant 0 : index
      %290 = arith.index_cast %289 : i32 to index
      %c3_116 = arith.constant 3 : index
      %c0_117 = arith.constant 0 : index
      %291 = vector.load %arg1[%c0_115, %290, %c3_116, %c0_117] : memref<1x28x28x1xf32, #tpu.memory_space<vmem>>, vector<1x1x24x1xf32>
      %292 = vector.shape_cast %291 : vector<1x1x24x1xf32> to vector<1x24x1xf32>
      %293 = vector.shape_cast %292 : vector<1x24x1xf32> to vector<24x1xf32>
      %294 = vector.broadcast %293 : vector<24x1xf32> to vector<24x20xf32>
      %295 = vector.broadcast %5 : vector<1x20xf32> to vector<24x20xf32>
      %296 = arith.mulf %294, %295 : vector<24x20xf32>
      %297 = arith.addf %288, %296 : vector<24x20xf32>
      %c0_i32_118 = arith.constant 0 : i32
      %298 = arith.addi %260, %c0_i32_118 : i32
      %c0_119 = arith.constant 0 : index
      %299 = arith.index_cast %298 : i32 to index
      %c4_120 = arith.constant 4 : index
      %c0_121 = arith.constant 0 : index
      %300 = vector.load %arg1[%c0_119, %299, %c4_120, %c0_121] : memref<1x28x28x1xf32, #tpu.memory_space<vmem>>, vector<1x1x24x1xf32>
      %301 = vector.shape_cast %300 : vector<1x1x24x1xf32> to vector<1x24x1xf32>
      %302 = vector.shape_cast %301 : vector<1x24x1xf32> to vector<24x1xf32>
      %303 = vector.broadcast %302 : vector<24x1xf32> to vector<24x20xf32>
      %304 = vector.broadcast %6 : vector<1x20xf32> to vector<24x20xf32>
      %305 = arith.mulf %303, %304 : vector<24x20xf32>
      %306 = arith.addf %297, %305 : vector<24x20xf32>
      %c1_i32_122 = arith.constant 1 : i32
      %307 = arith.addi %260, %c1_i32_122 : i32
      %c0_123 = arith.constant 0 : index
      %308 = arith.index_cast %307 : i32 to index
      %c0_124 = arith.constant 0 : index
      %c0_125 = arith.constant 0 : index
      %309 = vector.load %arg1[%c0_123, %308, %c0_124, %c0_125] : memref<1x28x28x1xf32, #tpu.memory_space<vmem>>, vector<1x1x24x1xf32>
      %310 = vector.shape_cast %309 : vector<1x1x24x1xf32> to vector<1x24x1xf32>
      %311 = vector.shape_cast %310 : vector<1x24x1xf32> to vector<24x1xf32>
      %312 = vector.broadcast %311 : vector<24x1xf32> to vector<24x20xf32>
      %313 = vector.broadcast %7 : vector<1x20xf32> to vector<24x20xf32>
      %314 = arith.mulf %312, %313 : vector<24x20xf32>
      %315 = arith.addf %306, %314 : vector<24x20xf32>
      %c1_i32_126 = arith.constant 1 : i32
      %316 = arith.addi %260, %c1_i32_126 : i32
      %c0_127 = arith.constant 0 : index
      %317 = arith.index_cast %316 : i32 to index
      %c1_128 = arith.constant 1 : index
      %c0_129 = arith.constant 0 : index
      %318 = vector.load %arg1[%c0_127, %317, %c1_128, %c0_129] : memref<1x28x28x1xf32, #tpu.memory_space<vmem>>, vector<1x1x24x1xf32>
      %319 = vector.shape_cast %318 : vector<1x1x24x1xf32> to vector<1x24x1xf32>
      %320 = vector.shape_cast %319 : vector<1x24x1xf32> to vector<24x1xf32>
      %321 = vector.broadcast %320 : vector<24x1xf32> to vector<24x20xf32>
      %322 = vector.broadcast %8 : vector<1x20xf32> to vector<24x20xf32>
      %323 = arith.mulf %321, %322 : vector<24x20xf32>
      %324 = arith.addf %315, %323 : vector<24x20xf32>
      %c1_i32_130 = arith.constant 1 : i32
      %325 = arith.addi %260, %c1_i32_130 : i32
      %c0_131 = arith.constant 0 : index
      %326 = arith.index_cast %325 : i32 to index
      %c2_132 = arith.constant 2 : index
      %c0_133 = arith.constant 0 : index
      %327 = vector.load %arg1[%c0_131, %326, %c2_132, %c0_133] : memref<1x28x28x1xf32, #tpu.memory_space<vmem>>, vector<1x1x24x1xf32>
      %328 = vector.shape_cast %327 : vector<1x1x24x1xf32> to vector<1x24x1xf32>
      %329 = vector.shape_cast %328 : vector<1x24x1xf32> to vector<24x1xf32>
      %330 = vector.broadcast %329 : vector<24x1xf32> to vector<24x20xf32>
      %331 = vector.broadcast %9 : vector<1x20xf32> to vector<24x20xf32>
      %332 = arith.mulf %330, %331 : vector<24x20xf32>
      %333 = arith.addf %324, %332 : vector<24x20xf32>
      %c1_i32_134 = arith.constant 1 : i32
      %334 = arith.addi %260, %c1_i32_134 : i32
      %c0_135 = arith.constant 0 : index
      %335 = arith.index_cast %334 : i32 to index
      %c3_136 = arith.constant 3 : index
      %c0_137 = arith.constant 0 : index
      %336 = vector.load %arg1[%c0_135, %335, %c3_136, %c0_137] : memref<1x28x28x1xf32, #tpu.memory_space<vmem>>, vector<1x1x24x1xf32>
      %337 = vector.shape_cast %336 : vector<1x1x24x1xf32> to vector<1x24x1xf32>
      %338 = vector.shape_cast %337 : vector<1x24x1xf32> to vector<24x1xf32>
      %339 = vector.broadcast %338 : vector<24x1xf32> to vector<24x20xf32>
      %340 = vector.broadcast %10 : vector<1x20xf32> to vector<24x20xf32>
      %341 = arith.mulf %339, %340 : vector<24x20xf32>
      %342 = arith.addf %333, %341 : vector<24x20xf32>
      %c1_i32_138 = arith.constant 1 : i32
      %343 = arith.addi %260, %c1_i32_138 : i32
      %c0_139 = arith.constant 0 : index
      %344 = arith.index_cast %343 : i32 to index
      %c4_140 = arith.constant 4 : index
      %c0_141 = arith.constant 0 : index
      %345 = vector.load %arg1[%c0_139, %344, %c4_140, %c0_141] : memref<1x28x28x1xf32, #tpu.memory_space<vmem>>, vector<1x1x24x1xf32>
      %346 = vector.shape_cast %345 : vector<1x1x24x1xf32> to vector<1x24x1xf32>
      %347 = vector.shape_cast %346 : vector<1x24x1xf32> to vector<24x1xf32>
      %348 = vector.broadcast %347 : vector<24x1xf32> to vector<24x20xf32>
      %349 = vector.broadcast %11 : vector<1x20xf32> to vector<24x20xf32>
      %350 = arith.mulf %348, %349 : vector<24x20xf32>
      %351 = arith.addf %342, %350 : vector<24x20xf32>
      %c2_i32_142 = arith.constant 2 : i32
      %352 = arith.addi %260, %c2_i32_142 : i32
      %c0_143 = arith.constant 0 : index
      %353 = arith.index_cast %352 : i32 to index
      %c0_144 = arith.constant 0 : index
      %c0_145 = arith.constant 0 : index
      %354 = vector.load %arg1[%c0_143, %353, %c0_144, %c0_145] : memref<1x28x28x1xf32, #tpu.memory_space<vmem>>, vector<1x1x24x1xf32>
      %355 = vector.shape_cast %354 : vector<1x1x24x1xf32> to vector<1x24x1xf32>
      %356 = vector.shape_cast %355 : vector<1x24x1xf32> to vector<24x1xf32>
      %357 = vector.broadcast %356 : vector<24x1xf32> to vector<24x20xf32>
      %358 = vector.broadcast %12 : vector<1x20xf32> to vector<24x20xf32>
      %359 = arith.mulf %357, %358 : vector<24x20xf32>
      %360 = arith.addf %351, %359 : vector<24x20xf32>
      %c2_i32_146 = arith.constant 2 : i32
      %361 = arith.addi %260, %c2_i32_146 : i32
      %c0_147 = arith.constant 0 : index
      %362 = arith.index_cast %361 : i32 to index
      %c1_148 = arith.constant 1 : index
      %c0_149 = arith.constant 0 : index
      %363 = vector.load %arg1[%c0_147, %362, %c1_148, %c0_149] : memref<1x28x28x1xf32, #tpu.memory_space<vmem>>, vector<1x1x24x1xf32>
      %364 = vector.shape_cast %363 : vector<1x1x24x1xf32> to vector<1x24x1xf32>
      %365 = vector.shape_cast %364 : vector<1x24x1xf32> to vector<24x1xf32>
      %366 = vector.broadcast %365 : vector<24x1xf32> to vector<24x20xf32>
      %367 = vector.broadcast %13 : vector<1x20xf32> to vector<24x20xf32>
      %368 = arith.mulf %366, %367 : vector<24x20xf32>
      %369 = arith.addf %360, %368 : vector<24x20xf32>
      %c2_i32_150 = arith.constant 2 : i32
      %370 = arith.addi %260, %c2_i32_150 : i32
      %c0_151 = arith.constant 0 : index
      %371 = arith.index_cast %370 : i32 to index
      %c2_152 = arith.constant 2 : index
      %c0_153 = arith.constant 0 : index
      %372 = vector.load %arg1[%c0_151, %371, %c2_152, %c0_153] : memref<1x28x28x1xf32, #tpu.memory_space<vmem>>, vector<1x1x24x1xf32>
      %373 = vector.shape_cast %372 : vector<1x1x24x1xf32> to vector<1x24x1xf32>
      %374 = vector.shape_cast %373 : vector<1x24x1xf32> to vector<24x1xf32>
      %375 = vector.broadcast %374 : vector<24x1xf32> to vector<24x20xf32>
      %376 = vector.broadcast %14 : vector<1x20xf32> to vector<24x20xf32>
      %377 = arith.mulf %375, %376 : vector<24x20xf32>
      %378 = arith.addf %369, %377 : vector<24x20xf32>
      %c2_i32_154 = arith.constant 2 : i32
      %379 = arith.addi %260, %c2_i32_154 : i32
      %c0_155 = arith.constant 0 : index
      %380 = arith.index_cast %379 : i32 to index
      %c3_156 = arith.constant 3 : index
      %c0_157 = arith.constant 0 : index
      %381 = vector.load %arg1[%c0_155, %380, %c3_156, %c0_157] : memref<1x28x28x1xf32, #tpu.memory_space<vmem>>, vector<1x1x24x1xf32>
      %382 = vector.shape_cast %381 : vector<1x1x24x1xf32> to vector<1x24x1xf32>
      %383 = vector.shape_cast %382 : vector<1x24x1xf32> to vector<24x1xf32>
      %384 = vector.broadcast %383 : vector<24x1xf32> to vector<24x20xf32>
      %385 = vector.broadcast %15 : vector<1x20xf32> to vector<24x20xf32>
      %386 = arith.mulf %384, %385 : vector<24x20xf32>
      %387 = arith.addf %378, %386 : vector<24x20xf32>
      %c2_i32_158 = arith.constant 2 : i32
      %388 = arith.addi %260, %c2_i32_158 : i32
      %c0_159 = arith.constant 0 : index
      %389 = arith.index_cast %388 : i32 to index
      %c4_160 = arith.constant 4 : index
      %c0_161 = arith.constant 0 : index
      %390 = vector.load %arg1[%c0_159, %389, %c4_160, %c0_161] : memref<1x28x28x1xf32, #tpu.memory_space<vmem>>, vector<1x1x24x1xf32>
      %391 = vector.shape_cast %390 : vector<1x1x24x1xf32> to vector<1x24x1xf32>
      %392 = vector.shape_cast %391 : vector<1x24x1xf32> to vector<24x1xf32>
      %393 = vector.broadcast %392 : vector<24x1xf32> to vector<24x20xf32>
      %394 = vector.broadcast %16 : vector<1x20xf32> to vector<24x20xf32>
      %395 = arith.mulf %393, %394 : vector<24x20xf32>
      %396 = arith.addf %387, %395 : vector<24x20xf32>
      %c3_i32_162 = arith.constant 3 : i32
      %397 = arith.addi %260, %c3_i32_162 : i32
      %c0_163 = arith.constant 0 : index
      %398 = arith.index_cast %397 : i32 to index
      %c0_164 = arith.constant 0 : index
      %c0_165 = arith.constant 0 : index
      %399 = vector.load %arg1[%c0_163, %398, %c0_164, %c0_165] : memref<1x28x28x1xf32, #tpu.memory_space<vmem>>, vector<1x1x24x1xf32>
      %400 = vector.shape_cast %399 : vector<1x1x24x1xf32> to vector<1x24x1xf32>
      %401 = vector.shape_cast %400 : vector<1x24x1xf32> to vector<24x1xf32>
      %402 = vector.broadcast %401 : vector<24x1xf32> to vector<24x20xf32>
      %403 = vector.broadcast %17 : vector<1x20xf32> to vector<24x20xf32>
      %404 = arith.mulf %402, %403 : vector<24x20xf32>
      %405 = arith.addf %396, %404 : vector<24x20xf32>
      %c3_i32_166 = arith.constant 3 : i32
      %406 = arith.addi %260, %c3_i32_166 : i32
      %c0_167 = arith.constant 0 : index
      %407 = arith.index_cast %406 : i32 to index
      %c1_168 = arith.constant 1 : index
      %c0_169 = arith.constant 0 : index
      %408 = vector.load %arg1[%c0_167, %407, %c1_168, %c0_169] : memref<1x28x28x1xf32, #tpu.memory_space<vmem>>, vector<1x1x24x1xf32>
      %409 = vector.shape_cast %408 : vector<1x1x24x1xf32> to vector<1x24x1xf32>
      %410 = vector.shape_cast %409 : vector<1x24x1xf32> to vector<24x1xf32>
      %411 = vector.broadcast %410 : vector<24x1xf32> to vector<24x20xf32>
      %412 = vector.broadcast %18 : vector<1x20xf32> to vector<24x20xf32>
      %413 = arith.mulf %411, %412 : vector<24x20xf32>
      %414 = arith.addf %405, %413 : vector<24x20xf32>
      %c3_i32_170 = arith.constant 3 : i32
      %415 = arith.addi %260, %c3_i32_170 : i32
      %c0_171 = arith.constant 0 : index
      %416 = arith.index_cast %415 : i32 to index
      %c2_172 = arith.constant 2 : index
      %c0_173 = arith.constant 0 : index
      %417 = vector.load %arg1[%c0_171, %416, %c2_172, %c0_173] : memref<1x28x28x1xf32, #tpu.memory_space<vmem>>, vector<1x1x24x1xf32>
      %418 = vector.shape_cast %417 : vector<1x1x24x1xf32> to vector<1x24x1xf32>
      %419 = vector.shape_cast %418 : vector<1x24x1xf32> to vector<24x1xf32>
      %420 = vector.broadcast %419 : vector<24x1xf32> to vector<24x20xf32>
      %421 = vector.broadcast %19 : vector<1x20xf32> to vector<24x20xf32>
      %422 = arith.mulf %420, %421 : vector<24x20xf32>
      %423 = arith.addf %414, %422 : vector<24x20xf32>
      %c3_i32_174 = arith.constant 3 : i32
      %424 = arith.addi %260, %c3_i32_174 : i32
      %c0_175 = arith.constant 0 : index
      %425 = arith.index_cast %424 : i32 to index
      %c3_176 = arith.constant 3 : index
      %c0_177 = arith.constant 0 : index
      %426 = vector.load %arg1[%c0_175, %425, %c3_176, %c0_177] : memref<1x28x28x1xf32, #tpu.memory_space<vmem>>, vector<1x1x24x1xf32>
      %427 = vector.shape_cast %426 : vector<1x1x24x1xf32> to vector<1x24x1xf32>
      %428 = vector.shape_cast %427 : vector<1x24x1xf32> to vector<24x1xf32>
      %429 = vector.broadcast %428 : vector<24x1xf32> to vector<24x20xf32>
      %430 = vector.broadcast %20 : vector<1x20xf32> to vector<24x20xf32>
      %431 = arith.mulf %429, %430 : vector<24x20xf32>
      %432 = arith.addf %423, %431 : vector<24x20xf32>
      %c3_i32_178 = arith.constant 3 : i32
      %433 = arith.addi %260, %c3_i32_178 : i32
      %c0_179 = arith.constant 0 : index
      %434 = arith.index_cast %433 : i32 to index
      %c4_180 = arith.constant 4 : index
      %c0_181 = arith.constant 0 : index
      %435 = vector.load %arg1[%c0_179, %434, %c4_180, %c0_181] : memref<1x28x28x1xf32, #tpu.memory_space<vmem>>, vector<1x1x24x1xf32>
      %436 = vector.shape_cast %435 : vector<1x1x24x1xf32> to vector<1x24x1xf32>
      %437 = vector.shape_cast %436 : vector<1x24x1xf32> to vector<24x1xf32>
      %438 = vector.broadcast %437 : vector<24x1xf32> to vector<24x20xf32>
      %439 = vector.broadcast %21 : vector<1x20xf32> to vector<24x20xf32>
      %440 = arith.mulf %438, %439 : vector<24x20xf32>
      %441 = arith.addf %432, %440 : vector<24x20xf32>
      %c4_i32_182 = arith.constant 4 : i32
      %442 = arith.addi %260, %c4_i32_182 : i32
      %c0_183 = arith.constant 0 : index
      %443 = arith.index_cast %442 : i32 to index
      %c0_184 = arith.constant 0 : index
      %c0_185 = arith.constant 0 : index
      %444 = vector.load %arg1[%c0_183, %443, %c0_184, %c0_185] : memref<1x28x28x1xf32, #tpu.memory_space<vmem>>, vector<1x1x24x1xf32>
      %445 = vector.shape_cast %444 : vector<1x1x24x1xf32> to vector<1x24x1xf32>
      %446 = vector.shape_cast %445 : vector<1x24x1xf32> to vector<24x1xf32>
      %447 = vector.broadcast %446 : vector<24x1xf32> to vector<24x20xf32>
      %448 = vector.broadcast %22 : vector<1x20xf32> to vector<24x20xf32>
      %449 = arith.mulf %447, %448 : vector<24x20xf32>
      %450 = arith.addf %441, %449 : vector<24x20xf32>
      %c4_i32_186 = arith.constant 4 : i32
      %451 = arith.addi %260, %c4_i32_186 : i32
      %c0_187 = arith.constant 0 : index
      %452 = arith.index_cast %451 : i32 to index
      %c1_188 = arith.constant 1 : index
      %c0_189 = arith.constant 0 : index
      %453 = vector.load %arg1[%c0_187, %452, %c1_188, %c0_189] : memref<1x28x28x1xf32, #tpu.memory_space<vmem>>, vector<1x1x24x1xf32>
      %454 = vector.shape_cast %453 : vector<1x1x24x1xf32> to vector<1x24x1xf32>
      %455 = vector.shape_cast %454 : vector<1x24x1xf32> to vector<24x1xf32>
      %456 = vector.broadcast %455 : vector<24x1xf32> to vector<24x20xf32>
      %457 = vector.broadcast %23 : vector<1x20xf32> to vector<24x20xf32>
      %458 = arith.mulf %456, %457 : vector<24x20xf32>
      %459 = arith.addf %450, %458 : vector<24x20xf32>
      %c4_i32_190 = arith.constant 4 : i32
      %460 = arith.addi %260, %c4_i32_190 : i32
      %c0_191 = arith.constant 0 : index
      %461 = arith.index_cast %460 : i32 to index
      %c2_192 = arith.constant 2 : index
      %c0_193 = arith.constant 0 : index
      %462 = vector.load %arg1[%c0_191, %461, %c2_192, %c0_193] : memref<1x28x28x1xf32, #tpu.memory_space<vmem>>, vector<1x1x24x1xf32>
      %463 = vector.shape_cast %462 : vector<1x1x24x1xf32> to vector<1x24x1xf32>
      %464 = vector.shape_cast %463 : vector<1x24x1xf32> to vector<24x1xf32>
      %465 = vector.broadcast %464 : vector<24x1xf32> to vector<24x20xf32>
      %466 = vector.broadcast %24 : vector<1x20xf32> to vector<24x20xf32>
      %467 = arith.mulf %465, %466 : vector<24x20xf32>
      %468 = arith.addf %459, %467 : vector<24x20xf32>
      %c4_i32_194 = arith.constant 4 : i32
      %469 = arith.addi %260, %c4_i32_194 : i32
      %c0_195 = arith.constant 0 : index
      %470 = arith.index_cast %469 : i32 to index
      %c3_196 = arith.constant 3 : index
      %c0_197 = arith.constant 0 : index
      %471 = vector.load %arg1[%c0_195, %470, %c3_196, %c0_197] : memref<1x28x28x1xf32, #tpu.memory_space<vmem>>, vector<1x1x24x1xf32>
      %472 = vector.shape_cast %471 : vector<1x1x24x1xf32> to vector<1x24x1xf32>
      %473 = vector.shape_cast %472 : vector<1x24x1xf32> to vector<24x1xf32>
      %474 = vector.broadcast %473 : vector<24x1xf32> to vector<24x20xf32>
      %475 = vector.broadcast %25 : vector<1x20xf32> to vector<24x20xf32>
      %476 = arith.mulf %474, %475 : vector<24x20xf32>
      %477 = arith.addf %468, %476 : vector<24x20xf32>
      %c4_i32_198 = arith.constant 4 : i32
      %478 = arith.addi %260, %c4_i32_198 : i32
      %c0_199 = arith.constant 0 : index
      %479 = arith.index_cast %478 : i32 to index
      %c4_200 = arith.constant 4 : index
      %c0_201 = arith.constant 0 : index
      %480 = vector.load %arg1[%c0_199, %479, %c4_200, %c0_201] : memref<1x28x28x1xf32, #tpu.memory_space<vmem>>, vector<1x1x24x1xf32>
      %481 = vector.shape_cast %480 : vector<1x1x24x1xf32> to vector<1x24x1xf32>
      %482 = vector.shape_cast %481 : vector<1x24x1xf32> to vector<24x1xf32>
      %483 = vector.broadcast %482 : vector<24x1xf32> to vector<24x20xf32>
      %484 = vector.broadcast %26 : vector<1x20xf32> to vector<24x20xf32>
      %485 = arith.mulf %483, %484 : vector<24x20xf32>
      %486 = arith.addf %477, %485 : vector<24x20xf32>
      %487 = vector.broadcast %1 : vector<1x20xf32> to vector<24x20xf32>
      %488 = arith.addf %486, %487 : vector<24x20xf32>
      %cst_202 = arith.constant 0.000000e+00 : f32
      %489 = vector.broadcast %cst_202 : f32 to vector<24x20xf32>
      %490 = arith.maximumf %488, %489 : vector<24x20xf32>
      %491 = arith.maximumf %258, %490 : vector<24x20xf32>
      %492 = vector.extract_strided_slice %491 {offsets = [0, 0], sizes = [1, 20], strides = [1, 1]} : vector<24x20xf32> to vector<1x20xf32>
      %493 = vector.extract_strided_slice %491 {offsets = [1, 0], sizes = [1, 20], strides = [1, 1]} : vector<24x20xf32> to vector<1x20xf32>
      %494 = arith.maximumf %492, %493 : vector<1x20xf32>
      %495 = vector.extract_strided_slice %491 {offsets = [2, 0], sizes = [1, 20], strides = [1, 1]} : vector<24x20xf32> to vector<1x20xf32>
      %496 = vector.extract_strided_slice %491 {offsets = [3, 0], sizes = [1, 20], strides = [1, 1]} : vector<24x20xf32> to vector<1x20xf32>
      %497 = arith.maximumf %495, %496 : vector<1x20xf32>
      %498 = vector.extract_strided_slice %491 {offsets = [4, 0], sizes = [1, 20], strides = [1, 1]} : vector<24x20xf32> to vector<1x20xf32>
      %499 = vector.extract_strided_slice %491 {offsets = [5, 0], sizes = [1, 20], strides = [1, 1]} : vector<24x20xf32> to vector<1x20xf32>
      %500 = arith.maximumf %498, %499 : vector<1x20xf32>
      %501 = vector.extract_strided_slice %491 {offsets = [6, 0], sizes = [1, 20], strides = [1, 1]} : vector<24x20xf32> to vector<1x20xf32>
      %502 = vector.extract_strided_slice %491 {offsets = [7, 0], sizes = [1, 20], strides = [1, 1]} : vector<24x20xf32> to vector<1x20xf32>
      %503 = arith.maximumf %501, %502 : vector<1x20xf32>
      %504 = vector.extract_strided_slice %491 {offsets = [8, 0], sizes = [1, 20], strides = [1, 1]} : vector<24x20xf32> to vector<1x20xf32>
      %505 = vector.extract_strided_slice %491 {offsets = [9, 0], sizes = [1, 20], strides = [1, 1]} : vector<24x20xf32> to vector<1x20xf32>
      %506 = arith.maximumf %504, %505 : vector<1x20xf32>
      %507 = vector.extract_strided_slice %491 {offsets = [10, 0], sizes = [1, 20], strides = [1, 1]} : vector<24x20xf32> to vector<1x20xf32>
      %508 = vector.extract_strided_slice %491 {offsets = [11, 0], sizes = [1, 20], strides = [1, 1]} : vector<24x20xf32> to vector<1x20xf32>
      %509 = arith.maximumf %507, %508 : vector<1x20xf32>
      %510 = vector.extract_strided_slice %491 {offsets = [12, 0], sizes = [1, 20], strides = [1, 1]} : vector<24x20xf32> to vector<1x20xf32>
      %511 = vector.extract_strided_slice %491 {offsets = [13, 0], sizes = [1, 20], strides = [1, 1]} : vector<24x20xf32> to vector<1x20xf32>
      %512 = arith.maximumf %510, %511 : vector<1x20xf32>
      %513 = vector.extract_strided_slice %491 {offsets = [14, 0], sizes = [1, 20], strides = [1, 1]} : vector<24x20xf32> to vector<1x20xf32>
      %514 = vector.extract_strided_slice %491 {offsets = [15, 0], sizes = [1, 20], strides = [1, 1]} : vector<24x20xf32> to vector<1x20xf32>
      %515 = arith.maximumf %513, %514 : vector<1x20xf32>
      %516 = vector.extract_strided_slice %491 {offsets = [16, 0], sizes = [1, 20], strides = [1, 1]} : vector<24x20xf32> to vector<1x20xf32>
      %517 = vector.extract_strided_slice %491 {offsets = [17, 0], sizes = [1, 20], strides = [1, 1]} : vector<24x20xf32> to vector<1x20xf32>
      %518 = arith.maximumf %516, %517 : vector<1x20xf32>
      %519 = vector.extract_strided_slice %491 {offsets = [18, 0], sizes = [1, 20], strides = [1, 1]} : vector<24x20xf32> to vector<1x20xf32>
      %520 = vector.extract_strided_slice %491 {offsets = [19, 0], sizes = [1, 20], strides = [1, 1]} : vector<24x20xf32> to vector<1x20xf32>
      %521 = arith.maximumf %519, %520 : vector<1x20xf32>
      %522 = vector.extract_strided_slice %491 {offsets = [20, 0], sizes = [1, 20], strides = [1, 1]} : vector<24x20xf32> to vector<1x20xf32>
      %523 = vector.extract_strided_slice %491 {offsets = [21, 0], sizes = [1, 20], strides = [1, 1]} : vector<24x20xf32> to vector<1x20xf32>
      %524 = arith.maximumf %522, %523 : vector<1x20xf32>
      %525 = vector.extract_strided_slice %491 {offsets = [22, 0], sizes = [1, 20], strides = [1, 1]} : vector<24x20xf32> to vector<1x20xf32>
      %526 = vector.extract_strided_slice %491 {offsets = [23, 0], sizes = [1, 20], strides = [1, 1]} : vector<24x20xf32> to vector<1x20xf32>
      %527 = arith.maximumf %525, %526 : vector<1x20xf32>
      %528 = tpu.concatenate %494, %497, %500, %503, %506, %509, %512, %515, %518, %521, %524, %527 in 0 : vector<1x20xf32>, vector<1x20xf32>, vector<1x20xf32>, vector<1x20xf32>, vector<1x20xf32>, vector<1x20xf32>, vector<1x20xf32>, vector<1x20xf32>, vector<1x20xf32>, vector<1x20xf32>, vector<1x20xf32>, vector<1x20xf32> -> vector<12x20xf32>
      %529 = vector.shape_cast %528 : vector<12x20xf32> to vector<1x12x20xf32>
      %530 = arith.truncf %529 : vector<1x12x20xf32> to vector<1x12x20xbf16>
      %c0_203 = arith.constant 0 : index
      %531 = arith.index_cast %arg5 : i32 to index
      %c0_204 = arith.constant 0 : index
      %c0_205 = arith.constant 0 : index
      %532 = vector.load %arg4[%c0_203, %531, %c0_204, %c0_205] : memref<1x12x12x20xbf16, #tpu.memory_space<vmem>>, vector<1x1x12x20xbf16>
      %533 = vector.shape_cast %532 : vector<1x1x12x20xbf16> to vector<1x12x20xbf16>
      %534 = vector.shape_cast %530 : vector<1x12x20xbf16> to vector<1x1x12x20xbf16>
      tpu.vector_store %arg4[%c0_203, %531, %c0_204, %c0_205], %534 {strides = array<i32>} : memref<1x12x12x20xbf16, #tpu.memory_space<vmem>>, vector<1x1x12x20xbf16>,
    }
    %c12_i32_3 = arith.constant 12 : i32
    return
  }
  func.func @transform_0(%arg0: i32) -> (i32, i32, i32, i32) {
    %c0_i32 = arith.constant 0 : i32
    %c0_i32_0 = arith.constant 0 : i32
    %c0_i32_1 = arith.constant 0 : i32
    %c0_i32_2 = arith.constant 0 : i32
    return %arg0, %c0_i32, %c0_i32_0, %c0_i32_1 : i32, i32, i32, i32
  }
  func.func @transform_1(%arg0: i32) -> (i32, i32) {
    %c0_i32 = arith.constant 0 : i32
    %c0_i32_0 = arith.constant 0 : i32
    %c0_i32_1 = arith.constant 0 : i32
    return %c0_i32, %c0_i32_0 : i32, i32
  }
  func.func @transform_2(%arg0: i32) -> (i32, i32) {
    %c0_i32 = arith.constant 0 : i32
    %c0_i32_0 = arith.constant 0 : i32
    %c0_i32_1 = arith.constant 0 : i32
    return %c0_i32, %c0_i32_0 : i32, i32
  }
  func.func @transform_3(%arg0: i32) -> (i32, i32, i32, i32) {
    %c0_i32 = arith.constant 0 : i32
    %c0_i32_0 = arith.constant 0 : i32
    %c0_i32_1 = arith.constant 0 : i32
    %c0_i32_2 = arith.constant 0 : i32
    return %arg0, %c0_i32, %c0_i32_0, %c0_i32_1 : i32, i32, i32, i32
  }
}

module attributes {stable_mosaic.version = 11 : i64} {
  func.func @_conv5x5_relu_pool_kernel(%arg0: i32, %arg1: memref<1x12x12x20xbf16, #tpu.memory_space<vmem>>, %arg2: memref<500x50xbf16, #tpu.memory_space<vmem>>, %arg3: memref<1x50xf32, #tpu.memory_space<vmem>>, %arg4: memref<1x4x4x50xbf16, #tpu.memory_space<vmem>>) attributes {dimension_semantics = [#tpu.dimension_semantics<parallel>], iteration_bounds = array<i64: 2>, scalar_prefetch = 0 : i64, scratch_operands = 0 : i64, tpu.core_type = #tpu.core_type<tc>, window_params = [{transform_indices = @transform_0, window_bounds = array<i64: 1, 12, 12, 20>}, {pipeline_mode = #tpu.pipeline_mode<synchronous>, transform_indices = @transform_1, window_bounds = array<i64: 500, 50>}, {pipeline_mode = #tpu.pipeline_mode<synchronous>, transform_indices = @transform_2, window_bounds = array<i64: 1, 50>}, {transform_indices = @transform_3, window_bounds = array<i64: 1, 4, 4, 50>}]} {
    %c0 = arith.constant 0 : index
    %c0_0 = arith.constant 0 : index
    %0 = vector.load %arg2[%c0, %c0_0] : memref<500x50xbf16, #tpu.memory_space<vmem>>, vector<500x50xbf16>
    %c0_1 = arith.constant 0 : index
    %c0_2 = arith.constant 0 : index
    %1 = vector.load %arg3[%c0_1, %c0_2] : memref<1x50xf32, #tpu.memory_space<vmem>>, vector<1x50xf32>
    %2 = vector.extract_strided_slice %0 {offsets = [0, 0], sizes = [20, 50], strides = [1, 1]} : vector<500x50xbf16> to vector<20x50xbf16>
    %3 = vector.extract_strided_slice %0 {offsets = [20, 0], sizes = [20, 50], strides = [1, 1]} : vector<500x50xbf16> to vector<20x50xbf16>
    %4 = vector.extract_strided_slice %0 {offsets = [40, 0], sizes = [20, 50], strides = [1, 1]} : vector<500x50xbf16> to vector<20x50xbf16>
    %5 = vector.extract_strided_slice %0 {offsets = [60, 0], sizes = [20, 50], strides = [1, 1]} : vector<500x50xbf16> to vector<20x50xbf16>
    %6 = vector.extract_strided_slice %0 {offsets = [80, 0], sizes = [20, 50], strides = [1, 1]} : vector<500x50xbf16> to vector<20x50xbf16>
    %7 = vector.extract_strided_slice %0 {offsets = [100, 0], sizes = [20, 50], strides = [1, 1]} : vector<500x50xbf16> to vector<20x50xbf16>
    %8 = vector.extract_strided_slice %0 {offsets = [120, 0], sizes = [20, 50], strides = [1, 1]} : vector<500x50xbf16> to vector<20x50xbf16>
    %9 = vector.extract_strided_slice %0 {offsets = [140, 0], sizes = [20, 50], strides = [1, 1]} : vector<500x50xbf16> to vector<20x50xbf16>
    %10 = vector.extract_strided_slice %0 {offsets = [160, 0], sizes = [20, 50], strides = [1, 1]} : vector<500x50xbf16> to vector<20x50xbf16>
    %11 = vector.extract_strided_slice %0 {offsets = [180, 0], sizes = [20, 50], strides = [1, 1]} : vector<500x50xbf16> to vector<20x50xbf16>
    %12 = vector.extract_strided_slice %0 {offsets = [200, 0], sizes = [20, 50], strides = [1, 1]} : vector<500x50xbf16> to vector<20x50xbf16>
    %13 = vector.extract_strided_slice %0 {offsets = [220, 0], sizes = [20, 50], strides = [1, 1]} : vector<500x50xbf16> to vector<20x50xbf16>
    %14 = vector.extract_strided_slice %0 {offsets = [240, 0], sizes = [20, 50], strides = [1, 1]} : vector<500x50xbf16> to vector<20x50xbf16>
    %15 = vector.extract_strided_slice %0 {offsets = [260, 0], sizes = [20, 50], strides = [1, 1]} : vector<500x50xbf16> to vector<20x50xbf16>
    %16 = vector.extract_strided_slice %0 {offsets = [280, 0], sizes = [20, 50], strides = [1, 1]} : vector<500x50xbf16> to vector<20x50xbf16>
    %17 = vector.extract_strided_slice %0 {offsets = [300, 0], sizes = [20, 50], strides = [1, 1]} : vector<500x50xbf16> to vector<20x50xbf16>
    %18 = vector.extract_strided_slice %0 {offsets = [320, 0], sizes = [20, 50], strides = [1, 1]} : vector<500x50xbf16> to vector<20x50xbf16>
    %19 = vector.extract_strided_slice %0 {offsets = [340, 0], sizes = [20, 50], strides = [1, 1]} : vector<500x50xbf16> to vector<20x50xbf16>
    %20 = vector.extract_strided_slice %0 {offsets = [360, 0], sizes = [20, 50], strides = [1, 1]} : vector<500x50xbf16> to vector<20x50xbf16>
    %21 = vector.extract_strided_slice %0 {offsets = [380, 0], sizes = [20, 50], strides = [1, 1]} : vector<500x50xbf16> to vector<20x50xbf16>
    %22 = vector.extract_strided_slice %0 {offsets = [400, 0], sizes = [20, 50], strides = [1, 1]} : vector<500x50xbf16> to vector<20x50xbf16>
    %23 = vector.extract_strided_slice %0 {offsets = [420, 0], sizes = [20, 50], strides = [1, 1]} : vector<500x50xbf16> to vector<20x50xbf16>
    %24 = vector.extract_strided_slice %0 {offsets = [440, 0], sizes = [20, 50], strides = [1, 1]} : vector<500x50xbf16> to vector<20x50xbf16>
    %25 = vector.extract_strided_slice %0 {offsets = [460, 0], sizes = [20, 50], strides = [1, 1]} : vector<500x50xbf16> to vector<20x50xbf16>
    %26 = vector.extract_strided_slice %0 {offsets = [480, 0], sizes = [20, 50], strides = [1, 1]} : vector<500x50xbf16> to vector<20x50xbf16>
    %c0_i32 = arith.constant 0 : i32
    %c4_i32 = arith.constant 4 : i32
    %27 = arith.addi %c0_i32, %c4_i32 : i32
    %c1_i32 = arith.constant 1 : i32
    scf.for %arg5 = %c0_i32 to %27 step %c1_i32  : i32 {
      %c2_i32 = arith.constant 2 : i32
      %28 = arith.muli %c2_i32, %arg5 : i32
      %cst = arith.constant 0.000000e+00 : f32
      %29 = vector.broadcast %cst : f32 to vector<8x50xf32>
      %c0_i32_4 = arith.constant 0 : i32
      %30 = arith.addi %28, %c0_i32_4 : i32
      %c0_5 = arith.constant 0 : index
      %31 = arith.index_cast %30 : i32 to index
      %c0_6 = arith.constant 0 : index
      %c0_7 = arith.constant 0 : index
      %32 = vector.load %arg1[%c0_5, %31, %c0_6, %c0_7] : memref<1x12x12x20xbf16, #tpu.memory_space<vmem>>, vector<1x1x8x20xbf16>
      %33 = vector.shape_cast %32 : vector<1x1x8x20xbf16> to vector<1x8x20xbf16>
      %34 = vector.shape_cast %33 : vector<1x8x20xbf16> to vector<8x20xbf16>
      %cst_8 = arith.constant dense<0.000000e+00> : vector<8x50xf32>
      %35 = tpu.matmul %34, %2, %cst_8 {dimension_numbers = #tpu.dot_dimension_numbers<[1], [0], [0], [1], [0, 0, 1, 1], [], []>} : vector<8x20xbf16>, vector<20x50xbf16>, vector<8x50xf32> -> vector<8x50xf32>
      %36 = arith.addf %29, %35 : vector<8x50xf32>
      %c0_i32_9 = arith.constant 0 : i32
      %37 = arith.addi %28, %c0_i32_9 : i32
      %c0_10 = arith.constant 0 : index
      %38 = arith.index_cast %37 : i32 to index
      %c1 = arith.constant 1 : index
      %c0_11 = arith.constant 0 : index
      %39 = vector.load %arg1[%c0_10, %38, %c1, %c0_11] : memref<1x12x12x20xbf16, #tpu.memory_space<vmem>>, vector<1x1x8x20xbf16>
      %40 = vector.shape_cast %39 : vector<1x1x8x20xbf16> to vector<1x8x20xbf16>
      %41 = vector.shape_cast %40 : vector<1x8x20xbf16> to vector<8x20xbf16>
      %cst_12 = arith.constant dense<0.000000e+00> : vector<8x50xf32>
      %42 = tpu.matmul %41, %3, %cst_12 {dimension_numbers = #tpu.dot_dimension_numbers<[1], [0], [0], [1], [0, 0, 1, 1], [], []>} : vector<8x20xbf16>, vector<20x50xbf16>, vector<8x50xf32> -> vector<8x50xf32>
      %43 = arith.addf %36, %42 : vector<8x50xf32>
      %c0_i32_13 = arith.constant 0 : i32
      %44 = arith.addi %28, %c0_i32_13 : i32
      %c0_14 = arith.constant 0 : index
      %45 = arith.index_cast %44 : i32 to index
      %c2 = arith.constant 2 : index
      %c0_15 = arith.constant 0 : index
      %46 = vector.load %arg1[%c0_14, %45, %c2, %c0_15] : memref<1x12x12x20xbf16, #tpu.memory_space<vmem>>, vector<1x1x8x20xbf16>
      %47 = vector.shape_cast %46 : vector<1x1x8x20xbf16> to vector<1x8x20xbf16>
      %48 = vector.shape_cast %47 : vector<1x8x20xbf16> to vector<8x20xbf16>
      %cst_16 = arith.constant dense<0.000000e+00> : vector<8x50xf32>
      %49 = tpu.matmul %48, %4, %cst_16 {dimension_numbers = #tpu.dot_dimension_numbers<[1], [0], [0], [1], [0, 0, 1, 1], [], []>} : vector<8x20xbf16>, vector<20x50xbf16>, vector<8x50xf32> -> vector<8x50xf32>
      %50 = arith.addf %43, %49 : vector<8x50xf32>
      %c0_i32_17 = arith.constant 0 : i32
      %51 = arith.addi %28, %c0_i32_17 : i32
      %c0_18 = arith.constant 0 : index
      %52 = arith.index_cast %51 : i32 to index
      %c3 = arith.constant 3 : index
      %c0_19 = arith.constant 0 : index
      %53 = vector.load %arg1[%c0_18, %52, %c3, %c0_19] : memref<1x12x12x20xbf16, #tpu.memory_space<vmem>>, vector<1x1x8x20xbf16>
      %54 = vector.shape_cast %53 : vector<1x1x8x20xbf16> to vector<1x8x20xbf16>
      %55 = vector.shape_cast %54 : vector<1x8x20xbf16> to vector<8x20xbf16>
      %cst_20 = arith.constant dense<0.000000e+00> : vector<8x50xf32>
      %56 = tpu.matmul %55, %5, %cst_20 {dimension_numbers = #tpu.dot_dimension_numbers<[1], [0], [0], [1], [0, 0, 1, 1], [], []>} : vector<8x20xbf16>, vector<20x50xbf16>, vector<8x50xf32> -> vector<8x50xf32>
      %57 = arith.addf %50, %56 : vector<8x50xf32>
      %c0_i32_21 = arith.constant 0 : i32
      %58 = arith.addi %28, %c0_i32_21 : i32
      %c0_22 = arith.constant 0 : index
      %59 = arith.index_cast %58 : i32 to index
      %c4 = arith.constant 4 : index
      %c0_23 = arith.constant 0 : index
      %60 = vector.load %arg1[%c0_22, %59, %c4, %c0_23] : memref<1x12x12x20xbf16, #tpu.memory_space<vmem>>, vector<1x1x8x20xbf16>
      %61 = vector.shape_cast %60 : vector<1x1x8x20xbf16> to vector<1x8x20xbf16>
      %62 = vector.shape_cast %61 : vector<1x8x20xbf16> to vector<8x20xbf16>
      %cst_24 = arith.constant dense<0.000000e+00> : vector<8x50xf32>
      %63 = tpu.matmul %62, %6, %cst_24 {dimension_numbers = #tpu.dot_dimension_numbers<[1], [0], [0], [1], [0, 0, 1, 1], [], []>} : vector<8x20xbf16>, vector<20x50xbf16>, vector<8x50xf32> -> vector<8x50xf32>
      %64 = arith.addf %57, %63 : vector<8x50xf32>
      %c1_i32_25 = arith.constant 1 : i32
      %65 = arith.addi %28, %c1_i32_25 : i32
      %c0_26 = arith.constant 0 : index
      %66 = arith.index_cast %65 : i32 to index
      %c0_27 = arith.constant 0 : index
      %c0_28 = arith.constant 0 : index
      %67 = vector.load %arg1[%c0_26, %66, %c0_27, %c0_28] : memref<1x12x12x20xbf16, #tpu.memory_space<vmem>>, vector<1x1x8x20xbf16>
      %68 = vector.shape_cast %67 : vector<1x1x8x20xbf16> to vector<1x8x20xbf16>
      %69 = vector.shape_cast %68 : vector<1x8x20xbf16> to vector<8x20xbf16>
      %cst_29 = arith.constant dense<0.000000e+00> : vector<8x50xf32>
      %70 = tpu.matmul %69, %7, %cst_29 {dimension_numbers = #tpu.dot_dimension_numbers<[1], [0], [0], [1], [0, 0, 1, 1], [], []>} : vector<8x20xbf16>, vector<20x50xbf16>, vector<8x50xf32> -> vector<8x50xf32>
      %71 = arith.addf %64, %70 : vector<8x50xf32>
      %c1_i32_30 = arith.constant 1 : i32
      %72 = arith.addi %28, %c1_i32_30 : i32
      %c0_31 = arith.constant 0 : index
      %73 = arith.index_cast %72 : i32 to index
      %c1_32 = arith.constant 1 : index
      %c0_33 = arith.constant 0 : index
      %74 = vector.load %arg1[%c0_31, %73, %c1_32, %c0_33] : memref<1x12x12x20xbf16, #tpu.memory_space<vmem>>, vector<1x1x8x20xbf16>
      %75 = vector.shape_cast %74 : vector<1x1x8x20xbf16> to vector<1x8x20xbf16>
      %76 = vector.shape_cast %75 : vector<1x8x20xbf16> to vector<8x20xbf16>
      %cst_34 = arith.constant dense<0.000000e+00> : vector<8x50xf32>
      %77 = tpu.matmul %76, %8, %cst_34 {dimension_numbers = #tpu.dot_dimension_numbers<[1], [0], [0], [1], [0, 0, 1, 1], [], []>} : vector<8x20xbf16>, vector<20x50xbf16>, vector<8x50xf32> -> vector<8x50xf32>
      %78 = arith.addf %71, %77 : vector<8x50xf32>
      %c1_i32_35 = arith.constant 1 : i32
      %79 = arith.addi %28, %c1_i32_35 : i32
      %c0_36 = arith.constant 0 : index
      %80 = arith.index_cast %79 : i32 to index
      %c2_37 = arith.constant 2 : index
      %c0_38 = arith.constant 0 : index
      %81 = vector.load %arg1[%c0_36, %80, %c2_37, %c0_38] : memref<1x12x12x20xbf16, #tpu.memory_space<vmem>>, vector<1x1x8x20xbf16>
      %82 = vector.shape_cast %81 : vector<1x1x8x20xbf16> to vector<1x8x20xbf16>
      %83 = vector.shape_cast %82 : vector<1x8x20xbf16> to vector<8x20xbf16>
      %cst_39 = arith.constant dense<0.000000e+00> : vector<8x50xf32>
      %84 = tpu.matmul %83, %9, %cst_39 {dimension_numbers = #tpu.dot_dimension_numbers<[1], [0], [0], [1], [0, 0, 1, 1], [], []>} : vector<8x20xbf16>, vector<20x50xbf16>, vector<8x50xf32> -> vector<8x50xf32>
      %85 = arith.addf %78, %84 : vector<8x50xf32>
      %c1_i32_40 = arith.constant 1 : i32
      %86 = arith.addi %28, %c1_i32_40 : i32
      %c0_41 = arith.constant 0 : index
      %87 = arith.index_cast %86 : i32 to index
      %c3_42 = arith.constant 3 : index
      %c0_43 = arith.constant 0 : index
      %88 = vector.load %arg1[%c0_41, %87, %c3_42, %c0_43] : memref<1x12x12x20xbf16, #tpu.memory_space<vmem>>, vector<1x1x8x20xbf16>
      %89 = vector.shape_cast %88 : vector<1x1x8x20xbf16> to vector<1x8x20xbf16>
      %90 = vector.shape_cast %89 : vector<1x8x20xbf16> to vector<8x20xbf16>
      %cst_44 = arith.constant dense<0.000000e+00> : vector<8x50xf32>
      %91 = tpu.matmul %90, %10, %cst_44 {dimension_numbers = #tpu.dot_dimension_numbers<[1], [0], [0], [1], [0, 0, 1, 1], [], []>} : vector<8x20xbf16>, vector<20x50xbf16>, vector<8x50xf32> -> vector<8x50xf32>
      %92 = arith.addf %85, %91 : vector<8x50xf32>
      %c1_i32_45 = arith.constant 1 : i32
      %93 = arith.addi %28, %c1_i32_45 : i32
      %c0_46 = arith.constant 0 : index
      %94 = arith.index_cast %93 : i32 to index
      %c4_47 = arith.constant 4 : index
      %c0_48 = arith.constant 0 : index
      %95 = vector.load %arg1[%c0_46, %94, %c4_47, %c0_48] : memref<1x12x12x20xbf16, #tpu.memory_space<vmem>>, vector<1x1x8x20xbf16>
      %96 = vector.shape_cast %95 : vector<1x1x8x20xbf16> to vector<1x8x20xbf16>
      %97 = vector.shape_cast %96 : vector<1x8x20xbf16> to vector<8x20xbf16>
      %cst_49 = arith.constant dense<0.000000e+00> : vector<8x50xf32>
      %98 = tpu.matmul %97, %11, %cst_49 {dimension_numbers = #tpu.dot_dimension_numbers<[1], [0], [0], [1], [0, 0, 1, 1], [], []>} : vector<8x20xbf16>, vector<20x50xbf16>, vector<8x50xf32> -> vector<8x50xf32>
      %99 = arith.addf %92, %98 : vector<8x50xf32>
      %c2_i32_50 = arith.constant 2 : i32
      %100 = arith.addi %28, %c2_i32_50 : i32
      %c0_51 = arith.constant 0 : index
      %101 = arith.index_cast %100 : i32 to index
      %c0_52 = arith.constant 0 : index
      %c0_53 = arith.constant 0 : index
      %102 = vector.load %arg1[%c0_51, %101, %c0_52, %c0_53] : memref<1x12x12x20xbf16, #tpu.memory_space<vmem>>, vector<1x1x8x20xbf16>
      %103 = vector.shape_cast %102 : vector<1x1x8x20xbf16> to vector<1x8x20xbf16>
      %104 = vector.shape_cast %103 : vector<1x8x20xbf16> to vector<8x20xbf16>
      %cst_54 = arith.constant dense<0.000000e+00> : vector<8x50xf32>
      %105 = tpu.matmul %104, %12, %cst_54 {dimension_numbers = #tpu.dot_dimension_numbers<[1], [0], [0], [1], [0, 0, 1, 1], [], []>} : vector<8x20xbf16>, vector<20x50xbf16>, vector<8x50xf32> -> vector<8x50xf32>
      %106 = arith.addf %99, %105 : vector<8x50xf32>
      %c2_i32_55 = arith.constant 2 : i32
      %107 = arith.addi %28, %c2_i32_55 : i32
      %c0_56 = arith.constant 0 : index
      %108 = arith.index_cast %107 : i32 to index
      %c1_57 = arith.constant 1 : index
      %c0_58 = arith.constant 0 : index
      %109 = vector.load %arg1[%c0_56, %108, %c1_57, %c0_58] : memref<1x12x12x20xbf16, #tpu.memory_space<vmem>>, vector<1x1x8x20xbf16>
      %110 = vector.shape_cast %109 : vector<1x1x8x20xbf16> to vector<1x8x20xbf16>
      %111 = vector.shape_cast %110 : vector<1x8x20xbf16> to vector<8x20xbf16>
      %cst_59 = arith.constant dense<0.000000e+00> : vector<8x50xf32>
      %112 = tpu.matmul %111, %13, %cst_59 {dimension_numbers = #tpu.dot_dimension_numbers<[1], [0], [0], [1], [0, 0, 1, 1], [], []>} : vector<8x20xbf16>, vector<20x50xbf16>, vector<8x50xf32> -> vector<8x50xf32>
      %113 = arith.addf %106, %112 : vector<8x50xf32>
      %c2_i32_60 = arith.constant 2 : i32
      %114 = arith.addi %28, %c2_i32_60 : i32
      %c0_61 = arith.constant 0 : index
      %115 = arith.index_cast %114 : i32 to index
      %c2_62 = arith.constant 2 : index
      %c0_63 = arith.constant 0 : index
      %116 = vector.load %arg1[%c0_61, %115, %c2_62, %c0_63] : memref<1x12x12x20xbf16, #tpu.memory_space<vmem>>, vector<1x1x8x20xbf16>
      %117 = vector.shape_cast %116 : vector<1x1x8x20xbf16> to vector<1x8x20xbf16>
      %118 = vector.shape_cast %117 : vector<1x8x20xbf16> to vector<8x20xbf16>
      %cst_64 = arith.constant dense<0.000000e+00> : vector<8x50xf32>
      %119 = tpu.matmul %118, %14, %cst_64 {dimension_numbers = #tpu.dot_dimension_numbers<[1], [0], [0], [1], [0, 0, 1, 1], [], []>} : vector<8x20xbf16>, vector<20x50xbf16>, vector<8x50xf32> -> vector<8x50xf32>
      %120 = arith.addf %113, %119 : vector<8x50xf32>
      %c2_i32_65 = arith.constant 2 : i32
      %121 = arith.addi %28, %c2_i32_65 : i32
      %c0_66 = arith.constant 0 : index
      %122 = arith.index_cast %121 : i32 to index
      %c3_67 = arith.constant 3 : index
      %c0_68 = arith.constant 0 : index
      %123 = vector.load %arg1[%c0_66, %122, %c3_67, %c0_68] : memref<1x12x12x20xbf16, #tpu.memory_space<vmem>>, vector<1x1x8x20xbf16>
      %124 = vector.shape_cast %123 : vector<1x1x8x20xbf16> to vector<1x8x20xbf16>
      %125 = vector.shape_cast %124 : vector<1x8x20xbf16> to vector<8x20xbf16>
      %cst_69 = arith.constant dense<0.000000e+00> : vector<8x50xf32>
      %126 = tpu.matmul %125, %15, %cst_69 {dimension_numbers = #tpu.dot_dimension_numbers<[1], [0], [0], [1], [0, 0, 1, 1], [], []>} : vector<8x20xbf16>, vector<20x50xbf16>, vector<8x50xf32> -> vector<8x50xf32>
      %127 = arith.addf %120, %126 : vector<8x50xf32>
      %c2_i32_70 = arith.constant 2 : i32
      %128 = arith.addi %28, %c2_i32_70 : i32
      %c0_71 = arith.constant 0 : index
      %129 = arith.index_cast %128 : i32 to index
      %c4_72 = arith.constant 4 : index
      %c0_73 = arith.constant 0 : index
      %130 = vector.load %arg1[%c0_71, %129, %c4_72, %c0_73] : memref<1x12x12x20xbf16, #tpu.memory_space<vmem>>, vector<1x1x8x20xbf16>
      %131 = vector.shape_cast %130 : vector<1x1x8x20xbf16> to vector<1x8x20xbf16>
      %132 = vector.shape_cast %131 : vector<1x8x20xbf16> to vector<8x20xbf16>
      %cst_74 = arith.constant dense<0.000000e+00> : vector<8x50xf32>
      %133 = tpu.matmul %132, %16, %cst_74 {dimension_numbers = #tpu.dot_dimension_numbers<[1], [0], [0], [1], [0, 0, 1, 1], [], []>} : vector<8x20xbf16>, vector<20x50xbf16>, vector<8x50xf32> -> vector<8x50xf32>
      %134 = arith.addf %127, %133 : vector<8x50xf32>
      %c3_i32 = arith.constant 3 : i32
      %135 = arith.addi %28, %c3_i32 : i32
      %c0_75 = arith.constant 0 : index
      %136 = arith.index_cast %135 : i32 to index
      %c0_76 = arith.constant 0 : index
      %c0_77 = arith.constant 0 : index
      %137 = vector.load %arg1[%c0_75, %136, %c0_76, %c0_77] : memref<1x12x12x20xbf16, #tpu.memory_space<vmem>>, vector<1x1x8x20xbf16>
      %138 = vector.shape_cast %137 : vector<1x1x8x20xbf16> to vector<1x8x20xbf16>
      %139 = vector.shape_cast %138 : vector<1x8x20xbf16> to vector<8x20xbf16>
      %cst_78 = arith.constant dense<0.000000e+00> : vector<8x50xf32>
      %140 = tpu.matmul %139, %17, %cst_78 {dimension_numbers = #tpu.dot_dimension_numbers<[1], [0], [0], [1], [0, 0, 1, 1], [], []>} : vector<8x20xbf16>, vector<20x50xbf16>, vector<8x50xf32> -> vector<8x50xf32>
      %141 = arith.addf %134, %140 : vector<8x50xf32>
      %c3_i32_79 = arith.constant 3 : i32
      %142 = arith.addi %28, %c3_i32_79 : i32
      %c0_80 = arith.constant 0 : index
      %143 = arith.index_cast %142 : i32 to index
      %c1_81 = arith.constant 1 : index
      %c0_82 = arith.constant 0 : index
      %144 = vector.load %arg1[%c0_80, %143, %c1_81, %c0_82] : memref<1x12x12x20xbf16, #tpu.memory_space<vmem>>, vector<1x1x8x20xbf16>
      %145 = vector.shape_cast %144 : vector<1x1x8x20xbf16> to vector<1x8x20xbf16>
      %146 = vector.shape_cast %145 : vector<1x8x20xbf16> to vector<8x20xbf16>
      %cst_83 = arith.constant dense<0.000000e+00> : vector<8x50xf32>
      %147 = tpu.matmul %146, %18, %cst_83 {dimension_numbers = #tpu.dot_dimension_numbers<[1], [0], [0], [1], [0, 0, 1, 1], [], []>} : vector<8x20xbf16>, vector<20x50xbf16>, vector<8x50xf32> -> vector<8x50xf32>
      %148 = arith.addf %141, %147 : vector<8x50xf32>
      %c3_i32_84 = arith.constant 3 : i32
      %149 = arith.addi %28, %c3_i32_84 : i32
      %c0_85 = arith.constant 0 : index
      %150 = arith.index_cast %149 : i32 to index
      %c2_86 = arith.constant 2 : index
      %c0_87 = arith.constant 0 : index
      %151 = vector.load %arg1[%c0_85, %150, %c2_86, %c0_87] : memref<1x12x12x20xbf16, #tpu.memory_space<vmem>>, vector<1x1x8x20xbf16>
      %152 = vector.shape_cast %151 : vector<1x1x8x20xbf16> to vector<1x8x20xbf16>
      %153 = vector.shape_cast %152 : vector<1x8x20xbf16> to vector<8x20xbf16>
      %cst_88 = arith.constant dense<0.000000e+00> : vector<8x50xf32>
      %154 = tpu.matmul %153, %19, %cst_88 {dimension_numbers = #tpu.dot_dimension_numbers<[1], [0], [0], [1], [0, 0, 1, 1], [], []>} : vector<8x20xbf16>, vector<20x50xbf16>, vector<8x50xf32> -> vector<8x50xf32>
      %155 = arith.addf %148, %154 : vector<8x50xf32>
      %c3_i32_89 = arith.constant 3 : i32
      %156 = arith.addi %28, %c3_i32_89 : i32
      %c0_90 = arith.constant 0 : index
      %157 = arith.index_cast %156 : i32 to index
      %c3_91 = arith.constant 3 : index
      %c0_92 = arith.constant 0 : index
      %158 = vector.load %arg1[%c0_90, %157, %c3_91, %c0_92] : memref<1x12x12x20xbf16, #tpu.memory_space<vmem>>, vector<1x1x8x20xbf16>
      %159 = vector.shape_cast %158 : vector<1x1x8x20xbf16> to vector<1x8x20xbf16>
      %160 = vector.shape_cast %159 : vector<1x8x20xbf16> to vector<8x20xbf16>
      %cst_93 = arith.constant dense<0.000000e+00> : vector<8x50xf32>
      %161 = tpu.matmul %160, %20, %cst_93 {dimension_numbers = #tpu.dot_dimension_numbers<[1], [0], [0], [1], [0, 0, 1, 1], [], []>} : vector<8x20xbf16>, vector<20x50xbf16>, vector<8x50xf32> -> vector<8x50xf32>
      %162 = arith.addf %155, %161 : vector<8x50xf32>
      %c3_i32_94 = arith.constant 3 : i32
      %163 = arith.addi %28, %c3_i32_94 : i32
      %c0_95 = arith.constant 0 : index
      %164 = arith.index_cast %163 : i32 to index
      %c4_96 = arith.constant 4 : index
      %c0_97 = arith.constant 0 : index
      %165 = vector.load %arg1[%c0_95, %164, %c4_96, %c0_97] : memref<1x12x12x20xbf16, #tpu.memory_space<vmem>>, vector<1x1x8x20xbf16>
      %166 = vector.shape_cast %165 : vector<1x1x8x20xbf16> to vector<1x8x20xbf16>
      %167 = vector.shape_cast %166 : vector<1x8x20xbf16> to vector<8x20xbf16>
      %cst_98 = arith.constant dense<0.000000e+00> : vector<8x50xf32>
      %168 = tpu.matmul %167, %21, %cst_98 {dimension_numbers = #tpu.dot_dimension_numbers<[1], [0], [0], [1], [0, 0, 1, 1], [], []>} : vector<8x20xbf16>, vector<20x50xbf16>, vector<8x50xf32> -> vector<8x50xf32>
      %169 = arith.addf %162, %168 : vector<8x50xf32>
      %c4_i32_99 = arith.constant 4 : i32
      %170 = arith.addi %28, %c4_i32_99 : i32
      %c0_100 = arith.constant 0 : index
      %171 = arith.index_cast %170 : i32 to index
      %c0_101 = arith.constant 0 : index
      %c0_102 = arith.constant 0 : index
      %172 = vector.load %arg1[%c0_100, %171, %c0_101, %c0_102] : memref<1x12x12x20xbf16, #tpu.memory_space<vmem>>, vector<1x1x8x20xbf16>
      %173 = vector.shape_cast %172 : vector<1x1x8x20xbf16> to vector<1x8x20xbf16>
      %174 = vector.shape_cast %173 : vector<1x8x20xbf16> to vector<8x20xbf16>
      %cst_103 = arith.constant dense<0.000000e+00> : vector<8x50xf32>
      %175 = tpu.matmul %174, %22, %cst_103 {dimension_numbers = #tpu.dot_dimension_numbers<[1], [0], [0], [1], [0, 0, 1, 1], [], []>} : vector<8x20xbf16>, vector<20x50xbf16>, vector<8x50xf32> -> vector<8x50xf32>
      %176 = arith.addf %169, %175 : vector<8x50xf32>
      %c4_i32_104 = arith.constant 4 : i32
      %177 = arith.addi %28, %c4_i32_104 : i32
      %c0_105 = arith.constant 0 : index
      %178 = arith.index_cast %177 : i32 to index
      %c1_106 = arith.constant 1 : index
      %c0_107 = arith.constant 0 : index
      %179 = vector.load %arg1[%c0_105, %178, %c1_106, %c0_107] : memref<1x12x12x20xbf16, #tpu.memory_space<vmem>>, vector<1x1x8x20xbf16>
      %180 = vector.shape_cast %179 : vector<1x1x8x20xbf16> to vector<1x8x20xbf16>
      %181 = vector.shape_cast %180 : vector<1x8x20xbf16> to vector<8x20xbf16>
      %cst_108 = arith.constant dense<0.000000e+00> : vector<8x50xf32>
      %182 = tpu.matmul %181, %23, %cst_108 {dimension_numbers = #tpu.dot_dimension_numbers<[1], [0], [0], [1], [0, 0, 1, 1], [], []>} : vector<8x20xbf16>, vector<20x50xbf16>, vector<8x50xf32> -> vector<8x50xf32>
      %183 = arith.addf %176, %182 : vector<8x50xf32>
      %c4_i32_109 = arith.constant 4 : i32
      %184 = arith.addi %28, %c4_i32_109 : i32
      %c0_110 = arith.constant 0 : index
      %185 = arith.index_cast %184 : i32 to index
      %c2_111 = arith.constant 2 : index
      %c0_112 = arith.constant 0 : index
      %186 = vector.load %arg1[%c0_110, %185, %c2_111, %c0_112] : memref<1x12x12x20xbf16, #tpu.memory_space<vmem>>, vector<1x1x8x20xbf16>
      %187 = vector.shape_cast %186 : vector<1x1x8x20xbf16> to vector<1x8x20xbf16>
      %188 = vector.shape_cast %187 : vector<1x8x20xbf16> to vector<8x20xbf16>
      %cst_113 = arith.constant dense<0.000000e+00> : vector<8x50xf32>
      %189 = tpu.matmul %188, %24, %cst_113 {dimension_numbers = #tpu.dot_dimension_numbers<[1], [0], [0], [1], [0, 0, 1, 1], [], []>} : vector<8x20xbf16>, vector<20x50xbf16>, vector<8x50xf32> -> vector<8x50xf32>
      %190 = arith.addf %183, %189 : vector<8x50xf32>
      %c4_i32_114 = arith.constant 4 : i32
      %191 = arith.addi %28, %c4_i32_114 : i32
      %c0_115 = arith.constant 0 : index
      %192 = arith.index_cast %191 : i32 to index
      %c3_116 = arith.constant 3 : index
      %c0_117 = arith.constant 0 : index
      %193 = vector.load %arg1[%c0_115, %192, %c3_116, %c0_117] : memref<1x12x12x20xbf16, #tpu.memory_space<vmem>>, vector<1x1x8x20xbf16>
      %194 = vector.shape_cast %193 : vector<1x1x8x20xbf16> to vector<1x8x20xbf16>
      %195 = vector.shape_cast %194 : vector<1x8x20xbf16> to vector<8x20xbf16>
      %cst_118 = arith.constant dense<0.000000e+00> : vector<8x50xf32>
      %196 = tpu.matmul %195, %25, %cst_118 {dimension_numbers = #tpu.dot_dimension_numbers<[1], [0], [0], [1], [0, 0, 1, 1], [], []>} : vector<8x20xbf16>, vector<20x50xbf16>, vector<8x50xf32> -> vector<8x50xf32>
      %197 = arith.addf %190, %196 : vector<8x50xf32>
      %c4_i32_119 = arith.constant 4 : i32
      %198 = arith.addi %28, %c4_i32_119 : i32
      %c0_120 = arith.constant 0 : index
      %199 = arith.index_cast %198 : i32 to index
      %c4_121 = arith.constant 4 : index
      %c0_122 = arith.constant 0 : index
      %200 = vector.load %arg1[%c0_120, %199, %c4_121, %c0_122] : memref<1x12x12x20xbf16, #tpu.memory_space<vmem>>, vector<1x1x8x20xbf16>
      %201 = vector.shape_cast %200 : vector<1x1x8x20xbf16> to vector<1x8x20xbf16>
      %202 = vector.shape_cast %201 : vector<1x8x20xbf16> to vector<8x20xbf16>
      %cst_123 = arith.constant dense<0.000000e+00> : vector<8x50xf32>
      %203 = tpu.matmul %202, %26, %cst_123 {dimension_numbers = #tpu.dot_dimension_numbers<[1], [0], [0], [1], [0, 0, 1, 1], [], []>} : vector<8x20xbf16>, vector<20x50xbf16>, vector<8x50xf32> -> vector<8x50xf32>
      %204 = arith.addf %197, %203 : vector<8x50xf32>
      %205 = vector.broadcast %1 : vector<1x50xf32> to vector<8x50xf32>
      %206 = arith.addf %204, %205 : vector<8x50xf32>
      %cst_124 = arith.constant 0.000000e+00 : f32
      %207 = vector.broadcast %cst_124 : f32 to vector<8x50xf32>
      %208 = arith.maximumf %206, %207 : vector<8x50xf32>
      %c2_i32_125 = arith.constant 2 : i32
      %209 = arith.muli %c2_i32_125, %arg5 : i32
      %c1_i32_126 = arith.constant 1 : i32
      %210 = arith.addi %209, %c1_i32_126 : i32
      %cst_127 = arith.constant 0.000000e+00 : f32
      %211 = vector.broadcast %cst_127 : f32 to vector<8x50xf32>
      %c0_i32_128 = arith.constant 0 : i32
      %212 = arith.addi %210, %c0_i32_128 : i32
      %c0_129 = arith.constant 0 : index
      %213 = arith.index_cast %212 : i32 to index
      %c0_130 = arith.constant 0 : index
      %c0_131 = arith.constant 0 : index
      %214 = vector.load %arg1[%c0_129, %213, %c0_130, %c0_131] : memref<1x12x12x20xbf16, #tpu.memory_space<vmem>>, vector<1x1x8x20xbf16>
      %215 = vector.shape_cast %214 : vector<1x1x8x20xbf16> to vector<1x8x20xbf16>
      %216 = vector.shape_cast %215 : vector<1x8x20xbf16> to vector<8x20xbf16>
      %cst_132 = arith.constant dense<0.000000e+00> : vector<8x50xf32>
      %217 = tpu.matmul %216, %2, %cst_132 {dimension_numbers = #tpu.dot_dimension_numbers<[1], [0], [0], [1], [0, 0, 1, 1], [], []>} : vector<8x20xbf16>, vector<20x50xbf16>, vector<8x50xf32> -> vector<8x50xf32>
      %218 = arith.addf %211, %217 : vector<8x50xf32>
      %c0_i32_133 = arith.constant 0 : i32
      %219 = arith.addi %210, %c0_i32_133 : i32
      %c0_134 = arith.constant 0 : index
      %220 = arith.index_cast %219 : i32 to index
      %c1_135 = arith.constant 1 : index
      %c0_136 = arith.constant 0 : index
      %221 = vector.load %arg1[%c0_134, %220, %c1_135, %c0_136] : memref<1x12x12x20xbf16, #tpu.memory_space<vmem>>, vector<1x1x8x20xbf16>
      %222 = vector.shape_cast %221 : vector<1x1x8x20xbf16> to vector<1x8x20xbf16>
      %223 = vector.shape_cast %222 : vector<1x8x20xbf16> to vector<8x20xbf16>
      %cst_137 = arith.constant dense<0.000000e+00> : vector<8x50xf32>
      %224 = tpu.matmul %223, %3, %cst_137 {dimension_numbers = #tpu.dot_dimension_numbers<[1], [0], [0], [1], [0, 0, 1, 1], [], []>} : vector<8x20xbf16>, vector<20x50xbf16>, vector<8x50xf32> -> vector<8x50xf32>
      %225 = arith.addf %218, %224 : vector<8x50xf32>
      %c0_i32_138 = arith.constant 0 : i32
      %226 = arith.addi %210, %c0_i32_138 : i32
      %c0_139 = arith.constant 0 : index
      %227 = arith.index_cast %226 : i32 to index
      %c2_140 = arith.constant 2 : index
      %c0_141 = arith.constant 0 : index
      %228 = vector.load %arg1[%c0_139, %227, %c2_140, %c0_141] : memref<1x12x12x20xbf16, #tpu.memory_space<vmem>>, vector<1x1x8x20xbf16>
      %229 = vector.shape_cast %228 : vector<1x1x8x20xbf16> to vector<1x8x20xbf16>
      %230 = vector.shape_cast %229 : vector<1x8x20xbf16> to vector<8x20xbf16>
      %cst_142 = arith.constant dense<0.000000e+00> : vector<8x50xf32>
      %231 = tpu.matmul %230, %4, %cst_142 {dimension_numbers = #tpu.dot_dimension_numbers<[1], [0], [0], [1], [0, 0, 1, 1], [], []>} : vector<8x20xbf16>, vector<20x50xbf16>, vector<8x50xf32> -> vector<8x50xf32>
      %232 = arith.addf %225, %231 : vector<8x50xf32>
      %c0_i32_143 = arith.constant 0 : i32
      %233 = arith.addi %210, %c0_i32_143 : i32
      %c0_144 = arith.constant 0 : index
      %234 = arith.index_cast %233 : i32 to index
      %c3_145 = arith.constant 3 : index
      %c0_146 = arith.constant 0 : index
      %235 = vector.load %arg1[%c0_144, %234, %c3_145, %c0_146] : memref<1x12x12x20xbf16, #tpu.memory_space<vmem>>, vector<1x1x8x20xbf16>
      %236 = vector.shape_cast %235 : vector<1x1x8x20xbf16> to vector<1x8x20xbf16>
      %237 = vector.shape_cast %236 : vector<1x8x20xbf16> to vector<8x20xbf16>
      %cst_147 = arith.constant dense<0.000000e+00> : vector<8x50xf32>
      %238 = tpu.matmul %237, %5, %cst_147 {dimension_numbers = #tpu.dot_dimension_numbers<[1], [0], [0], [1], [0, 0, 1, 1], [], []>} : vector<8x20xbf16>, vector<20x50xbf16>, vector<8x50xf32> -> vector<8x50xf32>
      %239 = arith.addf %232, %238 : vector<8x50xf32>
      %c0_i32_148 = arith.constant 0 : i32
      %240 = arith.addi %210, %c0_i32_148 : i32
      %c0_149 = arith.constant 0 : index
      %241 = arith.index_cast %240 : i32 to index
      %c4_150 = arith.constant 4 : index
      %c0_151 = arith.constant 0 : index
      %242 = vector.load %arg1[%c0_149, %241, %c4_150, %c0_151] : memref<1x12x12x20xbf16, #tpu.memory_space<vmem>>, vector<1x1x8x20xbf16>
      %243 = vector.shape_cast %242 : vector<1x1x8x20xbf16> to vector<1x8x20xbf16>
      %244 = vector.shape_cast %243 : vector<1x8x20xbf16> to vector<8x20xbf16>
      %cst_152 = arith.constant dense<0.000000e+00> : vector<8x50xf32>
      %245 = tpu.matmul %244, %6, %cst_152 {dimension_numbers = #tpu.dot_dimension_numbers<[1], [0], [0], [1], [0, 0, 1, 1], [], []>} : vector<8x20xbf16>, vector<20x50xbf16>, vector<8x50xf32> -> vector<8x50xf32>
      %246 = arith.addf %239, %245 : vector<8x50xf32>
      %c1_i32_153 = arith.constant 1 : i32
      %247 = arith.addi %210, %c1_i32_153 : i32
      %c0_154 = arith.constant 0 : index
      %248 = arith.index_cast %247 : i32 to index
      %c0_155 = arith.constant 0 : index
      %c0_156 = arith.constant 0 : index
      %249 = vector.load %arg1[%c0_154, %248, %c0_155, %c0_156] : memref<1x12x12x20xbf16, #tpu.memory_space<vmem>>, vector<1x1x8x20xbf16>
      %250 = vector.shape_cast %249 : vector<1x1x8x20xbf16> to vector<1x8x20xbf16>
      %251 = vector.shape_cast %250 : vector<1x8x20xbf16> to vector<8x20xbf16>
      %cst_157 = arith.constant dense<0.000000e+00> : vector<8x50xf32>
      %252 = tpu.matmul %251, %7, %cst_157 {dimension_numbers = #tpu.dot_dimension_numbers<[1], [0], [0], [1], [0, 0, 1, 1], [], []>} : vector<8x20xbf16>, vector<20x50xbf16>, vector<8x50xf32> -> vector<8x50xf32>
      %253 = arith.addf %246, %252 : vector<8x50xf32>
      %c1_i32_158 = arith.constant 1 : i32
      %254 = arith.addi %210, %c1_i32_158 : i32
      %c0_159 = arith.constant 0 : index
      %255 = arith.index_cast %254 : i32 to index
      %c1_160 = arith.constant 1 : index
      %c0_161 = arith.constant 0 : index
      %256 = vector.load %arg1[%c0_159, %255, %c1_160, %c0_161] : memref<1x12x12x20xbf16, #tpu.memory_space<vmem>>, vector<1x1x8x20xbf16>
      %257 = vector.shape_cast %256 : vector<1x1x8x20xbf16> to vector<1x8x20xbf16>
      %258 = vector.shape_cast %257 : vector<1x8x20xbf16> to vector<8x20xbf16>
      %cst_162 = arith.constant dense<0.000000e+00> : vector<8x50xf32>
      %259 = tpu.matmul %258, %8, %cst_162 {dimension_numbers = #tpu.dot_dimension_numbers<[1], [0], [0], [1], [0, 0, 1, 1], [], []>} : vector<8x20xbf16>, vector<20x50xbf16>, vector<8x50xf32> -> vector<8x50xf32>
      %260 = arith.addf %253, %259 : vector<8x50xf32>
      %c1_i32_163 = arith.constant 1 : i32
      %261 = arith.addi %210, %c1_i32_163 : i32
      %c0_164 = arith.constant 0 : index
      %262 = arith.index_cast %261 : i32 to index
      %c2_165 = arith.constant 2 : index
      %c0_166 = arith.constant 0 : index
      %263 = vector.load %arg1[%c0_164, %262, %c2_165, %c0_166] : memref<1x12x12x20xbf16, #tpu.memory_space<vmem>>, vector<1x1x8x20xbf16>
      %264 = vector.shape_cast %263 : vector<1x1x8x20xbf16> to vector<1x8x20xbf16>
      %265 = vector.shape_cast %264 : vector<1x8x20xbf16> to vector<8x20xbf16>
      %cst_167 = arith.constant dense<0.000000e+00> : vector<8x50xf32>
      %266 = tpu.matmul %265, %9, %cst_167 {dimension_numbers = #tpu.dot_dimension_numbers<[1], [0], [0], [1], [0, 0, 1, 1], [], []>} : vector<8x20xbf16>, vector<20x50xbf16>, vector<8x50xf32> -> vector<8x50xf32>
      %267 = arith.addf %260, %266 : vector<8x50xf32>
      %c1_i32_168 = arith.constant 1 : i32
      %268 = arith.addi %210, %c1_i32_168 : i32
      %c0_169 = arith.constant 0 : index
      %269 = arith.index_cast %268 : i32 to index
      %c3_170 = arith.constant 3 : index
      %c0_171 = arith.constant 0 : index
      %270 = vector.load %arg1[%c0_169, %269, %c3_170, %c0_171] : memref<1x12x12x20xbf16, #tpu.memory_space<vmem>>, vector<1x1x8x20xbf16>
      %271 = vector.shape_cast %270 : vector<1x1x8x20xbf16> to vector<1x8x20xbf16>
      %272 = vector.shape_cast %271 : vector<1x8x20xbf16> to vector<8x20xbf16>
      %cst_172 = arith.constant dense<0.000000e+00> : vector<8x50xf32>
      %273 = tpu.matmul %272, %10, %cst_172 {dimension_numbers = #tpu.dot_dimension_numbers<[1], [0], [0], [1], [0, 0, 1, 1], [], []>} : vector<8x20xbf16>, vector<20x50xbf16>, vector<8x50xf32> -> vector<8x50xf32>
      %274 = arith.addf %267, %273 : vector<8x50xf32>
      %c1_i32_173 = arith.constant 1 : i32
      %275 = arith.addi %210, %c1_i32_173 : i32
      %c0_174 = arith.constant 0 : index
      %276 = arith.index_cast %275 : i32 to index
      %c4_175 = arith.constant 4 : index
      %c0_176 = arith.constant 0 : index
      %277 = vector.load %arg1[%c0_174, %276, %c4_175, %c0_176] : memref<1x12x12x20xbf16, #tpu.memory_space<vmem>>, vector<1x1x8x20xbf16>
      %278 = vector.shape_cast %277 : vector<1x1x8x20xbf16> to vector<1x8x20xbf16>
      %279 = vector.shape_cast %278 : vector<1x8x20xbf16> to vector<8x20xbf16>
      %cst_177 = arith.constant dense<0.000000e+00> : vector<8x50xf32>
      %280 = tpu.matmul %279, %11, %cst_177 {dimension_numbers = #tpu.dot_dimension_numbers<[1], [0], [0], [1], [0, 0, 1, 1], [], []>} : vector<8x20xbf16>, vector<20x50xbf16>, vector<8x50xf32> -> vector<8x50xf32>
      %281 = arith.addf %274, %280 : vector<8x50xf32>
      %c2_i32_178 = arith.constant 2 : i32
      %282 = arith.addi %210, %c2_i32_178 : i32
      %c0_179 = arith.constant 0 : index
      %283 = arith.index_cast %282 : i32 to index
      %c0_180 = arith.constant 0 : index
      %c0_181 = arith.constant 0 : index
      %284 = vector.load %arg1[%c0_179, %283, %c0_180, %c0_181] : memref<1x12x12x20xbf16, #tpu.memory_space<vmem>>, vector<1x1x8x20xbf16>
      %285 = vector.shape_cast %284 : vector<1x1x8x20xbf16> to vector<1x8x20xbf16>
      %286 = vector.shape_cast %285 : vector<1x8x20xbf16> to vector<8x20xbf16>
      %cst_182 = arith.constant dense<0.000000e+00> : vector<8x50xf32>
      %287 = tpu.matmul %286, %12, %cst_182 {dimension_numbers = #tpu.dot_dimension_numbers<[1], [0], [0], [1], [0, 0, 1, 1], [], []>} : vector<8x20xbf16>, vector<20x50xbf16>, vector<8x50xf32> -> vector<8x50xf32>
      %288 = arith.addf %281, %287 : vector<8x50xf32>
      %c2_i32_183 = arith.constant 2 : i32
      %289 = arith.addi %210, %c2_i32_183 : i32
      %c0_184 = arith.constant 0 : index
      %290 = arith.index_cast %289 : i32 to index
      %c1_185 = arith.constant 1 : index
      %c0_186 = arith.constant 0 : index
      %291 = vector.load %arg1[%c0_184, %290, %c1_185, %c0_186] : memref<1x12x12x20xbf16, #tpu.memory_space<vmem>>, vector<1x1x8x20xbf16>
      %292 = vector.shape_cast %291 : vector<1x1x8x20xbf16> to vector<1x8x20xbf16>
      %293 = vector.shape_cast %292 : vector<1x8x20xbf16> to vector<8x20xbf16>
      %cst_187 = arith.constant dense<0.000000e+00> : vector<8x50xf32>
      %294 = tpu.matmul %293, %13, %cst_187 {dimension_numbers = #tpu.dot_dimension_numbers<[1], [0], [0], [1], [0, 0, 1, 1], [], []>} : vector<8x20xbf16>, vector<20x50xbf16>, vector<8x50xf32> -> vector<8x50xf32>
      %295 = arith.addf %288, %294 : vector<8x50xf32>
      %c2_i32_188 = arith.constant 2 : i32
      %296 = arith.addi %210, %c2_i32_188 : i32
      %c0_189 = arith.constant 0 : index
      %297 = arith.index_cast %296 : i32 to index
      %c2_190 = arith.constant 2 : index
      %c0_191 = arith.constant 0 : index
      %298 = vector.load %arg1[%c0_189, %297, %c2_190, %c0_191] : memref<1x12x12x20xbf16, #tpu.memory_space<vmem>>, vector<1x1x8x20xbf16>
      %299 = vector.shape_cast %298 : vector<1x1x8x20xbf16> to vector<1x8x20xbf16>
      %300 = vector.shape_cast %299 : vector<1x8x20xbf16> to vector<8x20xbf16>
      %cst_192 = arith.constant dense<0.000000e+00> : vector<8x50xf32>
      %301 = tpu.matmul %300, %14, %cst_192 {dimension_numbers = #tpu.dot_dimension_numbers<[1], [0], [0], [1], [0, 0, 1, 1], [], []>} : vector<8x20xbf16>, vector<20x50xbf16>, vector<8x50xf32> -> vector<8x50xf32>
      %302 = arith.addf %295, %301 : vector<8x50xf32>
      %c2_i32_193 = arith.constant 2 : i32
      %303 = arith.addi %210, %c2_i32_193 : i32
      %c0_194 = arith.constant 0 : index
      %304 = arith.index_cast %303 : i32 to index
      %c3_195 = arith.constant 3 : index
      %c0_196 = arith.constant 0 : index
      %305 = vector.load %arg1[%c0_194, %304, %c3_195, %c0_196] : memref<1x12x12x20xbf16, #tpu.memory_space<vmem>>, vector<1x1x8x20xbf16>
      %306 = vector.shape_cast %305 : vector<1x1x8x20xbf16> to vector<1x8x20xbf16>
      %307 = vector.shape_cast %306 : vector<1x8x20xbf16> to vector<8x20xbf16>
      %cst_197 = arith.constant dense<0.000000e+00> : vector<8x50xf32>
      %308 = tpu.matmul %307, %15, %cst_197 {dimension_numbers = #tpu.dot_dimension_numbers<[1], [0], [0], [1], [0, 0, 1, 1], [], []>} : vector<8x20xbf16>, vector<20x50xbf16>, vector<8x50xf32> -> vector<8x50xf32>
      %309 = arith.addf %302, %308 : vector<8x50xf32>
      %c2_i32_198 = arith.constant 2 : i32
      %310 = arith.addi %210, %c2_i32_198 : i32
      %c0_199 = arith.constant 0 : index
      %311 = arith.index_cast %310 : i32 to index
      %c4_200 = arith.constant 4 : index
      %c0_201 = arith.constant 0 : index
      %312 = vector.load %arg1[%c0_199, %311, %c4_200, %c0_201] : memref<1x12x12x20xbf16, #tpu.memory_space<vmem>>, vector<1x1x8x20xbf16>
      %313 = vector.shape_cast %312 : vector<1x1x8x20xbf16> to vector<1x8x20xbf16>
      %314 = vector.shape_cast %313 : vector<1x8x20xbf16> to vector<8x20xbf16>
      %cst_202 = arith.constant dense<0.000000e+00> : vector<8x50xf32>
      %315 = tpu.matmul %314, %16, %cst_202 {dimension_numbers = #tpu.dot_dimension_numbers<[1], [0], [0], [1], [0, 0, 1, 1], [], []>} : vector<8x20xbf16>, vector<20x50xbf16>, vector<8x50xf32> -> vector<8x50xf32>
      %316 = arith.addf %309, %315 : vector<8x50xf32>
      %c3_i32_203 = arith.constant 3 : i32
      %317 = arith.addi %210, %c3_i32_203 : i32
      %c0_204 = arith.constant 0 : index
      %318 = arith.index_cast %317 : i32 to index
      %c0_205 = arith.constant 0 : index
      %c0_206 = arith.constant 0 : index
      %319 = vector.load %arg1[%c0_204, %318, %c0_205, %c0_206] : memref<1x12x12x20xbf16, #tpu.memory_space<vmem>>, vector<1x1x8x20xbf16>
      %320 = vector.shape_cast %319 : vector<1x1x8x20xbf16> to vector<1x8x20xbf16>
      %321 = vector.shape_cast %320 : vector<1x8x20xbf16> to vector<8x20xbf16>
      %cst_207 = arith.constant dense<0.000000e+00> : vector<8x50xf32>
      %322 = tpu.matmul %321, %17, %cst_207 {dimension_numbers = #tpu.dot_dimension_numbers<[1], [0], [0], [1], [0, 0, 1, 1], [], []>} : vector<8x20xbf16>, vector<20x50xbf16>, vector<8x50xf32> -> vector<8x50xf32>
      %323 = arith.addf %316, %322 : vector<8x50xf32>
      %c3_i32_208 = arith.constant 3 : i32
      %324 = arith.addi %210, %c3_i32_208 : i32
      %c0_209 = arith.constant 0 : index
      %325 = arith.index_cast %324 : i32 to index
      %c1_210 = arith.constant 1 : index
      %c0_211 = arith.constant 0 : index
      %326 = vector.load %arg1[%c0_209, %325, %c1_210, %c0_211] : memref<1x12x12x20xbf16, #tpu.memory_space<vmem>>, vector<1x1x8x20xbf16>
      %327 = vector.shape_cast %326 : vector<1x1x8x20xbf16> to vector<1x8x20xbf16>
      %328 = vector.shape_cast %327 : vector<1x8x20xbf16> to vector<8x20xbf16>
      %cst_212 = arith.constant dense<0.000000e+00> : vector<8x50xf32>
      %329 = tpu.matmul %328, %18, %cst_212 {dimension_numbers = #tpu.dot_dimension_numbers<[1], [0], [0], [1], [0, 0, 1, 1], [], []>} : vector<8x20xbf16>, vector<20x50xbf16>, vector<8x50xf32> -> vector<8x50xf32>
      %330 = arith.addf %323, %329 : vector<8x50xf32>
      %c3_i32_213 = arith.constant 3 : i32
      %331 = arith.addi %210, %c3_i32_213 : i32
      %c0_214 = arith.constant 0 : index
      %332 = arith.index_cast %331 : i32 to index
      %c2_215 = arith.constant 2 : index
      %c0_216 = arith.constant 0 : index
      %333 = vector.load %arg1[%c0_214, %332, %c2_215, %c0_216] : memref<1x12x12x20xbf16, #tpu.memory_space<vmem>>, vector<1x1x8x20xbf16>
      %334 = vector.shape_cast %333 : vector<1x1x8x20xbf16> to vector<1x8x20xbf16>
      %335 = vector.shape_cast %334 : vector<1x8x20xbf16> to vector<8x20xbf16>
      %cst_217 = arith.constant dense<0.000000e+00> : vector<8x50xf32>
      %336 = tpu.matmul %335, %19, %cst_217 {dimension_numbers = #tpu.dot_dimension_numbers<[1], [0], [0], [1], [0, 0, 1, 1], [], []>} : vector<8x20xbf16>, vector<20x50xbf16>, vector<8x50xf32> -> vector<8x50xf32>
      %337 = arith.addf %330, %336 : vector<8x50xf32>
      %c3_i32_218 = arith.constant 3 : i32
      %338 = arith.addi %210, %c3_i32_218 : i32
      %c0_219 = arith.constant 0 : index
      %339 = arith.index_cast %338 : i32 to index
      %c3_220 = arith.constant 3 : index
      %c0_221 = arith.constant 0 : index
      %340 = vector.load %arg1[%c0_219, %339, %c3_220, %c0_221] : memref<1x12x12x20xbf16, #tpu.memory_space<vmem>>, vector<1x1x8x20xbf16>
      %341 = vector.shape_cast %340 : vector<1x1x8x20xbf16> to vector<1x8x20xbf16>
      %342 = vector.shape_cast %341 : vector<1x8x20xbf16> to vector<8x20xbf16>
      %cst_222 = arith.constant dense<0.000000e+00> : vector<8x50xf32>
      %343 = tpu.matmul %342, %20, %cst_222 {dimension_numbers = #tpu.dot_dimension_numbers<[1], [0], [0], [1], [0, 0, 1, 1], [], []>} : vector<8x20xbf16>, vector<20x50xbf16>, vector<8x50xf32> -> vector<8x50xf32>
      %344 = arith.addf %337, %343 : vector<8x50xf32>
      %c3_i32_223 = arith.constant 3 : i32
      %345 = arith.addi %210, %c3_i32_223 : i32
      %c0_224 = arith.constant 0 : index
      %346 = arith.index_cast %345 : i32 to index
      %c4_225 = arith.constant 4 : index
      %c0_226 = arith.constant 0 : index
      %347 = vector.load %arg1[%c0_224, %346, %c4_225, %c0_226] : memref<1x12x12x20xbf16, #tpu.memory_space<vmem>>, vector<1x1x8x20xbf16>
      %348 = vector.shape_cast %347 : vector<1x1x8x20xbf16> to vector<1x8x20xbf16>
      %349 = vector.shape_cast %348 : vector<1x8x20xbf16> to vector<8x20xbf16>
      %cst_227 = arith.constant dense<0.000000e+00> : vector<8x50xf32>
      %350 = tpu.matmul %349, %21, %cst_227 {dimension_numbers = #tpu.dot_dimension_numbers<[1], [0], [0], [1], [0, 0, 1, 1], [], []>} : vector<8x20xbf16>, vector<20x50xbf16>, vector<8x50xf32> -> vector<8x50xf32>
      %351 = arith.addf %344, %350 : vector<8x50xf32>
      %c4_i32_228 = arith.constant 4 : i32
      %352 = arith.addi %210, %c4_i32_228 : i32
      %c0_229 = arith.constant 0 : index
      %353 = arith.index_cast %352 : i32 to index
      %c0_230 = arith.constant 0 : index
      %c0_231 = arith.constant 0 : index
      %354 = vector.load %arg1[%c0_229, %353, %c0_230, %c0_231] : memref<1x12x12x20xbf16, #tpu.memory_space<vmem>>, vector<1x1x8x20xbf16>
      %355 = vector.shape_cast %354 : vector<1x1x8x20xbf16> to vector<1x8x20xbf16>
      %356 = vector.shape_cast %355 : vector<1x8x20xbf16> to vector<8x20xbf16>
      %cst_232 = arith.constant dense<0.000000e+00> : vector<8x50xf32>
      %357 = tpu.matmul %356, %22, %cst_232 {dimension_numbers = #tpu.dot_dimension_numbers<[1], [0], [0], [1], [0, 0, 1, 1], [], []>} : vector<8x20xbf16>, vector<20x50xbf16>, vector<8x50xf32> -> vector<8x50xf32>
      %358 = arith.addf %351, %357 : vector<8x50xf32>
      %c4_i32_233 = arith.constant 4 : i32
      %359 = arith.addi %210, %c4_i32_233 : i32
      %c0_234 = arith.constant 0 : index
      %360 = arith.index_cast %359 : i32 to index
      %c1_235 = arith.constant 1 : index
      %c0_236 = arith.constant 0 : index
      %361 = vector.load %arg1[%c0_234, %360, %c1_235, %c0_236] : memref<1x12x12x20xbf16, #tpu.memory_space<vmem>>, vector<1x1x8x20xbf16>
      %362 = vector.shape_cast %361 : vector<1x1x8x20xbf16> to vector<1x8x20xbf16>
      %363 = vector.shape_cast %362 : vector<1x8x20xbf16> to vector<8x20xbf16>
      %cst_237 = arith.constant dense<0.000000e+00> : vector<8x50xf32>
      %364 = tpu.matmul %363, %23, %cst_237 {dimension_numbers = #tpu.dot_dimension_numbers<[1], [0], [0], [1], [0, 0, 1, 1], [], []>} : vector<8x20xbf16>, vector<20x50xbf16>, vector<8x50xf32> -> vector<8x50xf32>
      %365 = arith.addf %358, %364 : vector<8x50xf32>
      %c4_i32_238 = arith.constant 4 : i32
      %366 = arith.addi %210, %c4_i32_238 : i32
      %c0_239 = arith.constant 0 : index
      %367 = arith.index_cast %366 : i32 to index
      %c2_240 = arith.constant 2 : index
      %c0_241 = arith.constant 0 : index
      %368 = vector.load %arg1[%c0_239, %367, %c2_240, %c0_241] : memref<1x12x12x20xbf16, #tpu.memory_space<vmem>>, vector<1x1x8x20xbf16>
      %369 = vector.shape_cast %368 : vector<1x1x8x20xbf16> to vector<1x8x20xbf16>
      %370 = vector.shape_cast %369 : vector<1x8x20xbf16> to vector<8x20xbf16>
      %cst_242 = arith.constant dense<0.000000e+00> : vector<8x50xf32>
      %371 = tpu.matmul %370, %24, %cst_242 {dimension_numbers = #tpu.dot_dimension_numbers<[1], [0], [0], [1], [0, 0, 1, 1], [], []>} : vector<8x20xbf16>, vector<20x50xbf16>, vector<8x50xf32> -> vector<8x50xf32>
      %372 = arith.addf %365, %371 : vector<8x50xf32>
      %c4_i32_243 = arith.constant 4 : i32
      %373 = arith.addi %210, %c4_i32_243 : i32
      %c0_244 = arith.constant 0 : index
      %374 = arith.index_cast %373 : i32 to index
      %c3_245 = arith.constant 3 : index
      %c0_246 = arith.constant 0 : index
      %375 = vector.load %arg1[%c0_244, %374, %c3_245, %c0_246] : memref<1x12x12x20xbf16, #tpu.memory_space<vmem>>, vector<1x1x8x20xbf16>
      %376 = vector.shape_cast %375 : vector<1x1x8x20xbf16> to vector<1x8x20xbf16>
      %377 = vector.shape_cast %376 : vector<1x8x20xbf16> to vector<8x20xbf16>
      %cst_247 = arith.constant dense<0.000000e+00> : vector<8x50xf32>
      %378 = tpu.matmul %377, %25, %cst_247 {dimension_numbers = #tpu.dot_dimension_numbers<[1], [0], [0], [1], [0, 0, 1, 1], [], []>} : vector<8x20xbf16>, vector<20x50xbf16>, vector<8x50xf32> -> vector<8x50xf32>
      %379 = arith.addf %372, %378 : vector<8x50xf32>
      %c4_i32_248 = arith.constant 4 : i32
      %380 = arith.addi %210, %c4_i32_248 : i32
      %c0_249 = arith.constant 0 : index
      %381 = arith.index_cast %380 : i32 to index
      %c4_250 = arith.constant 4 : index
      %c0_251 = arith.constant 0 : index
      %382 = vector.load %arg1[%c0_249, %381, %c4_250, %c0_251] : memref<1x12x12x20xbf16, #tpu.memory_space<vmem>>, vector<1x1x8x20xbf16>
      %383 = vector.shape_cast %382 : vector<1x1x8x20xbf16> to vector<1x8x20xbf16>
      %384 = vector.shape_cast %383 : vector<1x8x20xbf16> to vector<8x20xbf16>
      %cst_252 = arith.constant dense<0.000000e+00> : vector<8x50xf32>
      %385 = tpu.matmul %384, %26, %cst_252 {dimension_numbers = #tpu.dot_dimension_numbers<[1], [0], [0], [1], [0, 0, 1, 1], [], []>} : vector<8x20xbf16>, vector<20x50xbf16>, vector<8x50xf32> -> vector<8x50xf32>
      %386 = arith.addf %379, %385 : vector<8x50xf32>
      %387 = vector.broadcast %1 : vector<1x50xf32> to vector<8x50xf32>
      %388 = arith.addf %386, %387 : vector<8x50xf32>
      %cst_253 = arith.constant 0.000000e+00 : f32
      %389 = vector.broadcast %cst_253 : f32 to vector<8x50xf32>
      %390 = arith.maximumf %388, %389 : vector<8x50xf32>
      %391 = arith.maximumf %208, %390 : vector<8x50xf32>
      %392 = vector.extract_strided_slice %391 {offsets = [0, 0], sizes = [1, 50], strides = [1, 1]} : vector<8x50xf32> to vector<1x50xf32>
      %393 = vector.extract_strided_slice %391 {offsets = [1, 0], sizes = [1, 50], strides = [1, 1]} : vector<8x50xf32> to vector<1x50xf32>
      %394 = arith.maximumf %392, %393 : vector<1x50xf32>
      %395 = vector.extract_strided_slice %391 {offsets = [2, 0], sizes = [1, 50], strides = [1, 1]} : vector<8x50xf32> to vector<1x50xf32>
      %396 = vector.extract_strided_slice %391 {offsets = [3, 0], sizes = [1, 50], strides = [1, 1]} : vector<8x50xf32> to vector<1x50xf32>
      %397 = arith.maximumf %395, %396 : vector<1x50xf32>
      %398 = vector.extract_strided_slice %391 {offsets = [4, 0], sizes = [1, 50], strides = [1, 1]} : vector<8x50xf32> to vector<1x50xf32>
      %399 = vector.extract_strided_slice %391 {offsets = [5, 0], sizes = [1, 50], strides = [1, 1]} : vector<8x50xf32> to vector<1x50xf32>
      %400 = arith.maximumf %398, %399 : vector<1x50xf32>
      %401 = vector.extract_strided_slice %391 {offsets = [6, 0], sizes = [1, 50], strides = [1, 1]} : vector<8x50xf32> to vector<1x50xf32>
      %402 = vector.extract_strided_slice %391 {offsets = [7, 0], sizes = [1, 50], strides = [1, 1]} : vector<8x50xf32> to vector<1x50xf32>
      %403 = arith.maximumf %401, %402 : vector<1x50xf32>
      %404 = tpu.concatenate %394, %397, %400, %403 in 0 : vector<1x50xf32>, vector<1x50xf32>, vector<1x50xf32>, vector<1x50xf32> -> vector<4x50xf32>
      %405 = vector.shape_cast %404 : vector<4x50xf32> to vector<1x4x50xf32>
      %406 = arith.truncf %405 : vector<1x4x50xf32> to vector<1x4x50xbf16>
      %c0_254 = arith.constant 0 : index
      %407 = arith.index_cast %arg5 : i32 to index
      %c0_255 = arith.constant 0 : index
      %c0_256 = arith.constant 0 : index
      %408 = vector.load %arg4[%c0_254, %407, %c0_255, %c0_256] : memref<1x4x4x50xbf16, #tpu.memory_space<vmem>>, vector<1x1x4x50xbf16>
      %409 = vector.shape_cast %408 : vector<1x1x4x50xbf16> to vector<1x4x50xbf16>
      %410 = vector.shape_cast %406 : vector<1x4x50xbf16> to vector<1x1x4x50xbf16>
      tpu.vector_store %arg4[%c0_254, %407, %c0_255, %c0_256], %410 {strides = array<i32>} : memref<1x4x4x50xbf16, #tpu.memory_space<vmem>>, vector<1x1x4x50xbf16>,
    }
    %c4_i32_3 = arith.constant 4 : i32
    return
  }
  func.func @transform_0(%arg0: i32) -> (i32, i32, i32, i32) {
    %c0_i32 = arith.constant 0 : i32
    %c0_i32_0 = arith.constant 0 : i32
    %c0_i32_1 = arith.constant 0 : i32
    %c0_i32_2 = arith.constant 0 : i32
    return %arg0, %c0_i32, %c0_i32_0, %c0_i32_1 : i32, i32, i32, i32
  }
  func.func @transform_1(%arg0: i32) -> (i32, i32) {
    %c0_i32 = arith.constant 0 : i32
    %c0_i32_0 = arith.constant 0 : i32
    %c0_i32_1 = arith.constant 0 : i32
    return %c0_i32, %c0_i32_0 : i32, i32
  }
  func.func @transform_2(%arg0: i32) -> (i32, i32) {
    %c0_i32 = arith.constant 0 : i32
    %c0_i32_0 = arith.constant 0 : i32
    %c0_i32_1 = arith.constant 0 : i32
    return %c0_i32, %c0_i32_0 : i32, i32
  }
  func.func @transform_3(%arg0: i32) -> (i32, i32, i32, i32) {
    %c0_i32 = arith.constant 0 : i32
    %c0_i32_0 = arith.constant 0 : i32
    %c0_i32_1 = arith.constant 0 : i32
    %c0_i32_2 = arith.constant 0 : i32
    return %arg0, %c0_i32, %c0_i32_0, %c0_i32_1 : i32, i32, i32, i32
  }
}

module attributes {stable_mosaic.version = 11 : i64} {
  func.func @_mlp_kernel(%arg0: i32, %arg1: memref<2x800xbf16, #tpu.memory_space<vmem>>, %arg2: memref<800x500xbf16, #tpu.memory_space<vmem>>, %arg3: memref<1x500xf32, #tpu.memory_space<vmem>>, %arg4: memref<500x10xbf16, #tpu.memory_space<vmem>>, %arg5: memref<1x10xf32, #tpu.memory_space<vmem>>, %arg6: memref<2x10xf32, #tpu.memory_space<vmem>>) attributes {dimension_semantics = [#tpu.dimension_semantics<parallel>], iteration_bounds = array<i64: 1>, scalar_prefetch = 0 : i64, scratch_operands = 0 : i64, tpu.core_type = #tpu.core_type<tc>, window_params = [{transform_indices = @transform_0, window_bounds = array<i64: 2, 800>}, {pipeline_mode = #tpu.pipeline_mode<synchronous>, transform_indices = @transform_1, window_bounds = array<i64: 800, 500>}, {pipeline_mode = #tpu.pipeline_mode<synchronous>, transform_indices = @transform_2, window_bounds = array<i64: 1, 500>}, {pipeline_mode = #tpu.pipeline_mode<synchronous>, transform_indices = @transform_3, window_bounds = array<i64: 500, 10>}, {pipeline_mode = #tpu.pipeline_mode<synchronous>, transform_indices = @transform_4, window_bounds = array<i64: 1, 10>}, {transform_indices = @transform_5, window_bounds = array<i64: 2, 10>}]} {
    %c0 = arith.constant 0 : index
    %c0_0 = arith.constant 0 : index
    %0 = vector.load %arg1[%c0, %c0_0] : memref<2x800xbf16, #tpu.memory_space<vmem>>, vector<2x800xbf16>
    %c0_1 = arith.constant 0 : index
    %c0_2 = arith.constant 0 : index
    %1 = vector.load %arg2[%c0_1, %c0_2] : memref<800x500xbf16, #tpu.memory_space<vmem>>, vector<800x500xbf16>
    %cst = arith.constant dense<0.000000e+00> : vector<2x500xf32>
    %2 = tpu.matmul %0, %1, %cst {dimension_numbers = #tpu.dot_dimension_numbers<[1], [0], [0], [1], [0, 0, 1, 1], [], []>} : vector<2x800xbf16>, vector<800x500xbf16>, vector<2x500xf32> -> vector<2x500xf32>
    %c0_3 = arith.constant 0 : index
    %c0_4 = arith.constant 0 : index
    %3 = vector.load %arg3[%c0_3, %c0_4] : memref<1x500xf32, #tpu.memory_space<vmem>>, vector<1x500xf32>
    %4 = vector.broadcast %3 : vector<1x500xf32> to vector<2x500xf32>
    %5 = arith.addf %2, %4 : vector<2x500xf32>
    %cst_5 = arith.constant 0.000000e+00 : f32
    %6 = vector.broadcast %cst_5 : f32 to vector<2x500xf32>
    %7 = arith.maximumf %5, %6 : vector<2x500xf32>
    %8 = arith.truncf %7 : vector<2x500xf32> to vector<2x500xbf16>
    %c0_6 = arith.constant 0 : index
    %c0_7 = arith.constant 0 : index
    %9 = vector.load %arg4[%c0_6, %c0_7] : memref<500x10xbf16, #tpu.memory_space<vmem>>, vector<500x10xbf16>
    %cst_8 = arith.constant dense<0.000000e+00> : vector<2x10xf32>
    %10 = tpu.matmul %8, %9, %cst_8 {dimension_numbers = #tpu.dot_dimension_numbers<[1], [0], [0], [1], [0, 0, 1, 1], [], []>} : vector<2x500xbf16>, vector<500x10xbf16>, vector<2x10xf32> -> vector<2x10xf32>
    %c0_9 = arith.constant 0 : index
    %c0_10 = arith.constant 0 : index
    %11 = vector.load %arg5[%c0_9, %c0_10] : memref<1x10xf32, #tpu.memory_space<vmem>>, vector<1x10xf32>
    %12 = vector.broadcast %11 : vector<1x10xf32> to vector<2x10xf32>
    %13 = arith.addf %10, %12 : vector<2x10xf32>
    %c0_11 = arith.constant 0 : index
    %c0_12 = arith.constant 0 : index
    %14 = vector.load %arg6[%c0_11, %c0_12] : memref<2x10xf32, #tpu.memory_space<vmem>>, vector<2x10xf32>
    tpu.vector_store %arg6[%c0_11, %c0_12], %13 {strides = array<i32>} : memref<2x10xf32, #tpu.memory_space<vmem>>, vector<2x10xf32>,
    return
  }
  func.func @transform_0(%arg0: i32) -> (i32, i32) {
    %c0_i32 = arith.constant 0 : i32
    %c0_i32_0 = arith.constant 0 : i32
    return %arg0, %c0_i32 : i32, i32
  }
  func.func @transform_1(%arg0: i32) -> (i32, i32) {
    %c0_i32 = arith.constant 0 : i32
    %c0_i32_0 = arith.constant 0 : i32
    %c0_i32_1 = arith.constant 0 : i32
    return %c0_i32, %c0_i32_0 : i32, i32
  }
  func.func @transform_2(%arg0: i32) -> (i32, i32) {
    %c0_i32 = arith.constant 0 : i32
    %c0_i32_0 = arith.constant 0 : i32
    %c0_i32_1 = arith.constant 0 : i32
    return %c0_i32, %c0_i32_0 : i32, i32
  }
  func.func @transform_3(%arg0: i32) -> (i32, i32) {
    %c0_i32 = arith.constant 0 : i32
    %c0_i32_0 = arith.constant 0 : i32
    %c0_i32_1 = arith.constant 0 : i32
    return %c0_i32, %c0_i32_0 : i32, i32
  }
  func.func @transform_4(%arg0: i32) -> (i32, i32) {
    %c0_i32 = arith.constant 0 : i32
    %c0_i32_0 = arith.constant 0 : i32
    %c0_i32_1 = arith.constant 0 : i32
    return %c0_i32, %c0_i32_0 : i32, i32
  }
  func.func @transform_5(%arg0: i32) -> (i32, i32) {
    %c0_i32 = arith.constant 0 : i32
    %c0_i32_0 = arith.constant 0 : i32
    return %arg0, %c0_i32 : i32, i32
  }
}

</mosaic_0001>

<bundles_post_ra>
// kernel: classify_cnn_forward.3
= control target key start
LH: loop header
LB: loop body
LE: loop exit
PB: predicated region body
PF: predicated region fallthrough
CT: control target
= control target key end

     0   :  { %s1479_s12 = smov 0   ;;  %s2007_s0 = inlined_call_operand.vmem [shape: f32[2,28,28,1], index: 0, kind: input, shape index: {}]   ;;  %s2008_s1 = inlined_call_operand.vmem [shape: f32[25,20], index: 1, kind: input, shape index: {}]   ;;  %s2009_s2 = inlined_call_operand.vmem [shape: f32[1,20], index: 2, kind: input, shape index: {}]   ;;  %s2010_s3 = inlined_call_operand.vmem [shape: bf16[2,12,12,20], index: 3, kind: output, shape index: {}]  }
   0x1 LB: > { %s1311_s13 = sadd.s32 4294967295, %s1452_s12   ;;  %p1315_p0 = scmp.ge.s32.totalorder %s1452_s12, 1  ;;  %s1452_s12 = sphi %s1479_s12, %s13_s12  }
   0x2   : > { %p137_p1 = scmp.lt.s32.totalorder %s1452_s12, 3 }
   0x4   : > { %p138_p2 = pnand %p1315_p0, %p137_p1 }
   0x5   : > { %p161_p3 = scmp.lt.s32.totalorder (!%p138_p2), %s1311_s13, 1  ;;  %v1490_v0 = vld [vmem:[%s2008_s1] sm:$0xff] (!%p138_p2)  ;;  %v1495_v1 = vld [vmem:[%s2008_s1 + $0x8] sm:$0xff] (!%p138_p2)  ;;  %v1500_v2 = vld [vmem:[%s2008_s1 + $0x10] sm:$0xff] (!%p138_p2)  ;;  %s1522_s5 = smov (!%p138_p2), 0  }
   0x6   : > { %141 = sbr.rel (%p138_p2) target bundleno = 349 (0x15d), region = 32  ;;  %2012 = vst [vmem:[#allocation2_spill] sm:$0xff] (!%p138_p2), %v1490_v0  ;;  %v1505_v3 = vld [vmem:[%s2008_s1 + $0x18] ss:$0 sm:$0xff] (!%p138_p2)  ;;  %v1510_v4 = vld [vmem:[%s2009_s2] ss:$0 sm:$0xff] (!%p138_p2) }
   0xd   : > { %s2015_s13 = smov (!%p161_p3, %s1311_s13), 1 }
   0xe   : > { %s1421_s24 = smul.u32 896, %s2015_s13 }
   0xf   : > { %s1422_s25 = smul.u32 96, %s2015_s13 }
  0x10   : > { %s1515_s28 = scalar_lea.vmem %s2007_s0, %s1421_s24 }
  0x11   : > { %s1520_s4 = scalar_lea.vmem %s2010_s3, %s1422_s25 }
  0x12 LB: >> { %v2013_v0 = vld [vmem:[#allocation2_spill] sm:$0xff]  ;;  %v1458_v5 = vmov 0   ;;  %s1412_s6 = sshll.u32 %s1456_s5, 6  ;;  %vm1196_vm0 = vcmask 1040384   ;;  %vm1198_vm1 = vcmask 1041408   ;;  %vm1200_vm2 = vcmask 1042432   ;;  %s1456_s5 = sphi %s1522_s5, %s181_s5  }
  0x13   : >> { %1441 = vset.pattern.permute.xlu1 %v1458_v5  ;;  %1440 = vset.pattern.permute.xlu0 %v1458_v5  ;;  %s1529_s7 = scalar_lea.vmem %s1515_s28, %s1412_s6  ;;  %vm1202_vm3 = vcmask 1043456   ;;  %s1420_s8 = sshll.u32 %s1456_s5, 3  ;;  %vm1204_vm4 = vcmask 1044480   ;;  %vm1206_vm5 = vcmask 1045504   ;;  %vm1208_vm6 = vcmask 1046528  }
  0x14   : >> { %v187_v6 = vld [vmem:[%s1529_s7 + $0x10] sm:$0xff]  ;;  %v185_v7 = vld [vmem:[%s1529_s7] sm:$0xff]  ;;  %v186_v9 = vld [vmem:[%s1529_s7 + $0x8] sm:$0xff]  ;;  %s1222_s9 = scalar_lea.vmem %s1520_s4, %s1420_s8  ;;  %vm1225_vm7 = vcmask 156672   ;;  %vm1223_vm8 = vcmask 158720   ;;  %s181_s5 = sadd.s32 1, %s1456_s5  }
  0x15   : >> { %200 = vperm.xlu1 %1441, %v187_v6   ;;  %190 = vperm.xlu0 %1440, %v185_v7   ;;  %v213_v8 = vld [vmem:[%s1529_s7 + $0x1] sm:$0xff]  ;;  %v215_v10 = vld [vmem:[%s1529_s7 + $0x11] sm:$0xff]  ;;  %v214_v11 = vld [vmem:[%s1529_s7 + $0x9] sm:$0xff]  ;;  %v203_v7 = vlaneseq  ;;  %p178_p4 = scmp.ge.s32.totalorder %s181_s5, 12  }
  0x16   : >> { %v242_v12 = vld [vmem:[%s1529_s7 + $0xa] sm:$0xff]  ;;  %v241_v13 = vld [vmem:[%s1529_s7 + $0x2] sm:$0xff]  ;;  %v243_v15 = vld [vmem:[%s1529_s7 + $0x12] sm:$0xff] }
  0x17   : >> { %v269_v14 = vld [vmem:[%s1529_s7 + $0x3] sm:$0xff]  ;;  %v271_v16 = vld [vmem:[%s1529_s7 + $0x13] sm:$0xff]  ;;  %v270_v17 = vld [vmem:[%s1529_s7 + $0xb] sm:$0xff] }
  0x18   : >> { %v298_v18 = vld [vmem:[%s1529_s7 + $0xc] sm:$0xff]  ;;  %v297_v19 = vld [vmem:[%s1529_s7 + $0x4] sm:$0xff]  ;;  %v299_v21 = vld [vmem:[%s1529_s7 + $0x14] sm:$0xff] }
  0x19   : >> { %218 = vperm.xlu1 %1441, %v213_v8   ;;  %195 = vperm.xlu0 %1440, %v186_v9   ;;  %v1322_v20 = vld [vmem:[%s1529_s7 + $0x20] sm:$0xff]  ;;  %v1324_v22 = vld [vmem:[%s1529_s7 + $0x30] sm:$0xff]  ;;  %v1323_v23 = vld [vmem:[%s1529_s7 + $0x28] sm:$0xff] }
  0x1a   : >> { %v1326_v24 = vld [vmem:[%s1529_s7 + $0x29] sm:$0xff]  ;;  %v1325_v25 = vld [vmem:[%s1529_s7 + $0x21] sm:$0xff]  ;;  %v1327_v27 = vld [vmem:[%s1529_s7 + $0x31] sm:$0xff] }
  0x1b   : >> { %v1328_v26 = vld [vmem:[%s1529_s7 + $0x22] sm:$0xff]  ;;  %v1330_v28 = vld [vmem:[%s1529_s7 + $0x32] sm:$0xff]  ;;  %v1329_v29 = vld [vmem:[%s1529_s7 + $0x2a] sm:$0xff] }
  0x1c   : >> { %v1332_v30 = vld [vmem:[%s1529_s7 + $0x2b] sm:$0xff]  ;;  %v1331_v31 = vld [vmem:[%s1529_s7 + $0x23] sm:$0xff]  ;;  %v1333_v33 = vld [vmem:[%s1529_s7 + $0x33] sm:$0xff] }
  0x1d   : >> { %228 = vperm.xlu1 %1441, %v215_v10   ;;  %223 = vperm.xlu0 %1440, %v214_v11   ;;  %v1334_v32 = vld [vmem:[%s1529_s7 + $0x24] sm:$0xff]  ;;  %v1336_v34 = vld [vmem:[%s1529_s7 + $0x34] sm:$0xff]  ;;  %v1335_v35 = vld [vmem:[%s1529_s7 + $0x2c] sm:$0xff]  ;;  %v1593_v10 = vshrl.u32 %v203_v7, 7 }
  0x1e   : >> { %v1340_v36 = vld [vmem:[%s1529_s7 + $0x48] sm:$0xff]  ;;  %v1339_v37 = vld [vmem:[%s1529_s7 + $0x40] sm:$0xff]  ;;  %v1341_v39 = vld [vmem:[%s1529_s7 + $0x50] sm:$0xff] }
  0x1f   : >> { %v1342_v38 = vld [vmem:[%s1529_s7 + $0x41] sm:$0xff]  ;;  %v1344_v40 = vld [vmem:[%s1529_s7 + $0x51] sm:$0xff]  ;;  %v1343_v41 = vld [vmem:[%s1529_s7 + $0x49] sm:$0xff]  ;;  %v1657_v7 = vsub.s32 5, %v1593_v10 }
  0x20   : >> { %v1346_v42 = vld [vmem:[%s1529_s7 + $0x4a] sm:$0xff]  ;;  %v1345_v43 = vld [vmem:[%s1529_s7 + $0x42] sm:$0xff]  ;;  %v1347_v45 = vld [vmem:[%s1529_s7 + $0x52] sm:$0xff] }
  0x21   : >> { %251 = vperm.xlu1 %1441, %v242_v12   ;;  %246 = vperm.xlu0 %1440, %v241_v13   ;;  %v1348_v44 = vld [vmem:[%s1529_s7 + $0x43] sm:$0xff]  ;;  %v1350_v46 = vld [vmem:[%s1529_s7 + $0x53] sm:$0xff]  ;;  %v1349_v47 = vld [vmem:[%s1529_s7 + $0x4b] sm:$0xff]  ;;  %v1598_v13 = vsub.s32 0, %v1593_v10 }
  0x22   : >> { %v1352_v48 = vld [vmem:[%s1529_s7 + $0x4c] sm:$0xff]  ;;  %v1351_v49 = vld [vmem:[%s1529_s7 + $0x44] sm:$0xff]  ;;  %v1353_v51 = vld [vmem:[%s1529_s7 + $0x54] sm:$0xff] }
  0x23   : >> { %v1356_v50 = vld [vmem:[%s1529_s7 + $0x60] sm:$0xff]  ;;  %v1358_v52 = vld [vmem:[%s1529_s7 + $0x70] sm:$0xff]  ;;  %v1357_v53 = vld [vmem:[%s1529_s7 + $0x68] sm:$0xff] }
  0x24   : >> { %v1360_v54 = vld [vmem:[%s1529_s7 + $0x69] sm:$0xff]  ;;  %v1359_v55 = vld [vmem:[%s1529_s7 + $0x61] sm:$0xff]  ;;  %v1361_v57 = vld [vmem:[%s1529_s7 + $0x71] sm:$0xff] }
  0x25   : >> { %274 = vperm.xlu1 %1441, %v269_v14   ;;  %256 = vperm.xlu0 %1440, %v243_v15   ;;  %v1362_v56 = vld [vmem:[%s1529_s7 + $0x62] sm:$0xff]  ;;  %v1364_v58 = vld [vmem:[%s1529_s7 + $0x72] sm:$0xff]  ;;  %v1363_v59 = vld [vmem:[%s1529_s7 + $0x6a] sm:$0xff]  ;;  %v1601_v14 = vsub.s32 1, %v1593_v10 }
  0x26   : >> { %v1366_v60 = vld [vmem:[%s1529_s7 + $0x6b] sm:$0xff]  ;;  %v1365_v61 = vld [vmem:[%s1529_s7 + $0x63] sm:$0xff]  ;;  %v1367_v63 = vld [vmem:[%s1529_s7 + $0x73] sm:$0xff] }
  0x27   : >> { %v1368_v62 = vld [vmem:[%s1529_s7 + $0x64] sm:$0xff]  ;;  %v1370_v5 = vld [vmem:[%s1529_s7 + $0x74] sm:$0xff]  ;;  %v1369_v6 = vld [vmem:[%s1529_s7 + $0x6c] sm:$0xff] }
  0x28   : >> { %v1374_v8 = vld [vmem:[%s1529_s7 + $0x88] sm:$0xff]  ;;  %v1373_v9 = vld [vmem:[%s1529_s7 + $0x80] sm:$0xff]  ;;  %v1375_v12 = vld [vmem:[%s1529_s7 + $0x90] sm:$0xff] }
  0x29   : >> { %284 = vperm.xlu1 %1441, %v271_v16   ;;  %279 = vperm.xlu0 %1440, %v270_v17   ;;  %v1376_v11 = vld [vmem:[%s1529_s7 + $0x81] sm:$0xff]  ;;  %v1377_v15 = vld [vmem:[%s1529_s7 + $0x89] sm:$0xff] }
  0x2a   : >> { %v1379_v16 = vld [vmem:[%s1529_s7 + $0x82] sm:$0xff] }
  0x2d   : >> { %307 = vperm.xlu1 %1441, %v298_v18   ;;  %302 = vperm.xlu0 %1440, %v297_v19   ;;  %v1607_v19 = vrot.slane %v2013_v0, %v1598_v13 }
  0x31   : >> { %333 = vperm.xlu1 %1441, %v1322_v20   ;;  %312 = vperm.xlu0 %1440, %v299_v21   ;;  %v1611_v20 = vrot.slane %v2013_v0, %v1601_v14  ;;  %v1382_v21 = vld [vmem:[%s1529_s7 + $0x83] sm:$0xff] }
  0x35   : >> { %343 = vperm.xlu1 %1441, %v1324_v22   ;;  %338 = vperm.xlu0 %1440, %v1323_v23   ;;  %v1378_v22 = vld [vmem:[%s1529_s7 + $0x91] sm:$0xff] }
  0x39   : >> { %366 = vperm.xlu1 %1441, %v1326_v24   ;;  %361 = vperm.xlu0 %1440, %v1325_v25   ;;  %v1616_v25 = vsub.s32 2, %v1593_v10 }
  0x3d   : >> { %389 = vperm.xlu1 %1441, %v1328_v26   ;;  %371 = vperm.xlu0 %1440, %v1327_v27  }
  0x41   : >> { %399 = vperm.xlu1 %1441, %v1330_v28   ;;  %394 = vperm.xlu0 %1440, %v1329_v29   ;;  %v1381_v28 = vld [vmem:[%s1529_s7 + $0x92] sm:$0xff]  ;;  %v1380_v29 = vld [vmem:[%s1529_s7 + $0x8a] sm:$0xff] }
  0x45   : >> { %422 = vperm.xlu1 %1441, %v1332_v30   ;;  %417 = vperm.xlu0 %1440, %v1331_v31  }
  0x49   : >> { %445 = vperm.xlu1 %1441, %v1334_v32   ;;  %427 = vperm.xlu0 %1440, %v1333_v33  }
  0x4d   : >> { %455 = vperm.xlu1 %1441, %v1336_v34   ;;  %450 = vperm.xlu0 %1440, %v1335_v35   ;;  %v1625_v34 = vrot.slane %v2013_v0, %v1616_v25 }
  0x51   : >> { %481 = vperm.xlu1 %1441, %v1340_v36   ;;  %476 = vperm.xlu0 %1440, %v1339_v37  }
  0x55   : >> { %504 = vperm.xlu1 %1441, %v1342_v38   ;;  %486 = vperm.xlu0 %1440, %v1341_v39   ;;  %v1631_v38 = vsub.s32 3, %v1593_v10  ;;  %v1383_v39 = vld [vmem:[%s1529_s7 + $0x8b] sm:$0xff] }
  0x59   : >> { %514 = vperm.xlu1 %1441, %v1344_v40   ;;  %509 = vperm.xlu0 %1440, %v1343_v41   ;;  %v1385_v40 = vld [vmem:[%s1529_s7 + $0x84] sm:$0xff] }
  0x5d   : >> { %537 = vperm.xlu1 %1441, %v1346_v42   ;;  %532 = vperm.xlu0 %1440, %v1345_v43  }
  0x61   : >> { %560 = vperm.xlu1 %1441, %v1348_v44   ;;  %542 = vperm.xlu0 %1440, %v1347_v45  }
  0x65   : >> { %570 = vperm.xlu1 %1441, %v1350_v46   ;;  %565 = vperm.xlu0 %1440, %v1349_v47   ;;  %v1639_v47 = vrot.slane %v2013_v0, %v1631_v38 }
  0x69   : >> { %593 = vperm.xlu1 %1441, %v1352_v48   ;;  %588 = vperm.xlu0 %1440, %v1351_v49   ;;  %v1392_v48 = vld [vmem:[%s1529_s7 + $0xa0] sm:$0xff]  ;;  %v1384_v49 = vld [vmem:[%s1529_s7 + $0x93] sm:$0xff] }
  0x6d   : >> { %619 = vperm.xlu1 %1441, %v1356_v50   ;;  %598 = vperm.xlu0 %1440, %v1353_v51  }
  0x71   : >> { %629 = vperm.xlu1 %1441, %v1358_v52   ;;  %624 = vperm.xlu0 %1440, %v1357_v53  }
  0x75   : >> { %652 = vperm.xlu1 %1441, %v1360_v54   ;;  %647 = vperm.xlu0 %1440, %v1359_v55  }
  0x79   : >> { %675 = vperm.xlu1 %1441, %v1362_v56   ;;  %657 = vperm.xlu0 %1440, %v1361_v57   ;;  %v1646_v56 = vsub.s32 4, %v1593_v10  ;;  %v1387_v57 = vld [vmem:[%s1529_s7 + $0x94] sm:$0xff] }
  0x7d   : >> { %685 = vperm.xlu1 %1441, %v1364_v58   ;;  %680 = vperm.xlu0 %1440, %v1363_v59   ;;  %v1386_v58 = vld [vmem:[%s1529_s7 + $0x8c] sm:$0xff] }
  0x81   : >> { %708 = vperm.xlu1 %1441, %v1366_v60   ;;  %703 = vperm.xlu0 %1440, %v1365_v61  }
  0x85   : >> { %731 = vperm.xlu1 %1441, %v1368_v62   ;;  %713 = vperm.xlu0 %1440, %v1367_v63  }
  0x89   : >> { %741 = vperm.xlu1 %1441, %v1370_v5   ;;  %736 = vperm.xlu0 %1440, %v1369_v6   ;;  %v1654_v6 = vrot.slane %v2013_v0, %v1646_v56 }
  0x8d   : >> { %767 = vperm.xlu1 %1441, %v1374_v8   ;;  %762 = vperm.xlu0 %1440, %v1373_v9   ;;  %v1393_v8 = vld [vmem:[%s1529_s7 + $0xa8] sm:$0xff] }
  0x8e   : >> { %v1395_v9 = vld [vmem:[%s1529_s7 + $0xa1] sm:$0xff] }
  0x91   : >> { %790 = vperm.xlu1 %1441, %v1376_v11   ;;  %772 = vperm.xlu0 %1440, %v1375_v12  }
  0x94   : >> { %v201_v17 = vpop.permute.xlu1 %200  ;;  %v191_v18 = vpop.permute.xlu0 %190 }
  0x95   : >> { %795 = vperm.xlu1 %1441, %v1377_v15   ;;  %818 = vperm.xlu0 %1440, %v1379_v16   ;;  %v207_v26 = vmul.f32 %v1607_v19, %v191_v18  ;;  %v209_v31 = vmul.f32 %v1607_v19, %v201_v17 }
  0x98   : >> { %v219_v23 = vpop.permute.xlu1 %218  ;;  %v196_v24 = vpop.permute.xlu0 %195 }
  0x99   : >> { %v235_v27 = vmul.f32 %v1611_v20, %v219_v23  ;;  %846 = vperm.xlu1 %1441, %v1382_v21   ;;  %800 = vperm.xlu0 %1440, %v1378_v22   ;;  %v208_v35 = vmul.f32 %v1607_v19, %v196_v24  ;;  %v1665_v21 = vrot.slane %v2013_v0, %v1657_v7  ;;  %v1398_v22 = vld [vmem:[%s1529_s7 + $0xa2] sm:$0xff]  ;;  %v1394_v23 = vld [vmem:[%s1529_s7 + $0xb0] sm:$0xff] }
  0x9b   : >> { %v238_v30 = vadd.f32 %v235_v27, %v207_v26 }
  0x9c   : >> { %v229_v32 = vpop.permute.xlu1 %228  ;;  %v224_v33 = vpop.permute.xlu0 %223 }
  0x9d   : >> { %v237_v36 = vmul.f32 %v1611_v20, %v229_v32  ;;  %v236_v37 = vmul.f32 %v1611_v20, %v224_v33  ;;  %828 = vperm.xlu1 %1441, %v1381_v28   ;;  %823 = vperm.xlu0 %1440, %v1380_v29   ;;  %v1397_v32 = vld [vmem:[%s1529_s7 + $0xb1] sm:$0xff] }
  0x9f   : >> { %v240_v41 = vadd.f32 %v237_v36, %v209_v31  ;;  %v239_v42 = vadd.f32 %v236_v37, %v208_v35  ;;  %v1672_v31 = vsub.s32 6, %v1593_v10  ;;  %v1396_v36 = vld [vmem:[%s1529_s7 + $0xa9] sm:$0xff] }
  0xa0   : >> { %v252_v43 = vpop.permute.xlu1 %251  ;;  %v247_v44 = vpop.permute.xlu0 %246 }
  0xa1   : >> { %v264_v45 = vmul.f32 %v1625_v34, %v252_v43  ;;  %v263_v46 = vmul.f32 %v1625_v34, %v247_v44  ;;  %851 = vperm.xlu1 %1441, %v1383_v39   ;;  %874 = vperm.xlu0 %1440, %v1385_v40   ;;  %v1677_v40 = vsub.s32 7, %v1593_v10  ;;  %v1683_v43 = vrot.slane %v2013_v0, %v1672_v31  ;;  %v1399_v44 = vld [vmem:[%s1529_s7 + $0xaa] sm:$0xff] }
  0xa3   : >> { %v267_v50 = vadd.f32 %v264_v45, %v239_v42  ;;  %v266_v51 = vadd.f32 %v263_v46, %v238_v30 }
  0xa4   : >> { %v275_v52 = vpop.permute.xlu1 %274  ;;  %v257_v53 = vpop.permute.xlu0 %256 }
  0xa5   : >> { %v291_v54 = vmul.f32 %v1639_v47, %v275_v52  ;;  %v265_v55 = vmul.f32 %v1625_v34, %v257_v53  ;;  %1037 = vperm.xlu1 %1441, %v1392_v48   ;;  %856 = vperm.xlu0 %1440, %v1384_v49   ;;  %v1401_v48 = vld [vmem:[%s1529_s7 + $0xa3] sm:$0xff]  ;;  %v1691_v52 = vrot.slane %v2013_v0, %v1677_v40 }
  0xa7   : >> { %v294_v59 = vadd.f32 %v291_v54, %v266_v51  ;;  %v268_v60 = vadd.f32 %v265_v55, %v240_v41 }
  0xa8   : >> { %v285_v61 = vpop.permute.xlu1 %284  ;;  %v280_v62 = vpop.permute.xlu0 %279 }
  0xa9   : >> { %v293_v63 = vmul.f32 %v1639_v47, %v285_v61  ;;  %v292_v5 = vmul.f32 %v1639_v47, %v280_v62  ;;  %884 = vperm.xlu1 %1441, %v1387_v57   ;;  %879 = vperm.xlu0 %1440, %v1386_v58   ;;  %v1404_v58 = vld [vmem:[%s1529_s7 + $0xa4] sm:$0xff] }
  0xab   : >> { %v296_v11 = vadd.f32 %v293_v63, %v268_v60  ;;  %v295_v12 = vadd.f32 %v292_v5, %v267_v50  ;;  %v1400_v63 = vld [vmem:[%s1529_s7 + $0xb2] sm:$0xff] }
  0xac   : >> { %v308_v15 = vpop.permute.xlu1 %307  ;;  %v303_v16 = vpop.permute.xlu0 %302 }
  0xad   : >> { %v320_v17 = vmul.f32 %v1654_v6, %v308_v15  ;;  %v319_v18 = vmul.f32 %v1654_v6, %v303_v16  ;;  %1042 = vperm.xlu1 %1441, %v1393_v8   ;;  %1061 = vperm.xlu0 %1440, %v1395_v9  }
  0xaf   : >> { %v323_v24 = vadd.f32 %v320_v17, %v295_v12  ;;  %v322_v26 = vadd.f32 %v319_v18, %v294_v59  ;;  %v1403_v17 = vld [vmem:[%s1529_s7 + $0xb3] sm:$0xff] }
  0xb0   : >> { %v334_v27 = vpop.permute.xlu1 %333  ;;  %v313_v28 = vpop.permute.xlu0 %312 }
  0xb1   : >> { %v350_v29 = vmul.f32 %v1665_v21, %v334_v27  ;;  %v321_v30 = vmul.f32 %v1654_v6, %v313_v28  ;;  %1085 = vperm.xlu1 %1441, %v1398_v22   ;;  %1047 = vperm.xlu0 %1440, %v1394_v23   ;;  %v909_v49 = vmul.f32 %v334_v27, %v1607_v19 }
  0xb2   : >> { %v1708_v28 = vrot.slane %v1495_v1, %v1598_v13 }
  0xb3   : >> { %v353_v33 = vadd.f32 %v350_v29, %v322_v26  ;;  %v324_v35 = vadd.f32 %v321_v30, %v296_v11 }
  0xb4   : >> { %v344_v37 = vpop.permute.xlu1 %343  ;;  %v339_v39 = vpop.permute.xlu0 %338 }
  0xb5   : >> { %v352_v41 = vmul.f32 %v1665_v21, %v344_v37  ;;  %v351_v42 = vmul.f32 %v1665_v21, %v339_v39  ;;  %1071 = vperm.xlu1 %1441, %v1397_v32   ;;  %1066 = vperm.xlu0 %1440, %v1396_v36   ;;  %v910_v10 = vmul.f32 %v339_v39, %v1607_v19 }
  0xb6   : >> { %v911_v5 = vmul.f32 %v344_v37, %v1607_v19  ;;  %v1402_v19 = vld [vmem:[%s1529_s7 + $0xab] sm:$0xff] }
  0xb7   : >> { %v355_v45 = vadd.f32 %v352_v41, %v324_v35  ;;  %v354_v46 = vadd.f32 %v351_v42, %v323_v24  ;;  %v1405_v41 = vld [vmem:[%s1529_s7 + $0xac] sm:$0xff] }
  0xb8   : >> { %v367_v50 = vpop.permute.xlu1 %366  ;;  %v362_v51 = vpop.permute.xlu0 %361 }
  0xb9   : >> { %v379_v53 = vmul.f32 %v1683_v43, %v367_v50  ;;  %v916_v54 = vmul.f32 %v367_v50, %v1611_v20  ;;  %v378_v55 = vmul.f32 %v1683_v43, %v362_v51  ;;  %v915_v57 = vmul.f32 %v362_v51, %v1611_v20  ;;  %1090 = vperm.xlu1 %1441, %v1399_v44  }
  0xba   : >> { %1109 = vperm.xlu0 %1440, %v1401_v48  }
  0xbb   : >> { %v382_v59 = vadd.f32 %v379_v53, %v354_v46  ;;  %v919_v60 = vadd.f32 %v916_v54, %v910_v10  ;;  %v381_v61 = vadd.f32 %v378_v55, %v353_v33  ;;  %v918_v62 = vadd.f32 %v915_v57, %v909_v49  ;;  %v1406_v33 = vld [vmem:[%s1529_s7 + $0xb4] sm:$0xff] }
  0xbc   : >> { %v390_v8 = vpop.permute.xlu1 %389  ;;  %v372_v9 = vpop.permute.xlu0 %371 }
  0xbd   : >> { %v406_v11 = vmul.f32 %v1691_v52, %v390_v8  ;;  %v921_v12 = vmul.f32 %v390_v8, %v1625_v34  ;;  %v380_v15 = vmul.f32 %v1683_v43, %v372_v9  ;;  %v917_v16 = vmul.f32 %v372_v9, %v1611_v20  ;;  %1133 = vperm.xlu1 %1441, %v1404_v58  }
  0xbe   : >> { %1095 = vperm.xlu0 %1440, %v1400_v63  }
  0xbf   : >> { %v409_v18 = vadd.f32 %v406_v11, %v381_v61  ;;  %v924_v22 = vadd.f32 %v921_v12, %v918_v62  ;;  %v383_v23 = vadd.f32 %v380_v15, %v355_v45  ;;  %v920_v24 = vadd.f32 %v917_v16, %v911_v5 }
  0xc0   : >> { %v400_v26 = vpop.permute.xlu1 %399  ;;  %v395_v27 = vpop.permute.xlu0 %394  ;;  %v1718_v45 = vrot.slane %v1495_v1, %v1601_v14  ;;  %v1730_v11 = vrot.slane %v1495_v1, %v1616_v25 }
  0xc1   : >> { %v408_v29 = vmul.f32 %v1691_v52, %v400_v26  ;;  %v923_v20 = vmul.f32 %v400_v26, %v1625_v34  ;;  %v407_v30 = vmul.f32 %v1691_v52, %v395_v27  ;;  %v922_v32 = vmul.f32 %v395_v27, %v1625_v34  ;;  %1119 = vperm.xlu1 %1441, %v1403_v17  }
  0xc2   : >> { %1114 = vperm.xlu0 %1440, %v1402_v19   ;;  %v1738_v26 = vrot.slane %v1495_v1, %v1631_v38 }
  0xc3   : >> { %v411_v35 = vadd.f32 %v408_v29, %v383_v23  ;;  %v926_v36 = vadd.f32 %v923_v20, %v920_v24  ;;  %v410_v37 = vadd.f32 %v407_v30, %v382_v59  ;;  %v925_v39 = vadd.f32 %v922_v32, %v919_v60 }
  0xc4   : >> { %v423_v42 = vpop.permute.xlu1 %422  ;;  %v418_v44 = vpop.permute.xlu0 %417 }
  0xc5   : >> { %v435_v46 = vmul.f32 %v1708_v28, %v423_v42  ;;  %v928_v48 = vmul.f32 %v423_v42, %v1639_v47  ;;  %v434_v34 = vmul.f32 %v1708_v28, %v418_v44  ;;  %v927_v49 = vmul.f32 %v418_v44, %v1639_v47  ;;  %1143 = vperm.xlu1 %1441, %v1406_v33  }
  0xc6   : >> { %1138 = vperm.xlu0 %1440, %v1405_v41  }
  0xc7   : >> { %v438_v10 = vadd.f32 %v435_v46, %v410_v37  ;;  %v931_v50 = vadd.f32 %v928_v48, %v925_v39  ;;  %v437_v51 = vadd.f32 %v434_v34, %v409_v18  ;;  %v930_v53 = vadd.f32 %v927_v49, %v924_v22 }
  0xc8   : >> { %v446_v54 = vpop.permute.xlu1 %445  ;;  %v428_v55 = vpop.permute.xlu0 %427 }
  0xc9   : >> { %v462_v57 = vmul.f32 %v1718_v45, %v446_v54  ;;  %v933_v58 = vmul.f32 %v446_v54, %v1654_v6  ;;  %v436_v59 = vmul.f32 %v1708_v28, %v428_v55  ;;  %v929_v60 = vmul.f32 %v428_v55, %v1639_v47 }
  0xcb   : >> { %v465_v61 = vadd.f32 %v462_v57, %v437_v51  ;;  %v936_v62 = vadd.f32 %v933_v58, %v930_v53  ;;  %v439_v63 = vadd.f32 %v436_v59, %v411_v35  ;;  %v932_v5 = vadd.f32 %v929_v60, %v926_v36 }
  0xcc   : >> { %v456_v8 = vpop.permute.xlu1 %455  ;;  %v451_v9 = vpop.permute.xlu0 %450  ;;  %v1750_v51 = vrot.slane %v1495_v1, %v1646_v56 }
  0xcd   : >> { %v464_v12 = vmul.f32 %v1718_v45, %v456_v8  ;;  %v935_v15 = vmul.f32 %v456_v8, %v1654_v6  ;;  %v463_v16 = vmul.f32 %v1718_v45, %v451_v9  ;;  %v934_v17 = vmul.f32 %v451_v9, %v1654_v6 }
  0xcf   : >> { %v467_v18 = vadd.f32 %v464_v12, %v439_v63  ;;  %v938_v47 = vadd.f32 %v935_v15, %v932_v5  ;;  %v466_v22 = vadd.f32 %v463_v16, %v438_v10  ;;  %v937_v23 = vadd.f32 %v934_v17, %v931_v50 }
  0xd0   : >> { %v482_v24 = vpop.permute.xlu1 %481  ;;  %v477_v19 = vpop.permute.xlu0 %476  ;;  %v1758_v63 = vrot.slane %v1495_v1, %v1657_v7 }
  0xd1   : >> { %v494_v27 = vmul.f32 %v1730_v11, %v482_v24  ;;  %v940_v29 = vmul.f32 %v482_v24, %v1665_v21  ;;  %v493_v20 = vmul.f32 %v1730_v11, %v477_v19  ;;  %v939_v30 = vmul.f32 %v477_v19, %v1665_v21 }
  0xd3   : >> { %v497_v32 = vadd.f32 %v494_v27, %v466_v22  ;;  %v943_v6 = vadd.f32 %v940_v29, %v937_v23  ;;  %v496_v33 = vadd.f32 %v493_v20, %v465_v61  ;;  %v942_v35 = vadd.f32 %v939_v30, %v936_v62 }
  0xd4   : >> { %v505_v36 = vpop.permute.xlu1 %504  ;;  %v487_v37 = vpop.permute.xlu0 %486 }
  0xd5   : >> { %v521_v39 = vmul.f32 %v1738_v26, %v505_v36  ;;  %v945_v41 = vmul.f32 %v505_v36, %v1683_v43  ;;  %v495_v42 = vmul.f32 %v1730_v11, %v487_v37  ;;  %v941_v44 = vmul.f32 %v487_v37, %v1665_v21 }
  0xd7   : >> { %v524_v46 = vadd.f32 %v521_v39, %v496_v33  ;;  %v948_v48 = vadd.f32 %v945_v41, %v942_v35  ;;  %v498_v34 = vadd.f32 %v495_v42, %v467_v18  ;;  %v944_v49 = vadd.f32 %v941_v44, %v938_v47 }
  0xd8   : >> { %v515_v10 = vpop.permute.xlu1 %514  ;;  %v510_v50 = vpop.permute.xlu0 %509  ;;  %v1772_v33 = vrot.slane %v1495_v1, %v1672_v31 }
  0xd9   : >> { %v523_v53 = vmul.f32 %v1738_v26, %v515_v10  ;;  %v947_v54 = vmul.f32 %v515_v10, %v1683_v43  ;;  %v522_v55 = vmul.f32 %v1738_v26, %v510_v50  ;;  %v946_v57 = vmul.f32 %v510_v50, %v1683_v43 }
  0xda   : >> { %v1784_v10 = vrot.slane %v1495_v1, %v1677_v40 }
  0xdb   : >> { %v526_v58 = vadd.f32 %v523_v53, %v498_v34  ;;  %v950_v21 = vadd.f32 %v947_v54, %v944_v49  ;;  %v525_v59 = vadd.f32 %v522_v55, %v497_v32  ;;  %v949_v60 = vadd.f32 %v946_v57, %v943_v6 }
  0xdc   : >> { %v538_v61 = vpop.permute.xlu1 %537  ;;  %v533_v62 = vpop.permute.xlu0 %532 }
  0xdd   : >> { %v550_v5 = vmul.f32 %v1750_v51, %v538_v61  ;;  %v952_v8 = vmul.f32 %v538_v61, %v1691_v52  ;;  %v549_v9 = vmul.f32 %v1750_v51, %v533_v62  ;;  %v951_v12 = vmul.f32 %v533_v62, %v1691_v52 }
  0xdf   : >> { %v553_v15 = vadd.f32 %v550_v5, %v525_v59  ;;  %v955_v43 = vadd.f32 %v952_v8, %v949_v60  ;;  %v552_v16 = vadd.f32 %v549_v9, %v524_v46  ;;  %v954_v17 = vadd.f32 %v951_v12, %v948_v48 }
  0xe0   : >> { %v561_v18 = vpop.permute.xlu1 %560  ;;  %v543_v47 = vpop.permute.xlu0 %542  ;;  %v1792_v5 = vrot.slane %v1500_v2, %v1598_v13 }
  0xe1   : >> { %v577_v22 = vmul.f32 %v1758_v63, %v561_v18  ;;  %v957_v23 = vmul.f32 %v561_v18, %v1708_v28  ;;  %v551_v24 = vmul.f32 %v1750_v51, %v543_v47  ;;  %v953_v19 = vmul.f32 %v543_v47, %v1691_v52 }
  0xe3   : >> { %v580_v27 = vadd.f32 %v577_v22, %v552_v16  ;;  %v1768_v29 = vadd.f32 %v957_v23, %v954_v17  ;;  %v554_v20 = vadd.f32 %v551_v24, %v526_v58  ;;  %v956_v30 = vadd.f32 %v953_v19, %v950_v21 }
  0xe4   : >> { %v571_v32 = vpop.permute.xlu1 %570  ;;  %v566_v6 = vpop.permute.xlu0 %565 }
  0xe5   : >> { %v579_v35 = vmul.f32 %v1758_v63, %v571_v32  ;;  %v959_v36 = vmul.f32 %v571_v32, %v1708_v28  ;;  %v578_v37 = vmul.f32 %v1758_v63, %v566_v6  ;;  %v958_v39 = vmul.f32 %v566_v6, %v1708_v28 }
  0xe7   : >> { %v582_v52 = vadd.f32 %v579_v35, %v554_v20  ;;  %v962_v41 = vadd.f32 %v959_v36, %v956_v30  ;;  %v581_v42 = vadd.f32 %v578_v37, %v553_v15  ;;  %v1778_v44 = vadd.f32 %v958_v39, %v955_v43 }
  0xe8   : >> { %v594_v46 = vpop.permute.xlu1 %593  ;;  %v589_v48 = vpop.permute.xlu0 %588 }
  0xe9   : >> { %v606_v34 = vmul.f32 %v1772_v33, %v594_v46  ;;  %v605_v49 = vmul.f32 %v1772_v33, %v589_v48 }
  0xeb   : >> { %v609_v50 = vadd.f32 %v606_v34, %v581_v42  ;;  %v608_v53 = vadd.f32 %v605_v49, %v580_v27  ;;  %v963_v49 = vmul.f32 %v589_v48, %v1718_v45 }
  0xec   : >> { %v620_v54 = vpop.permute.xlu1 %619  ;;  %v599_v55 = vpop.permute.xlu0 %598 }
  0xed   : >> { %v636_v28 = vmul.f32 %v1784_v10, %v620_v54  ;;  %v607_v57 = vmul.f32 %v1772_v33, %v599_v55 }
  0xef   : >> { %v639_v58 = vadd.f32 %v636_v28, %v608_v53  ;;  %v610_v21 = vadd.f32 %v607_v57, %v582_v52  ;;  %v964_v53 = vmul.f32 %v594_v46, %v1718_v45  ;;  %v1832_v28 = vrot.slane %v1500_v2, %v1601_v14 }
  0xf0   : >> { %v630_v59 = vpop.permute.xlu1 %629  ;;  %v625_v60 = vpop.permute.xlu0 %624  ;;  %v969_v57 = vmul.f32 %v620_v54, %v1730_v11  ;;  %v1848_v14 = vrot.slane %v1500_v2, %v1646_v56  ;;  %v1852_v46 = vrot.slane %v1500_v2, %v1657_v7 }
  0xf1   : >> { %v638_v61 = vmul.f32 %v1784_v10, %v630_v59  ;;  %v637_v62 = vmul.f32 %v1784_v10, %v625_v60  ;;  %v970_v48 = vmul.f32 %v625_v60, %v1730_v11  ;;  %v967_v56 = vadd.f32 %v964_v53, %v1778_v44 }
  0xf3   : >> { %v1794_v8 = vadd.f32 %v638_v61, %v610_v21  ;;  %v640_v9 = vadd.f32 %v637_v62, %v609_v50  ;;  %v965_v50 = vmul.f32 %v599_v55, %v1718_v45  ;;  %v971_v21 = vmul.f32 %v630_v59, %v1730_v11 }
  0xf4   : >> { %v653_v12 = vpop.permute.xlu1 %652  ;;  %v648_v15 = vpop.permute.xlu0 %647  ;;  %v1838_v61 = vrot.slane %v1500_v2, %v1616_v25  ;;  %v1842_v62 = vrot.slane %v1500_v2, %v1631_v38  ;;  %v966_v55 = vadd.f32 %v963_v49, %v1768_v29  ;;  %v1862_v11 = vrot.slane %v1500_v2, %v1672_v31 }
  0xf5   : >> { %v665_v43 = vmul.f32 %v1792_v5, %v653_v12  ;;  %v664_v45 = vmul.f32 %v1792_v5, %v648_v15  ;;  %v968_v38 = vadd.f32 %v965_v50, %v962_v41  ;;  %v975_v59 = vmul.f32 %v648_v15, %v1738_v26 }
  0xf6   : >> { %v976_v60 = vmul.f32 %v653_v12, %v1738_v26  ;;  %v973_v15 = vadd.f32 %v970_v48, %v967_v56 }
  0xf7   : >> { %v1797_v16 = vadd.f32 %v665_v43, %v640_v9  ;;  %v1869_v9 = vrot.slane %v1500_v2, %v1677_v40  ;;  %v972_v43 = vadd.f32 %v969_v57, %v966_v55  ;;  %v974_v0 = vadd.f32 %v971_v21, %v968_v38 }
  0xf8   : >> { %v676_v17 = vpop.permute.xlu1 %675  ;;  %v658_v18 = vpop.permute.xlu0 %657  ;;  %v667_v49 = vadd.f32 %v664_v45, %v639_v58 }
  0xf9   : >> { %v692_v7 = vmul.f32 %v1832_v28, %v676_v17  ;;  %v981_v29 = vmul.f32 %v676_v17, %v1750_v51  ;;  %v666_v41 = vmul.f32 %v1792_v5, %v658_v18  ;;  %v977_v31 = vmul.f32 %v658_v18, %v1738_v26 }
  0xfa   : >> { %v978_v53 = vadd.f32 %v975_v59, %v972_v43  ;;  %v979_v17 = vadd.f32 %v976_v60, %v973_v15 }
  0xfb   : >> { %v695_v55 = vadd.f32 %v692_v7, %v667_v49  ;;  %v669_v18 = vadd.f32 %v666_v41, %v1794_v8  ;;  %v980_v59 = vadd.f32 %v977_v31, %v974_v0 }
  0xfc   : >> { %v686_v47 = vpop.permute.xlu1 %685  ;;  %v681_v22 = vpop.permute.xlu0 %680  ;;  %v984_v26 = vadd.f32 %v981_v29, %v978_v53 }
  0xfd   : >> { %v693_v44 = vmul.f32 %v1832_v28, %v681_v22  ;;  %v694_v40 = vmul.f32 %v1832_v28, %v686_v47  ;;  %v982_v57 = vmul.f32 %v681_v22, %v1750_v51  ;;  %v983_v48 = vmul.f32 %v686_v47, %v1750_v51 }
  0xff   : >> { %v696_v56 = vadd.f32 %v693_v44, %v1797_v16  ;;  %v697_v47 = vadd.f32 %v694_v40, %v669_v18  ;;  %v985_v43 = vadd.f32 %v982_v57, %v979_v17  ;;  %v986_v29 = vadd.f32 %v983_v48, %v980_v59 }
 0x100   : >> { %v709_v23 = vpop.permute.xlu1 %708  ;;  %v704_v24 = vpop.permute.xlu0 %703 }
 0x101   : >> { %v987_v21 = vmul.f32 %v704_v24, %v1758_v63  ;;  %v721_v58 = vmul.f32 %v1838_v61, %v709_v23  ;;  %v988_v45 = vmul.f32 %v709_v23, %v1758_v63  ;;  %v720_v22 = vmul.f32 %v1838_v61, %v704_v24 }
 0x103   : >> { %v990_v8 = vadd.f32 %v987_v21, %v984_v26  ;;  %v724_v41 = vadd.f32 %v721_v58, %v696_v56  ;;  %v991_v24 = vadd.f32 %v988_v45, %v985_v43  ;;  %v723_v44 = vadd.f32 %v720_v22, %v695_v55 }
 0x104   : >> { %v1799_v19 = vpop.permute.xlu1 %731  ;;  %v1801_v27 = vpop.permute.xlu0 %713 }
 0x105   : >> { %v993_v38 = vmul.f32 %v1799_v19, %v1772_v33  ;;  %v722_v60 = vmul.f32 %v1838_v61, %v1801_v27  ;;  %v748_v0 = vmul.f32 %v1842_v62, %v1799_v19  ;;  %v989_v16 = vmul.f32 %v1801_v27, %v1758_v63 }
 0x107   : >> { %v996_v15 = vadd.f32 %v993_v38, %v990_v8  ;;  %v725_v53 = vadd.f32 %v722_v60, %v697_v47  ;;  %v751_v48 = vadd.f32 %v748_v0, %v723_v44  ;;  %v992_v58 = vadd.f32 %v989_v16, %v986_v29 }
 0x108   : >> { %v1803_v13 = vpop.permute.xlu1 %741  ;;  %v1805_v20 = vpop.permute.xlu0 %736 }
 0x109   : >> { %v750_v49 = vmul.f32 %v1842_v62, %v1803_v13  ;;  %v749_v40 = vmul.f32 %v1842_v62, %v1805_v20  ;;  %v994_v57 = vmul.f32 %v1805_v20, %v1772_v33  ;;  %v995_v63 = vmul.f32 %v1803_v13, %v1772_v33 }
 0x10b   : >> { %v753_v18 = vadd.f32 %v750_v49, %v725_v53  ;;  %v997_v38 = vadd.f32 %v994_v57, %v991_v24  ;;  %v998_v47 = vadd.f32 %v995_v63, %v992_v58 }
 0x10c   : >> { %v1807_v30 = vpop.permute.xlu1 %767  ;;  %v1809_v32 = vpop.permute.xlu0 %762 }
 0x10d   : >> { %v999_v23 = vmul.f32 %v1809_v32, %v1784_v10  ;;  %v779_v27 = vmul.f32 %v1848_v14, %v1809_v32  ;;  %v780_v26 = vmul.f32 %v1848_v14, %v1807_v30  ;;  %v1000_v20 = vmul.f32 %v1807_v30, %v1784_v10 }
 0x10e   : >> { %v752_v32 = vadd.f32 %v749_v40, %v724_v41 }
 0x10f   : >> { %v1002_v17 = vadd.f32 %v999_v23, %v996_v15  ;;  %v782_v30 = vadd.f32 %v779_v27, %v751_v48  ;;  %v1003_v23 = vadd.f32 %v1000_v20, %v997_v38 }
 0x110   : >> { %v1811_v6 = vpop.permute.xlu1 %790  ;;  %v1813_v35 = vpop.permute.xlu0 %772  ;;  %v783_v8 = vadd.f32 %v780_v26, %v752_v32 }
 0x111   : >> { %v1005_v31 = vmul.f32 %v1811_v6, %v1792_v5  ;;  %v807_v45 = vmul.f32 %v1852_v46, %v1811_v6  ;;  %v781_v59 = vmul.f32 %v1848_v14, %v1813_v35  ;;  %v1001_v56 = vmul.f32 %v1813_v35, %v1784_v10 }
 0x113   : >> { %v1008_v33 = vadd.f32 %v1005_v31, %v1002_v17  ;;  %v810_v0 = vadd.f32 %v807_v45, %v782_v30  ;;  %v784_v24 = vadd.f32 %v781_v59, %v753_v18  ;;  %v1004_v15 = vadd.f32 %v1001_v56, %v998_v47 }
 0x114   : >> { %v1815_v36 = vpop.permute.xlu1 %795  ;;  %v1817_v37 = vpop.permute.xlu0 %818 }
 0x115   : >> { %v1011_v55 = vmul.f32 %v1817_v37, %v1832_v28  ;;  %v808_v29 = vmul.f32 %v1852_v46, %v1815_v36  ;;  %v835_v41 = vmul.f32 %v1862_v11, %v1817_v37  ;;  %v1006_v49 = vmul.f32 %v1815_v36, %v1792_v5 }
 0x117   : >> { %v1014_v43 = vadd.f32 %v1011_v55, %v1008_v33  ;;  %v838_v27 = vadd.f32 %v835_v41, %v810_v0  ;;  %v1009_v48 = vadd.f32 %v1006_v49, %v1003_v23 }
 0x118   : >> { %v1819_v39 = vpop.permute.xlu1 %846  ;;  %v1821_v52 = vpop.permute.xlu0 %800 }
 0x119   : >> { %v1017_v13 = vmul.f32 %v1819_v39, %v1838_v61  ;;  %v1007_v10 = vmul.f32 %v1821_v52, %v1792_v5  ;;  %v863_v31 = vmul.f32 %v1869_v9, %v1819_v39  ;;  %v809_v37 = vmul.f32 %v1852_v46, %v1821_v52 }
 0x11b   : >> { %v1020_v16 = vadd.f32 %v1017_v13, %v1014_v43  ;;  %v1010_v36 = vadd.f32 %v1007_v10, %v1004_v15  ;;  %v866_v58 = vadd.f32 %v863_v31, %v838_v27 }
 0x11c   : >> { %v1823_v42 = vpop.permute.xlu1 %828  ;;  %v1825_v34 = vpop.permute.xlu0 %823 }
 0x11d   : >> { %v1013_v53 = vmul.f32 %v1823_v42, %v1832_v28  ;;  %v1012_v17 = vmul.f32 %v1825_v34, %v1832_v28  ;;  %v812_v28 = vadd.f32 %v809_v37, %v784_v24 }
 0x11f   : >> { %v1016_v18 = vadd.f32 %v1013_v53, %v1010_v36  ;;  %v1015_v13 = vadd.f32 %v1012_v17, %v1009_v48 }
 0x120   : >> { %v1854_v54 = vpop.permute.xlu1 %851  ;;  %v1856_v25 = vpop.permute.xlu0 %874 }
 0x121   : >> { %v1023_v6 = vmul.f32 %v1856_v25, %v1842_v62  ;;  %v891_v5 = vmul.f32 %v1505_v3, %v1856_v25  ;;  %v1018_v26 = vmul.f32 %v1854_v54, %v1838_v61  ;;  %v864_v0 = vmul.f32 %v1869_v9, %v1854_v54 }
 0x123   : >> { %v1026_v40 = vadd.f32 %v1023_v6, %v1020_v16  ;;  %v894_v32 = vadd.f32 %v891_v5, %v866_v58  ;;  %v1021_v30 = vadd.f32 %v1018_v26, %v1015_v13 }
 0x124   : >> { %v1875_v50 = vpop.permute.xlu1 %1037  ;;  %v1877_v12 = vpop.permute.xlu0 %856 }
 0x125   : >> { %v1050_v35 = vmul.f32 %v1875_v50, %v1848_v14  ;;  %v811_v50 = vadd.f32 %v808_v29, %v783_v8  ;;  %v1019_v52 = vmul.f32 %v1877_v12, %v1838_v61  ;;  %v865_v43 = vmul.f32 %v1869_v9, %v1877_v12 }
 0x127   : >> { %v1053_v39 = vadd.f32 %v1050_v35, %v1026_v40  ;;  %v1022_v56 = vadd.f32 %v1019_v52, %v1016_v18 }
 0x128   : >> { %v1892_v7 = vpop.permute.xlu1 %884  ;;  %v1894_v51 = vpop.permute.xlu0 %879 }
 0x129   : >> { %v1025_v25 = vmul.f32 %v1892_v7, %v1842_v62  ;;  %v1024_v38 = vmul.f32 %v1894_v51, %v1842_v62  ;;  %v893_v12 = vmul.f32 %v1505_v3, %v1892_v7  ;;  %v892_v15 = vmul.f32 %v1505_v3, %v1894_v51 }
 0x12b   : >> { %v1028_v23 = vadd.f32 %v1025_v25, %v1022_v56  ;;  %v1027_v16 = vadd.f32 %v1024_v38, %v1021_v30 }
 0x12c   : >> { %v1910_v19 = vpop.permute.xlu1 %1042  ;;  %v1062_v21 = vpop.permute.xlu0 %1061 }
 0x12d   : >> { %v1074_v57 = vmul.f32 %v1062_v21, %v1852_v46  ;;  %v837_v21 = vmul.f32 %v1862_v11, %v1823_v42  ;;  %v836_v42 = vmul.f32 %v1862_v11, %v1825_v34  ;;  %v1051_v6 = vmul.f32 %v1910_v19, %v1848_v14 }
 0x12f   : >> { %v1077_v45 = vadd.f32 %v1074_v57, %v1053_v39  ;;  %v840_v47 = vadd.f32 %v837_v21, %v812_v28  ;;  %v839_v24 = vadd.f32 %v836_v42, %v811_v50  ;;  %v1054_v49 = vadd.f32 %v1051_v6, %v1027_v16 }
 0x130   : >> { %v1086_v22 = vpop.permute.xlu1 %1085  ;;  %v1048_v60 = vpop.permute.xlu0 %1047 }
 0x131   : >> { %v1098_v55 = vmul.f32 %v1086_v22, %v1862_v11  ;;  %v1052_v22 = vmul.f32 %v1048_v60, %v1848_v14  ;;  %v903_v60 = vadd.f32 %v1510_v4, %v894_v32  ;;  %v867_v7 = vadd.f32 %v864_v0, %v839_v24 }
 0x133   : >> { %v1101_v61 = vadd.f32 %v1098_v55, %v1077_v45  ;;  %v1055_v14 = vadd.f32 %v1052_v22, %v1028_v23  ;;  %v906_v27 = vmax.f32 %v903_v60, 0.0  ;;  %v895_v51 = vadd.f32 %v892_v15, %v867_v7 }
 0x134   : >> { %v1072_v44 = vpop.permute.xlu1 %1071  ;;  %v1067_v63 = vpop.permute.xlu0 %1066 }
 0x135   : >> { %v1076_v62 = vmul.f32 %v1072_v44, %v1852_v46  ;;  %v1075_v10 = vmul.f32 %v1067_v63, %v1852_v46  ;;  %v868_v44 = vadd.f32 %v865_v43, %v840_v47 }
 0x137   : >> { %v1079_v37 = vadd.f32 %v1076_v62, %v1055_v14  ;;  %v1078_v57 = vadd.f32 %v1075_v10, %v1054_v49  ;;  %v896_v50 = vadd.f32 %v893_v12, %v868_v44 }
 0x138   : >> { %v1091_v20 = vpop.permute.xlu1 %1090 }
 0x139   : >> { %v1110_v33 = vpop.permute.xlu0 %1109  ;;  %v1099_v31 = vmul.f32 %v1091_v20, %v1862_v11  ;;  %v905_v26 = vadd.f32 %v1510_v4, %v896_v50 }
 0x13a   : >> { %v1122_v59 = vmul.f32 %v1110_v33, %v1869_v9 }
 0x13b   : >> { %v1102_v36 = vadd.f32 %v1099_v31, %v1078_v57  ;;  %v908_v13 = vmax.f32 %v905_v26, 0.0 }
 0x13c   : >> { %v1134_v8 = vpop.permute.xlu1 %1133  ;;  %v1125_v29 = vadd.f32 %v1122_v59, %v1101_v61 }
 0x13d   : >> { %v1146_v41 = vmul.f32 %v1505_v3, %v1134_v8  ;;  %v1096_v34 = vpop.permute.xlu0 %1095 }
 0x13e   : >> { %v1100_v35 = vmul.f32 %v1096_v34, %v1862_v11 }
 0x13f   : >> { %v1149_v19 = vadd.f32 %v1146_v41, %v1125_v29 }
 0x140   : >> { %v1120_v54 = vpop.permute.xlu1 %1119  ;;  %v1103_v5 = vadd.f32 %v1100_v35, %v1079_v37 }
 0x141   : >> { %v1152_v53 = vadd.f32 %v1510_v4, %v1149_v19  ;;  %v1124_v46 = vmul.f32 %v1120_v54, %v1869_v9  ;;  %v1115_v40 = vpop.permute.xlu0 %1114 }
 0x142   : >> { %v1123_v63 = vmul.f32 %v1115_v40, %v1869_v9  ;;  %v904_v9 = vadd.f32 %v1510_v4, %v895_v51 }
 0x143   : >> { %v1155_v17 = vmax.f32 %v1152_v53, 0.0  ;;  %v1127_v52 = vadd.f32 %v1124_v46, %v1103_v5 }
 0x144   : >> { %v1144_v39 = vpop.permute.xlu1 %1143  ;;  %v1126_v58 = vadd.f32 %v1123_v63, %v1102_v36  ;;  %v907_v59 = vmax.f32 %v904_v9, 0.0 }
 0x145   : >> { %v1158_v11 = vmax.f32 %v906_v27, %v1155_v17  ;;  %v1148_v55 = vmul.f32 %v1505_v3, %v1144_v39  ;;  %v1139_v48 = vpop.permute.xlu0 %1138 }
 0x146   : >> { %v1147_v21 = vmul.f32 %v1505_v3, %v1139_v48 }
 0x147   : >> { %v1162_v20 = vrot.slane %v1158_v11, 1  ;;  %v1151_v28 = vadd.f32 %v1148_v55, %v1127_v52 }
 0x148   : >> { %v1150_v18 = vadd.f32 %v1147_v21, %v1126_v58 }
 0x149   : >> { %v1164_v25 = vmax.f32 %v1158_v11, %v1162_v20  ;;  %v1154_v45 = vadd.f32 %v1510_v4, %v1151_v28 }
 0x14a   : >> { %v1153_v33 = vadd.f32 %v1510_v4, %v1150_v18 }
 0x14b   : >> { %v1174_v32 = vrot.slane %v1164_v25, 1  ;;  %v1157_v38 = vmax.f32 %v1154_v45, 0.0  ;;  %v1176_v61 = vrot.slane %v1164_v25, 2  ;;  %v1178_v62 = vrot.slane %v1164_v25, 3 }
 0x14c   : >> { %v1156_v42 = vmax.f32 %v1153_v33, 0.0 }
 0x14d   : >> { %v1160_v56 = vmax.f32 %v908_v13, %v1157_v38  ;;  %v1197_v47 = vsel %vm1196_vm0, %v1164_v25, %v1174_v32 }
 0x14e   : >> { %v1159_v22 = vmax.f32 %v907_v59, %v1156_v42  ;;  %v1199_v8 = vsel %vm1198_vm1, %v1197_v47, %v1176_v61 }
 0x14f   : >> { %v1170_v30 = vrot.slane %v1160_v56, 1  ;;  %v1201_v60 = vsel %vm1200_vm2, %v1199_v8, %v1178_v62 }
 0x150   : >> { %v1166_v43 = vrot.slane %v1159_v22, 1 }
 0x151   : >> { %v1172_v6 = vmax.f32 %v1160_v56, %v1170_v30 }
 0x152   : >> { %v1168_v23 = vmax.f32 %v1159_v22, %v1166_v43 }
 0x153   : >> { %v1190_v29 = vrot.slane %v1172_v6, 1  ;;  %v1192_v41 = vrot.slane %v1172_v6, 2  ;;  %v1194_v16 = vrot.slane %v1172_v6, 3 }
 0x154   : >> { %v1181_v34 = vrot.slane %v1168_v23, 4  ;;  %v1183_v0 = vrot.slane %v1168_v23, 5  ;;  %v1185_v14 = vrot.slane %v1168_v23, 6  ;;  %v1187_v24 = vrot.slane %v1168_v23, 7 }
 0x155   : >> { %v1210_v10 = vsel %vm1196_vm0, %v1172_v6, %v1190_v29 }
 0x156   : >> { %v1211_v12 = vsel %vm1198_vm1, %v1210_v10, %v1192_v41  ;;  %v1203_v19 = vsel %vm1202_vm3, %v1201_v60, %v1181_v34  ;;  %180 = sbr.rel (!%p178_p4) target bundleno = 18 (0x12), region = 76 }
 0x157   : >> { %v1212_v35 = vsel %vm1200_vm2, %v1211_v12, %v1194_v16  ;;  %v1205_v15 = vsel %vm1204_vm4, %v1203_v19, %v1183_v0 }
 0x158   : >> { %v1419_v49 = vpack.c.bf16 %v1212_v35, %v1212_v35  ;;  %v1207_v31 = vsel %vm1206_vm5, %v1205_v15, %v1185_v14 }
 0x159   : >> { %v1209_v54 = vsel %vm1208_vm6, %v1207_v31, %v1187_v24 }
 0x15a   : >> { %1226 = vst.msk [vmem:[%s1222_s9 + $0x4] sm:$0x3] %vm1225_vm7, %v1419_v49  ;;  %v1418_v44 = vpack.c.bf16 %v1209_v54, %v1209_v54 }
 0x15c   : >> { %1224 = vst.msk [vmem:[%s1222_s9] sm:$0xf] %vm1223_vm8, %v1418_v44 }
 0x15d PF: > { %s13_s12 = sadd.s32 1, %s1452_s12  }
 0x15e   : > { %p10_p5 = scmp.ge.s32.totalorder %s13_s12, 4  }
 0x160   :  { %12 = sbr.rel (!%p10_p5) target bundleno = 1 (0x1), region = 87 }

// kernel: classify_cnn_forward.4
= control target key start
LH: loop header
LB: loop body
LE: loop exit
PB: predicated region body
PF: predicated region fallthrough
CT: control target
= control target key end

     0   :  { %s3872_s12 = smov 0   ;;  %s4955_s0 = inlined_call_operand.vmem [shape: bf16[2,12,12,20], index: 0, kind: input, shape index: {}]   ;;  %s4956_s1 = inlined_call_operand.vmem [shape: bf16[500,50], index: 1, kind: input, shape index: {}]   ;;  %s4957_s2 = inlined_call_operand.vmem [shape: f32[1,50], index: 2, kind: input, shape index: {}]   ;;  %s4958_s3 = inlined_call_operand.vmem [shape: bf16[2,4,4,50], index: 3, kind: output, shape index: {}]  }
   0x1 LB: > { %s3054_s13 = sadd.s32 4294967295, %s3844_s12   ;;  %p3058_p0 = scmp.ge.s32.totalorder %s3844_s12, 1  ;;  %s3844_s12 = sphi %s3872_s12, %s13_s12  }
   0x2   : > { %p137_p1 = scmp.lt.s32.totalorder %s3844_s12, 3 }
   0x4   : > { %p138_p2 = pnand %p3058_p0, %p137_p1 }
   0x5   : > { %p161_p3 = scmp.lt.s32.totalorder (!%p138_p2), %s3054_s13, 1  ;;  %v3883_v0 = vld [vmem:[%s4956_s1] sm:$0xf] (!%p138_p2)  ;;  %v3888_v1 = vld [vmem:[%s4956_s1 + $0x4] sm:$0xf] (!%p138_p2)  ;;  %s4210_s28 = smov (!%p138_p2), 0  }
   0x6   : > { %141 = sbr.rel (%p138_p2) target bundleno = 483 (0x1e3), region = 32  ;;  %4988 = vst [vmem:[#allocation2_spill] sm:$0xff] (!%p138_p2), %v3883_v0  ;;  %4989 = vst [vmem:[#allocation3_spill] sm:$0xff] (!%p138_p2), %v3888_v1  ;;  %v3893_v2 = vld [vmem:[%s4956_s1 + $0x8] sm:$0xf] (!%p138_p2) }
   0x7   : > { %4990 = vst [vmem:[#allocation4_spill] sm:$0xff] (!%p138_p2), %v3893_v2  ;;  %v3898_v3 = vld [vmem:[%s4956_s1 + $0xc] sm:$0xf] (!%p138_p2)  ;;  %v3903_v4 = vld [vmem:[%s4956_s1 + $0x10] sm:$0xf] (!%p138_p2) }
   0x8   : > { %4991 = vst [vmem:[#allocation5_spill] sm:$0xff] (!%p138_p2), %v3898_v3  ;;  %4992 = vst [vmem:[#allocation6_spill] sm:$0xff] (!%p138_p2), %v3903_v4  ;;  %v3908_v5 = vld [vmem:[%s4956_s1 + $0x14] sm:$0xf] (!%p138_p2)  ;;  %v3913_v6 = vld [vmem:[%s4956_s1 + $0x18] sm:$0xf] (!%p138_p2) }
   0x9   : > { %4993 = vst [vmem:[#allocation7_spill] sm:$0xff] (!%p138_p2), %v3908_v5  ;;  %4994 = vst [vmem:[#allocation8_spill] sm:$0xff] (!%p138_p2), %v3913_v6  ;;  %v3918_v7 = vld [vmem:[%s4956_s1 + $0x1c] sm:$0xf] (!%p138_p2)  ;;  %v3923_v8 = vld [vmem:[%s4956_s1 + $0x20] sm:$0xf] (!%p138_p2) }
   0xa   : > { %4995 = vst [vmem:[#allocation9_spill] sm:$0xff] (!%p138_p2), %v3918_v7  ;;  %4996 = vst [vmem:[#allocation10_spill] sm:$0xff] (!%p138_p2), %v3923_v8  ;;  %v3928_v9 = vld [vmem:[%s4956_s1 + $0x24] sm:$0xf] (!%p138_p2)  ;;  %v3933_v10 = vld [vmem:[%s4956_s1 + $0x28] sm:$0xf] (!%p138_p2) }
   0xb   : > { %4997 = vst [vmem:[#allocation11_spill] sm:$0xff] (!%p138_p2), %v3928_v9  ;;  %4998 = vst [vmem:[#allocation12_spill] sm:$0xff] (!%p138_p2), %v3933_v10  ;;  %v3938_v11 = vld [vmem:[%s4956_s1 + $0x2c] sm:$0xf] (!%p138_p2)  ;;  %v3948_v12 = vld [vmem:[%s4956_s1 + $0x30] sm:$0xf] (!%p138_p2) }
   0xc   : > { %4999 = vst [vmem:[#allocation13_spill] sm:$0xff] (!%p138_p2), %v3938_v11  ;;  %5000 = vst [vmem:[#allocation14_spill] sm:$0xff] (!%p138_p2), %v3948_v12  ;;  %v3953_v13 = vld [vmem:[%s4956_s1 + $0x34] sm:$0xf] (!%p138_p2)  ;;  %v3958_v14 = vld [vmem:[%s4956_s1 + $0x38] sm:$0xf] (!%p138_p2) }
   0xd   : > { %s5144_s13 = smov (!%p161_p3, %s3054_s13), 1  ;;  %5001 = vst [vmem:[#allocation15_spill] sm:$0xff] %v3953_v13  ;;  %5002 = vst [vmem:[#allocation16_spill] sm:$0xff] %v3958_v14  ;;  %v3968_v15 = vld [vmem:[%s4956_s1 + $0x3c] sm:$0xf] }
   0xe   : > { %s3791_s7 = smul.u32 96, %s5144_s13  ;;  %s3233_s8 = sshll.u32 %s5144_s13, 3  ;;  %5003 = vst [vmem:[#allocation17_spill] sm:$0xff] %v3968_v15  ;;  %v3973_v16 = vld [vmem:[%s4956_s1 + $0x40] sm:$0xf] }
   0xf   : > { %s3943_s17 = scalar_lea.vmem %s4958_s3, %s3233_s8  ;;  %5004 = vst [vmem:[#allocation18_spill] sm:$0xff] %v3973_v16  ;;  %v3978_v17 = vld [vmem:[%s4956_s1 + $0x44] sm:$0xf]  ;;  %v3983_v18 = vld [vmem:[%s4956_s1 + $0x48] sm:$0xf] }
  0x10   : > { %s3963_s25 = scalar_lea.vmem %s4955_s0, %s3791_s7  ;;  %5005 = vst [vmem:[#allocation19_spill] sm:$0xff] %v3978_v17  ;;  %5006 = vst [vmem:[#allocation20_spill] sm:$0xff] %v3983_v18  ;;  %v3988_v19 = vld [vmem:[%s4956_s1 + $0x4c] sm:$0xf]  ;;  %v3993_v20 = vld [vmem:[%s4956_s1 + $0x50] sm:$0xf] }
  0x11   : > { %5007 = vst [vmem:[#allocation21_spill] sm:$0xff] %v3988_v19  ;;  %5008 = vst [vmem:[#allocation22_spill] sm:$0xff] %v3993_v20  ;;  %v3998_v21 = vld [vmem:[%s4956_s1 + $0x54] sm:$0xf]  ;;  %v4003_v22 = vld [vmem:[%s4956_s1 + $0x58] sm:$0xf] }
  0x12   : > { %5009 = vst [vmem:[#allocation23_spill] sm:$0xff] %v3998_v21  ;;  %5010 = vst [vmem:[#allocation24_spill] sm:$0xff] %v4003_v22  ;;  %v4008_v23 = vld [vmem:[%s4956_s1 + $0x5c] sm:$0xf]  ;;  %v4013_v24 = vld [vmem:[%s4956_s1 + $0x60] sm:$0xf] }
  0x13   : > { %5011 = vst [vmem:[#allocation25_spill] sm:$0xff] %v4008_v23  ;;  %5012 = vst [vmem:[#allocation26_spill] sm:$0xff] %v4013_v24  ;;  %v4018_v25 = vld [vmem:[%s4956_s1 + $0x64] sm:$0xf]  ;;  %v4023_v26 = vld [vmem:[%s4956_s1 + $0x68] sm:$0xf] }
  0x14   : > { %5013 = vst [vmem:[#allocation27_spill] sm:$0xff] %v4018_v25  ;;  %5014 = vst [vmem:[#allocation28_spill] sm:$0xff] %v4023_v26  ;;  %v4028_v27 = vld [vmem:[%s4956_s1 + $0x6c] sm:$0xf]  ;;  %v4033_v28 = vld [vmem:[%s4956_s1 + $0x70] sm:$0xf] }
  0x15   : > { %5015 = vst [vmem:[#allocation29_spill] sm:$0xff] %v4028_v27  ;;  %5016 = vst [vmem:[#allocation30_spill] sm:$0xff] %v4033_v28  ;;  %v4038_v29 = vld [vmem:[%s4956_s1 + $0x74] sm:$0xf]  ;;  %v4043_v30 = vld [vmem:[%s4956_s1 + $0x78] sm:$0xf] }
  0x16   : > { %5017 = vst [vmem:[#allocation31_spill] sm:$0xff] %v4038_v29  ;;  %5018 = vst [vmem:[#allocation32_spill] sm:$0xff] %v4043_v30  ;;  %v4048_v31 = vld [vmem:[%s4956_s1 + $0x7c] sm:$0xf]  ;;  %v4053_v32 = vld [vmem:[%s4956_s1 + $0x80] sm:$0xf] }
  0x17   : > { %5019 = vst [vmem:[#allocation33_spill] sm:$0xff] %v4048_v31  ;;  %5020 = vst [vmem:[#allocation34_spill] sm:$0xff] %v4053_v32  ;;  %v4058_v33 = vld [vmem:[%s4956_s1 + $0x84] sm:$0xf]  ;;  %v4063_v34 = vld [vmem:[%s4956_s1 + $0x88] sm:$0xf] }
  0x18   : > { %5021 = vst [vmem:[#allocation35_spill] sm:$0xff] %v4058_v33  ;;  %5022 = vst [vmem:[#allocation36_spill] sm:$0xff] %v4063_v34  ;;  %v4068_v35 = vld [vmem:[%s4956_s1 + $0x8c] sm:$0xf]  ;;  %v4073_v36 = vld [vmem:[%s4956_s1 + $0x90] sm:$0xf] }
  0x19   : > { %5023 = vst [vmem:[#allocation37_spill] sm:$0xff] %v4068_v35  ;;  %5024 = vst [vmem:[#allocation38_spill] sm:$0xff] %v4073_v36  ;;  %v4078_v37 = vld [vmem:[%s4956_s1 + $0x94] sm:$0xf]  ;;  %v4083_v38 = vld [vmem:[%s4956_s1 + $0x98] sm:$0xf] }
  0x1a   : > { %5025 = vst [vmem:[#allocation39_spill] sm:$0xff] %v4078_v37  ;;  %5026 = vst [vmem:[#allocation40_spill] sm:$0xff] %v4083_v38  ;;  %v4088_v39 = vld [vmem:[%s4956_s1 + $0x9c] sm:$0xf]  ;;  %v4093_v40 = vld [vmem:[%s4956_s1 + $0xa0] sm:$0xf] }
  0x1b   : > { %5027 = vst [vmem:[#allocation41_spill] sm:$0xff] %v4088_v39  ;;  %5028 = vst [vmem:[#allocation42_spill] sm:$0xff] %v4093_v40  ;;  %v4098_v41 = vld [vmem:[%s4956_s1 + $0xa4] sm:$0xf]  ;;  %v4103_v42 = vld [vmem:[%s4956_s1 + $0xa8] sm:$0xf] }
  0x1c   : > { %5029 = vst [vmem:[#allocation43_spill] sm:$0xff] %v4098_v41  ;;  %5030 = vst [vmem:[#allocation44_spill] sm:$0xff] %v4103_v42  ;;  %v4108_v43 = vld [vmem:[%s4956_s1 + $0xac] sm:$0xf]  ;;  %v4113_v44 = vld [vmem:[%s4956_s1 + $0xb0] sm:$0xf] }
  0x1d   : > { %5031 = vst [vmem:[#allocation45_spill] sm:$0xff] %v4108_v43  ;;  %5032 = vst [vmem:[#allocation46_spill] sm:$0xff] %v4113_v44  ;;  %v4118_v45 = vld [vmem:[%s4956_s1 + $0xb4] sm:$0xf]  ;;  %v4123_v46 = vld [vmem:[%s4956_s1 + $0xb8] sm:$0xf] }
  0x1e   : > { %5033 = vst [vmem:[#allocation47_spill] sm:$0xff] %v4118_v45  ;;  %5034 = vst [vmem:[#allocation48_spill] sm:$0xff] %v4123_v46  ;;  %v4128_v47 = vld [vmem:[%s4956_s1 + $0xbc] sm:$0xf]  ;;  %v4133_v48 = vld [vmem:[%s4956_s1 + $0xc0] sm:$0xf] }
  0x1f   : > { %5035 = vst [vmem:[#allocation49_spill] sm:$0xff] %v4128_v47  ;;  %5036 = vst [vmem:[#allocation50_spill] sm:$0xff] %v4133_v48  ;;  %v4138_v49 = vld [vmem:[%s4956_s1 + $0xc4] sm:$0xf]  ;;  %v4143_v50 = vld [vmem:[%s4956_s1 + $0xc8] sm:$0xf] }
  0x20   : > { %5037 = vst [vmem:[#allocation51_spill] sm:$0xff] %v4138_v49  ;;  %5038 = vst [vmem:[#allocation52_spill] sm:$0xff] %v4143_v50  ;;  %v4148_v51 = vld [vmem:[%s4956_s1 + $0xcc] sm:$0xf]  ;;  %v4153_v52 = vld [vmem:[%s4956_s1 + $0xd0] sm:$0xf] }
  0x21   : > { %5039 = vst [vmem:[#allocation53_spill] sm:$0xff] %v4148_v51  ;;  %5040 = vst [vmem:[#allocation54_spill] sm:$0xff] %v4153_v52  ;;  %v4158_v53 = vld [vmem:[%s4956_s1 + $0xd4] sm:$0xf]  ;;  %v4163_v54 = vld [vmem:[%s4956_s1 + $0xd8] sm:$0xf] }
  0x22   : > { %5041 = vst [vmem:[#allocation55_spill] sm:$0xff] %v4158_v53  ;;  %5042 = vst [vmem:[#allocation56_spill] sm:$0xff] %v4163_v54  ;;  %v4168_v55 = vld [vmem:[%s4956_s1 + $0xdc] sm:$0xf]  ;;  %v4173_v56 = vld [vmem:[%s4956_s1 + $0xe0] sm:$0xf] }
  0x23   : > { %5043 = vst [vmem:[#allocation57_spill] sm:$0xff] %v4168_v55  ;;  %5044 = vst [vmem:[#allocation58_spill] sm:$0xff] %v4173_v56  ;;  %v4178_v57 = vld [vmem:[%s4956_s1 + $0xe4] sm:$0xf]  ;;  %v4183_v58 = vld [vmem:[%s4956_s1 + $0xe8] sm:$0xf] }
  0x24   : > { %5045 = vst [vmem:[#allocation59_spill] sm:$0xff] %v4178_v57  ;;  %5046 = vst [vmem:[#allocation60_spill] sm:$0xff] %v4183_v58  ;;  %v4188_v59 = vld [vmem:[%s4956_s1 + $0xec] sm:$0xf]  ;;  %v4193_v60 = vld [vmem:[%s4956_s1 + $0xf0] sm:$0xf] }
  0x25   : > { %5047 = vst [vmem:[#allocation61_spill] sm:$0xff] %v4188_v59  ;;  %5048 = vst [vmem:[#allocation62_spill] sm:$0xff] %v4193_v60  ;;  %v4198_v61 = vld [vmem:[%s4956_s1 + $0xf4] sm:$0xf]  ;;  %v4203_v62 = vld [vmem:[%s4956_s1 + $0xf8] sm:$0x3] }
  0x26   : > { %5049 = vst [vmem:[#allocation63_spill] sm:$0xff] %v4198_v61  ;;  %5050 = vst [vmem:[#allocation64_spill] sm:$0xff] %v4203_v62  ;;  %v4208_v63 = vld [vmem:[%s4957_s2] ss:$0 sm:$0xff] }
  0x27   : > { %5051 = vst [vmem:[#allocation65_spill] sm:$0xff] %v4208_v63 }
  0x28 LB: >> { %v5052_v52 = vld [vmem:[#allocation54_spill] sm:$0xff]  ;;  %v5053_v47 = vld [vmem:[#allocation49_spill] sm:$0xff]  ;;  %v5054_v42 = vld [vmem:[#allocation44_spill] sm:$0xff]  ;;  %vm268_vm0 = vcmask 1045504   ;;  %v4964_v61 = vmov 0.0   ;;  %vm277_vm1 = vcmask 1041408   ;;  %s3848_s28 = sphi %s4210_s28, %s241_s28  }
  0x29   : >> { %v5055_v37 = vld [vmem:[#allocation39_spill] sm:$0xff]  ;;  %v5056_v32 = vld [vmem:[#allocation34_spill] sm:$0xff]  ;;  %v5057_v27 = vld [vmem:[#allocation29_spill] sm:$0xff]  ;;  %3391 = vmatprep.subr.bf16.mxu0 %v4964_v61  ;;  %3399 = vmatprep.subr.bf16.mxu1 %v4964_v61  ;;  %vm3851_vm2 = vmmov 0   ;;  %s3235_s29 = sshll.u32 %s3848_s28, 4  ;;  %vm273_vm3 = vcmask 162816  }
  0x2a   : >> { %v5058_v22 = vld [vmem:[#allocation24_spill] sm:$0xff]  ;;  %v5059_v17 = vld [vmem:[#allocation19_spill] sm:$0xff]  ;;  %v5060_v12 = vld [vmem:[#allocation14_spill] sm:$0xff]  ;;  %3403 = vmatprep.mubr.msk.bf16.mxu1 %vm3851_vm2, %v4964_v61  ;;  %3395 = vmatprep.mubr.msk.bf16.mxu0 %vm3851_vm2, %v4964_v61  ;;  %s4234_s30 = scalar_lea.vmem %s3963_s25, %s3235_s29  ;;  %vm2960_vm4 = vcmask 1040384   ;;  %vm2963_vm5 = vcmask 1042432   ;;  %s3230_s4 = sshll.u32 %s3848_s28, 1 }
  0x2b   : >> { %v5061_v7 = vld [vmem:[#allocation9_spill] sm:$0xff]  ;;  %v5062_v2 = vld [vmem:[#allocation4_spill] sm:$0xff]  ;;  %v5064_v4 = vld [vmem:[#allocation6_spill] sm:$0xff]  ;;  %s2967_s5 = scalar_lea.vmem %s3943_s17, %s3230_s4  ;;  %vm2968_vm6 = vcmask 402432   ;;  %s241_s28 = sadd.s32 1, %s3848_s28  }
  0x2c   : >> { %v5063_v3 = vld [vmem:[#allocation5_spill] sm:$0xff]  ;;  %v3067_v62 = vcombine.low %v5064_v4, %v5064_v4  ;;  %v5065_v1 = vld [vmem:[#allocation3_spill] sm:$0xff]  ;;  %v5066_v0 = vld [vmem:[#allocation2_spill] sm:$0xff]  ;;  %v3070_v55 = vcombine.low %v5062_v2, %v5062_v2  ;;  %p238_p4 = scmp.ge.s32.totalorder %s241_s28, 4  }
  0x2d   : >> { %v3066_v60 = vcombine.low %v5062_v2, %v5063_v3  ;;  %v4223_v63 = vcombine.low %v5066_v0, %v5065_v1  ;;  %v5068_v8 = vld [vmem:[#allocation10_spill] sm:$0xff]  ;;  %v5069_v9 = vld [vmem:[#allocation11_spill] sm:$0xff]  ;;  %v5072_v14 = vld [vmem:[#allocation16_spill] sm:$0xff] }
  0x2e   : >> { %v270_v3 = vrot.slane %v3067_v62, 2  ;;  %v3078_v62 = vcombine.low %v5069_v9, %v5069_v9  ;;  %v4245_v1 = vsel %vm277_vm1, %v3070_v55, 0  ;;  %v246_v2 = vld [vmem:[%s4234_s30] sm:$0xf]  ;;  %v247_v4 = vld [vmem:[%s4234_s30 + $0x4] sm:$0x1] }
  0x2f   : >> { %5067 = vst [vmem:[#allocation66_spill] sm:$0xff] %v4223_v63  ;;  %v269_v56 = vrot.slane %v3066_v60, 2  ;;  %3400 = vmatpush3.bf16.msra.mxu1 %v4223_v63  ;;  %v3077_v60 = vcombine.low %v5061_v7, %v5068_v8  ;;  %v3065_v63 = vcombine.low %v246_v2, %v247_v4  ;;  %v374_v50 = vld [vmem:[%s4234_s30] sm:$0xe]  ;;  %v4252_v51 = vld [vmem:[%s4234_s30 + $0x4] sm:$0x3] }
  0x30   : >> { %3401 = vmatprep.subr.bf16.mxu1 %v4964_v61  ;;  %v4256_v8 = vsel %vm277_vm1, %v270_v3, 0  ;;  %v454_v57 = vrot.slane %v3078_v62, 2  ;;  %v5071_v13 = vld [vmem:[#allocation15_spill] sm:$0xff]  ;;  %v5073_v6 = vld [vmem:[#allocation8_spill] sm:$0xff]  ;;  %v5076_v19 = vld [vmem:[#allocation21_spill] sm:$0xff] }
  0x31   : >> { %v4241_v0 = vsel %vm268_vm0, %v269_v56, %v270_v3  ;;  %v3076_v56 = vcombine.low %v374_v50, %v4252_v51  ;;  %v453_v9 = vrot.slane %v3077_v60, 2  ;;  %v254_v55 = vshrl.u32 %v3065_v63, 16  ;;  %v5074_v5 = vld [vmem:[#allocation7_spill] sm:$0xff]  ;;  %v5075_v18 = vld [vmem:[#allocation20_spill] sm:$0xff]  ;;  %v5077_v11 = vld [vmem:[#allocation13_spill] sm:$0xff] }
  0x32   : >> { %5070 = vst [vmem:[#allocation67_spill] sm:$0xff] %v4241_v0  ;;  %3392 = vmatpush3.bf16.msra.mxu0 %v4241_v0  ;;  %v256_v59 = vshll.u32 %v3065_v63, 16  ;;  %v3087_v45 = vcombine.low %v5060_v12, %v5071_v13  ;;  %v3088_v3 = vcombine.low %v5072_v14, %v5072_v14  ;;  %v3074_v14 = vcombine.low %v5061_v7, %v5061_v7  ;;  %v5078_v10 = vld [vmem:[#allocation12_spill] sm:$0xff]  ;;  %v5079_v23 = vld [vmem:[#allocation25_spill] sm:$0xff]  ;;  %v5080_v24 = vld [vmem:[#allocation26_spill] sm:$0xff] }
  0x33   : >> { %3393 = vmatprep.subr.bf16.mxu0 %v4964_v61  ;;  %3402 = vmatpush3.bf16.msra.mxu1 %v4245_v1  ;;  %v440_v58 = vshrl.u32 %v3076_v56, 16  ;;  %v443_v0 = vshll.u32 %v3076_v56, 16  ;;  %v4267_v60 = vsel %vm268_vm0, %v453_v9, %v454_v57  ;;  %v4273_v56 = vcombine.low %v5074_v5, %v5073_v6  ;;  %v5081_v16 = vld [vmem:[#allocation18_spill] sm:$0xff]  ;;  %v5082_v15 = vld [vmem:[#allocation17_spill] sm:$0xff]  ;;  %v5085_v29 = vld [vmem:[#allocation31_spill] sm:$0xff] }
  0x34   : >> { %3415 = vmatprep.subr.bf16.mxu1 %v4964_v61  ;;  %v258_v46 = vrot.slane %v256_v59, 1  ;;  %v577_v9 = vrot.slane %v3088_v3, 2  ;;  %v4290_v59 = vsel %vm277_vm1, %v3074_v14, 0  ;;  %v4306_v14 = vcombine.low %v5078_v10, %v5077_v11  ;;  %v3091_v3 = vld [vmem:[%s4234_s30 + $0xc] sm:$0x1]  ;;  %v5084_v28 = vld [vmem:[#allocation30_spill] sm:$0xff] }
  0x35   : >> { %v442_v63 = vrot.slane %v440_v58, 1  ;;  %v445_v62 = vrot.slane %v443_v0, 2  ;;  %v576_v0 = vrot.slane %v3087_v45, 2  ;;  %v3072_v58 = vcombine.low %v374_v50, %v247_v4  ;;  %v5086_v21 = vld [vmem:[#allocation23_spill] sm:$0xff]  ;;  %v5087_v20 = vld [vmem:[#allocation22_spill] sm:$0xff]  ;;  %v5089_v34 = vld [vmem:[#allocation36_spill] sm:$0xff] }
  0x36   : >> { %3394 = vmatpush3.bf16.msra.mxu0 %v4256_v8  ;;  %3404 = vmatmul.mubr.msk.bf16.vlgmr.msra.gmra.mrb[0].mxu1 %vm273_vm3, %v246_v2  ;;  %v259_v13 = vor.u32 %v258_v46, %v254_v55  ;;  %v4282_v2 = vsel %vm277_vm1, %v454_v57, 0  ;;  %v3099_v45 = vcombine.low %v5076_v19, %v5076_v19  ;;  %v504_v57 = vld [vmem:[%s4234_s30] sm:$0xc]  ;;  %v3090_v55 = vld [vmem:[%s4234_s30 + $0x8] sm:$0xf]  ;;  %v5083_v7 = vmov 0.0  }
  0x37   : >> { %3407 = vmatprep.subr.bf16.mxu0 %v4964_v61  ;;  %3416 = vmatpush3.bf16.msra.mxu1 %v4267_v60  ;;  %v446_v46 = vor.u32 %v445_v62, %v442_v63  ;;  %v4295_v4 = vsel %vm268_vm0, %v576_v0, %v577_v9  ;;  %v378_v50 = vrot.slane %v3072_v58, 1  ;;  %v3082_v63 = vcombine.low %v5060_v12, %v5060_v12  ;;  %v5088_v33 = vld [vmem:[#allocation35_spill] sm:$0xff]  ;;  %v5090_v26 = vld [vmem:[#allocation28_spill] sm:$0xff]  ;;  %v5093_v39 = vld [vmem:[#allocation41_spill] sm:$0xff] }
  0x38   : >> { %3419 = vmatprep.mubr.msk.bf16.mxu1 %vm3851_vm2, %v4964_v61  ;;  %3417 = vmatprep.subr.bf16.mxu1 %v4964_v61  ;;  %v4316_v62 = vsel %vm277_vm1, %v577_v9, 0  ;;  %v709_v58 = vrot.slane %v3099_v45, 2  ;;  %v3092_v5 = vcombine.low %v3090_v55, %v3091_v3  ;;  %v3096_v45 = vld [vmem:[%s4234_s30 + $0x8] sm:$0xe]  ;;  %v4391_v19 = vcombine.low %v5087_v20, %v5086_v21  ;;  %v5092_v38 = vld [vmem:[#allocation40_spill] sm:$0xff]  ;;  %v5094_v31 = vld [vmem:[#allocation33_spill] sm:$0xff] }
  0x39   : >> { %3396 = vmatmul.mubr.msk.bf16.vlgmr.msra.gmra.mrb[0].mxu0 %vm273_vm3, %v259_v13  ;;  %v3098_v13 = vcombine.low %v5059_v17, %v5075_v18  ;;  %v4327_v9 = vsel %vm277_vm1, %v3082_v63, 0  ;;  %v4347_v63 = vcombine.low %v5082_v15, %v5081_v16  ;;  %v5091_v25 = vld [vmem:[#allocation27_spill] sm:$0xff]  ;;  %v5095_v30 = vld [vmem:[#allocation32_spill] sm:$0xff]  ;;  %v5098_v43 = vld [vmem:[#allocation45_spill] sm:$0xff] }
  0x3a   : >> { %3408 = vmatpush3.bf16.msra.mxu0 %v4273_v56  ;;  %3411 = vmatprep.mubr.msk.bf16.mxu0 %vm3851_vm2, %v4964_v61  ;;  %v637_v6 = vshll.u32 %v3092_v5, 16  ;;  %v4356_v10 = vsel %vm277_vm1, %v709_v58, 0  ;;  %v635_v12 = vshrl.u32 %v3092_v5, 16  ;;  %v5099_v44 = vld [vmem:[#allocation46_spill] sm:$0xff]  ;;  %v5101_v35 = vld [vmem:[#allocation37_spill] sm:$0xff]  ;;  %v5106_v49 = vld [vmem:[#allocation51_spill] sm:$0xff] }
  0x3b   : >> { %3409 = vmatprep.subr.bf16.mxu0 %v4964_v61  ;;  %3418 = vmatpush3.bf16.msra.mxu1 %v4282_v2  ;;  %v708_v0 = vrot.slane %v3098_v13, 2  ;;  %v4331_v13 = vld [vmem:[%s4234_s30 + $0x8] sm:$0xf]  ;;  %v5100_v36 = vld [vmem:[#allocation38_spill] sm:$0xff]  ;;  %v5114_v54 = vld [vmem:[#allocation56_spill] sm:$0xff] }
  0x3c   : >> { %3431 = vmatprep.subr.bf16.mxu1 %v4964_v61  ;;  %v639_v15 = vrot.slane %v637_v6, 1  ;;  %v3120_v6 = vcombine.low %v5057_v27, %v5084_v28  ;;  %v5105_v48 = vld [vmem:[#allocation50_spill] sm:$0xff]  ;;  %v5107_v41 = vld [vmem:[#allocation43_spill] sm:$0xff] }
  0x3d   : >> { %v5108_v40 = vld [vmem:[#allocation42_spill] sm:$0xff]  ;;  %v5113_v53 = vld [vmem:[#allocation55_spill] sm:$0xff] }
  0x3e   : >> { %3410 = vmatpush3.bf16.msra.mxu0 %v4290_v59  ;;  %3420 = vmatmul.mubr.msk.bf16.vlgmr.msra.gmra.mrb[4].mxu1 %vm273_vm3, %v446_v46  ;;  %v3080_v46 = vcombine.low %v504_v57, %v4252_v51  ;;  %v4336_v51 = vsel %vm268_vm0, %v708_v0, %v709_v58  ;;  %v3109_v57 = vcombine.low %v5080_v24, %v5080_v24  ;;  %v3101_v0 = vld [vmem:[%s4234_s30 + $0xc] sm:$0x3]  ;;  %v3106_v58 = vld [vmem:[%s4234_s30 + $0x8] sm:$0xc] }
  0x3f   : >> { %3423 = vmatprep.subr.bf16.mxu0 %v4964_v61  ;;  %3432 = vmatpush3.bf16.msra.mxu1 %v4295_v4  ;;  %v3102_v16 = vcombine.low %v3096_v45, %v3101_v0 }
  0x40   : >> { %3433 = vmatprep.subr.bf16.mxu1 %v4964_v61  ;;  %3435 = vmatprep.mubr.msk.bf16.mxu1 %vm3851_vm2, %v4964_v61  ;;  %v508_v55 = vrot.slane %v3080_v46, 2  ;;  %v3094_v46 = vcombine.low %v5059_v17, %v5059_v17  ;;  %v839_v11 = vrot.slane %v3109_v57, 2  ;;  %v4374_v57 = vld [vmem:[%s4234_s30 + $0x14] sm:$0x1] }
  0x41   : >> { %3412 = vmatmul.mubr.msk.bf16.vlgmr.msra.gmra.mrb[4].mxu0 %vm273_vm3, %v378_v50  ;;  %v3108_v50 = vcombine.low %v5058_v22, %v5079_v23 }
  0x42   : >> { %3424 = vmatpush3.bf16.msra.mxu0 %v4306_v14  ;;  %3427 = vmatprep.mubr.msk.bf16.mxu0 %vm3851_vm2, %v4964_v61  ;;  %v4369_v18 = vsel %vm277_vm1, %v3094_v46, 0  ;;  %v767_v46 = vshll.u32 %v3102_v16, 16 }
  0x43   : >> { %3425 = vmatprep.subr.bf16.mxu0 %v4964_v61  ;;  %3434 = vmatpush3.bf16.msra.mxu1 %v4316_v62 }
  0x44   : >> { %3447 = vmatprep.subr.bf16.mxu1 %v4964_v61  ;;  %v3097_v61 = vcombine.low %v3096_v45, %v3091_v3  ;;  %v838_v3 = vrot.slane %v3108_v50, 2  ;;  %v3117_v50 = vld [vmem:[%s4234_s30 + $0x10] sm:$0xf]  ;;  %v4384_v45 = vor.u32 %v639_v15, %v635_v12  ;;  %v3104_v12 = vcombine.low %v5058_v22, %v5058_v22 }
  0x45   : >> { %v3119_v23 = vcombine.low %v3117_v50, %v4374_v57  ;;  %v4400_v15 = vsel %vm277_vm1, %v839_v11, 0  ;;  %v769_v50 = vrot.slane %v767_v46, 2  ;;  %v3130_v46 = vcombine.low %v5056_v32, %v5088_v33 }
  0x46   : >> { %3426 = vmatpush3.bf16.msra.mxu0 %v4327_v9  ;;  %3436 = vmatmul.mubr.msk.bf16.vlgmr.msra.gmra.mrb[8].mxu1 %vm273_vm3, %v4331_v13  ;;  %v4364_v17 = vrot.slane %v3097_v61, 1  ;;  %v4378_v5 = vsel %vm268_vm0, %v838_v3, %v839_v11  ;;  %v3121_v61 = vcombine.low %v5085_v29, %v5085_v29  ;;  %v3107_v3 = vcombine.low %v3106_v58, %v3101_v0 }
  0x47   : >> { %3439 = vmatprep.subr.bf16.mxu0 %v5083_v7  ;;  %3448 = vmatpush3.bf16.msra.mxu1 %v4336_v51  ;;  %v960_v21 = vshll.u32 %v3119_v23, 16  ;;  %v4413_v11 = vsel %vm277_vm1, %v3104_v12, 0  ;;  %v4435_v12 = vcombine.low %v5091_v25, %v5090_v26  ;;  %v958_v24 = vshrl.u32 %v3119_v23, 16 }
  0x48   : >> { %3449 = vmatprep.subr.bf16.mxu1 %v5083_v7  ;;  %3451 = vmatprep.mubr.msk.bf16.mxu1 %vm3851_vm2, %v5083_v7  ;;  %v971_v0 = vrot.slane %v3121_v61, 2  ;;  %v4409_v20 = vrot.slane %v3107_v3, 2  ;;  %v4418_v61 = vld [vmem:[%s4234_s30 + $0x14] sm:$0x3]  ;;  %v3131_v3 = vcombine.low %v5089_v34, %v5089_v34  ;;  %v1100_v25 = vrot.slane %v3130_v46, 2 }
  0x49   : >> { %3428 = vmatmul.mubr.msk.bf16.vlgmr.msra.gmra.mrb[8].mxu0 %vm273_vm3, %v508_v55  ;;  %v764_v55 = vshrl.u32 %v3102_v16, 16  ;;  %v970_v16 = vrot.slane %v3120_v6, 2  ;;  %v3123_v6 = vld [vmem:[%s4234_s30 + $0x10] sm:$0xe]  ;;  %v3126_v29 = vcombine.low %v5056_v32, %v5056_v32 }
  0x4a   : >> { %3440 = vmatpush3.bf16.msra.mxu0 %v4347_v63  ;;  %3443 = vmatprep.mubr.msk.bf16.mxu0 %vm3851_vm2, %v5083_v7  ;;  %v3129_v28 = vcombine.low %v3123_v6, %v4418_v61  ;;  %v1101_v23 = vrot.slane %v3131_v3, 2  ;;  %v3141_v3 = vcombine.low %v5055_v37, %v5092_v38 }
  0x4b   : >> { %3441 = vmatprep.subr.bf16.mxu0 %v5083_v7  ;;  %3450 = vmatpush3.bf16.msra.mxu1 %v4356_v10  ;;  %v766_v58 = vrot.slane %v764_v55, 1  ;;  %v4422_v55 = vsel %vm268_vm0, %v970_v16, %v971_v0  ;;  %v962_v16 = vrot.slane %v960_v21, 1 }
  0x4c   : >> { %3463 = vmatprep.subr.bf16.mxu1 %v5083_v7  ;;  %v1087_v26 = vshrl.u32 %v3129_v28, 16  ;;  %v4462_v46 = vsel %vm268_vm0, %v1100_v25, %v1101_v23  ;;  %v4484_v33 = vsel %vm277_vm1, %v1101_v23, 0  ;;  %v1223_v34 = vrot.slane %v3141_v3, 2 }
  0x4d   : >> { %v4428_v22 = vor.u32 %v769_v50, %v766_v58  ;;  %v3115_v58 = vcombine.low %v5057_v27, %v5057_v27  ;;  %v4444_v50 = vsel %vm277_vm1, %v971_v0, 0  ;;  %v4453_v21 = vor.u32 %v962_v16, %v958_v24  ;;  %5096 = vst [vmem:[#allocation68_spill] sm:$0xff] %v4484_v33 }
  0x4e   : >> { %3442 = vmatpush3.bf16.msra.mxu0 %v4369_v18  ;;  %3452 = vmatmul.mubr.msk.bf16.vlgmr.msra.gmra.mrb[12].mxu1 %vm273_vm3, %v4364_v17  ;;  %v1090_v27 = vshll.u32 %v3129_v28, 16  ;;  %v3142_v24 = vcombine.low %v5093_v39, %v5093_v39  ;;  %v4472_v28 = vld [vmem:[%s4234_s30 + $0x10] sm:$0xf]  ;;  %v4476_v16 = vcombine.low %v5095_v30, %v5094_v31  ;;  %v4498_v23 = vsel %vm277_vm1, %v3126_v29, 0 }
  0x4f   : >> { %3455 = vmatprep.subr.bf16.mxu0 %v5083_v7  ;;  %3464 = vmatpush3.bf16.msra.mxu1 %v4378_v5  ;;  %v4457_v0 = vsel %vm277_vm1, %v3115_v58, 0  ;;  %v1089_v58 = vrot.slane %v1087_v26, 1  ;;  %v3124_v26 = vcombine.low %v3123_v6, %v4374_v57  ;;  %v3152_v6 = vcombine.low %v5054_v42, %v5098_v43  ;;  %v3155_v43 = vld [vmem:[%s4234_s30 + $0x1c] sm:$0x3] }
  0x50   : >> { %3465 = vmatprep.subr.bf16.mxu1 %v5083_v7  ;;  %3467 = vmatprep.mubr.msk.bf16.mxu1 %vm3851_vm2, %v5083_v7  ;;  %v1092_v25 = vrot.slane %v1090_v27, 2  ;;  %v1224_v30 = vrot.slane %v3142_v24, 2  ;;  %v3153_v3 = vcombine.low %v5099_v44, %v5099_v44  ;;  %v4516_v29 = vcombine.low %v5101_v35, %v5100_v36 }
  0x51   : >> { %3444 = vmatmul.mubr.msk.bf16.vlgmr.msra.gmra.mrb[12].mxu0 %vm273_vm3, %v4384_v45  ;;  %v4509_v24 = vrot.slane %v3124_v26, 1  ;;  %v3136_v26 = vcombine.low %v5055_v37, %v5055_v37  ;;  %v1355_v32 = vrot.slane %v3152_v6, 2  ;;  %v4543_v6 = vld [vmem:[%s4234_s30 + $0x18] sm:$0xf]  ;;  %v4561_v39 = vcombine.low %v5108_v40, %v5107_v41 }
  0x52   : >> { %3456 = vmatpush3.bf16.msra.mxu0 %v4391_v19  ;;  %3459 = vmatprep.mubr.msk.bf16.mxu0 %vm3851_vm2, %v5083_v7  ;;  %v4494_v27 = vor.u32 %v1092_v25, %v1089_v58  ;;  %v4503_v57 = vsel %vm268_vm0, %v1223_v34, %v1224_v30  ;;  %v3133_v58 = vld [vmem:[%s4234_s30 + $0x10] sm:$0xc]  ;;  %v3144_v34 = vld [vmem:[%s4234_s30 + $0x18] sm:$0xf]  ;;  %v3145_v25 = vld [vmem:[%s4234_s30 + $0x1c] sm:$0x1] }
  0x53   : >> { %3457 = vmatprep.subr.bf16.mxu0 %v5083_v7  ;;  %3466 = vmatpush3.bf16.msra.mxu1 %v4400_v15  ;;  %5097 = vst [vmem:[#allocation69_spill] sm:$0xff] %v4503_v57  ;;  %v4527_v31 = vsel %vm277_vm1, %v1224_v30, 0  ;;  %v1356_v35 = vrot.slane %v3153_v3, 2  ;;  %v3134_v36 = vcombine.low %v3133_v58, %v4418_v61  ;;  %v3146_v38 = vcombine.low %v3144_v34, %v3145_v25  ;;  %v3150_v3 = vld [vmem:[%s4234_s30 + $0x18] sm:$0xe] }
  0x54   : >> { %3479 = vmatprep.subr.bf16.mxu1 %v5083_v7  ;;  %5102 = vst [vmem:[#allocation70_spill] sm:$0xff] %v4527_v31  ;;  %v4539_v30 = vsel %vm277_vm1, %v3136_v26, 0  ;;  %v3162_v58 = vcombine.low %v5053_v47, %v5105_v48  ;;  %v3163_v34 = vcombine.low %v5106_v49, %v5106_v49  ;;  %5109 = vst [vmem:[#allocation73_spill] sm:$0xff] %v4561_v39 }
  0x55   : >> { %5103 = vst [vmem:[#allocation71_spill] sm:$0xff] %v4539_v30  ;;  %v4548_v61 = vsel %vm268_vm0, %v1355_v32, %v1356_v35  ;;  %v4554_v37 = vrot.slane %v3134_v36, 2  ;;  %v1284_v26 = vshll.u32 %v3146_v38, 16  ;;  %v3151_v32 = vcombine.low %v3150_v3, %v3145_v25 }
  0x56   : >> { %3458 = vmatpush3.bf16.msra.mxu0 %v4413_v11  ;;  %3468 = vmatmul.mubr.msk.bf16.vlgmr.msra.gmra.mrb[16].mxu1 %vm273_vm3, %v4409_v20  ;;  %5104 = vst [vmem:[#allocation72_spill] sm:$0xff] %v4548_v61  ;;  %v3148_v36 = vcombine.low %v5054_v42, %v5054_v42  ;;  %v4570_v44 = vsel %vm277_vm1, %v1356_v35, 0  ;;  %v1485_v25 = vrot.slane %v3162_v58, 2  ;;  %v1486_v40 = vrot.slane %v3163_v34, 2  ;;  %v3160_v35 = vld [vmem:[%s4234_s30 + $0x18] sm:$0xc] }
  0x57   : >> { %3471 = vmatprep.subr.bf16.mxu0 %v5083_v7  ;;  %3480 = vmatpush3.bf16.msra.mxu1 %v4422_v55  ;;  %5110 = vst [vmem:[#allocation74_spill] sm:$0xff] %v4570_v44  ;;  %v1282_v41 = vshrl.u32 %v3146_v38, 16  ;;  %v1286_v48 = vrot.slane %v1284_v26, 1  ;;  %v3156_v49 = vcombine.low %v3150_v3, %v3155_v43  ;;  %v4579_v42 = vrot.slane %v3151_v32, 1  ;;  %v3171_v58 = vld [vmem:[%s4234_s30 + $0x20] sm:$0xf] }
  0x58   : >> { %3481 = vmatprep.subr.bf16.mxu1 %v5083_v7  ;;  %3483 = vmatprep.mubr.msk.bf16.mxu1 %vm3851_vm2, %v5083_v7  ;;  %v4589_v34 = vld [vmem:[%s4234_s30 + $0x24] sm:$0x1]  ;;  %v4593_v38 = vsel %vm268_vm0, %v1485_v25, %v1486_v40  ;;  %v3174_v3 = vcombine.low %v5052_v52, %v5113_v53  ;;  %v3175_v26 = vcombine.low %v5114_v54, %v5114_v54  ;;  %v5121_v53 = vld [vmem:[#allocation61_spill] sm:$0xff] }
  0x59   : >> { %3460 = vmatmul.mubr.msk.bf16.vlgmr.msra.gmra.mrb[16].mxu0 %vm273_vm3, %v4428_v22  ;;  %5112 = vst [vmem:[#allocation76_spill] sm:$0xff] %v4593_v38  ;;  %v4599_v32 = vor.u32 %v1286_v48, %v1282_v41  ;;  %v3161_v25 = vcombine.low %v3160_v35, %v3155_v43  ;;  %v3158_v41 = vcombine.low %v5053_v47, %v5053_v47  ;;  %v4615_v48 = vsel %vm277_vm1, %v1486_v40, 0  ;;  %v5120_v47 = vld [vmem:[#allocation59_spill] sm:$0xff] }
  0x5a   : >> { %3472 = vmatpush3.bf16.msra.mxu0 %v4435_v12  ;;  %3475 = vmatprep.mubr.msk.bf16.mxu0 %vm3851_vm2, %v5083_v7  ;;  %5118 = vst [vmem:[#allocation78_spill] sm:$0xff] %v4615_v48  ;;  %v1617_v43 = vrot.slane %v3174_v3, 2  ;;  %v3177_v3 = vld [vmem:[%s4234_s30 + $0x20] sm:$0xe]  ;;  %v3185_v54 = vcombine.low %v5121_v53, %v5121_v53  ;;  %v3169_v53 = vcombine.low %v5052_v52, %v5052_v52 }
  0x5b   : >> { %3473 = vmatprep.subr.bf16.mxu0 %v5083_v7  ;;  %3482 = vmatpush3.bf16.msra.mxu1 %v4444_v50  ;;  %v4624_v35 = vrot.slane %v3161_v25, 2  ;;  %v4628_v40 = vsel %vm277_vm1, %v3158_v41, 0  ;;  %v5122_v41 = vld [vmem:[#allocation53_spill] sm:$0xff] }
  0x5c   : >> { %3495 = vmatprep.subr.bf16.mxu1 %v5083_v7 }
  0x5e   : >> { %3474 = vmatpush3.bf16.msra.mxu0 %v4457_v0  ;;  %3484 = vmatmul.mubr.msk.bf16.vlgmr.msra.gmra.mrb[20].mxu1 %vm273_vm3, %v4453_v21 }
  0x5f   : >> { %3487 = vmatprep.subr.bf16.mxu0 %v5083_v7  ;;  %3496 = vmatpush3.bf16.msra.mxu1 %v4462_v46 }
  0x60   : >> { %3497 = vmatprep.subr.bf16.mxu1 %v5083_v7  ;;  %3499 = vmatprep.mubr.msk.bf16.mxu1 %vm3851_vm2, %v5083_v7 }
  0x61   : >> { %3476 = vmatmul.mubr.msk.bf16.vlgmr.msra.gmra.mrb[20].mxu0 %vm273_vm3, %v4472_v28 }
  0x62   : >> { %3488 = vmatpush3.bf16.msra.mxu0 %v4476_v16  ;;  %3491 = vmatprep.mubr.msk.bf16.mxu0 %vm3851_vm2, %v5083_v7 }
  0x63   : >> { %3489 = vmatprep.subr.bf16.mxu0 %v5083_v7  ;;  %3498 = vmatpush3.bf16.msra.mxu1 %v4484_v33  ;;  %v3173_v33 = vcombine.low %v3171_v58, %v4589_v34 }
  0x64   : >> { %3511 = vmatprep.subr.bf16.mxu1 %v5083_v7 }
  0x65   : >> { %v1607_v58 = vshll.u32 %v3173_v33, 16 }
  0x66   : >> { %3490 = vmatpush3.bf16.msra.mxu0 %v4498_v23  ;;  %3500 = vmatmul.mubr.msk.bf16.vlgmr.msra.gmra.mrb[24].mxu1 %vm273_vm3, %v4494_v27 }
  0x67   : >> { %3503 = vmatprep.subr.bf16.mxu0 %v5083_v7  ;;  %3512 = vmatpush3.bf16.msra.mxu1 %v4503_v57  ;;  %v5116_v57 = vld [vmem:[#allocation47_spill] sm:$0xff] }
  0x68   : >> { %3513 = vmatprep.subr.bf16.mxu1 %v5083_v7  ;;  %3515 = vmatprep.mubr.msk.bf16.mxu1 %vm3851_vm2, %v5083_v7 }
  0x69   : >> { %3492 = vmatmul.mubr.msk.bf16.vlgmr.msra.gmra.mrb[24].mxu0 %vm273_vm3, %v4509_v24 }
  0x6a   : >> { %3504 = vmatpush3.bf16.msra.mxu0 %v4516_v29  ;;  %3507 = vmatprep.mubr.msk.bf16.mxu0 %vm3851_vm2, %v5083_v7 }
  0x6b   : >> { %3505 = vmatprep.subr.bf16.mxu0 %v5083_v7  ;;  %3514 = vmatpush3.bf16.msra.mxu1 %v4527_v31  ;;  %v1414_v31 = vshll.u32 %v3156_v49, 16 }
  0x6c   : >> { %3527 = vmatprep.subr.bf16.mxu1 %v5083_v7 }
  0x6e   : >> { %3506 = vmatpush3.bf16.msra.mxu0 %v4539_v30  ;;  %3516 = vmatmul.mubr.msk.bf16.vlgmr.msra.gmra.mrb[28].mxu1 %vm273_vm3, %v4543_v6 }
  0x6f   : >> { %3519 = vmatprep.subr.bf16.mxu0 %v5083_v7  ;;  %3528 = vmatpush3.bf16.msra.mxu1 %v4548_v61  ;;  %v4584_v61 = vsel %vm277_vm1, %v3148_v36, 0  ;;  %v1411_v36 = vshrl.u32 %v3156_v49, 16 }
  0x70   : >> { %3529 = vmatprep.subr.bf16.mxu1 %v5083_v7  ;;  %3531 = vmatprep.mubr.msk.bf16.mxu1 %vm3851_vm2, %v5083_v7  ;;  %5111 = vst [vmem:[#allocation75_spill] sm:$0xff] %v4584_v61 }
  0x71   : >> { %3508 = vmatmul.mubr.msk.bf16.vlgmr.msra.gmra.mrb[28].mxu0 %vm273_vm3, %v4554_v37  ;;  %v1413_v49 = vrot.slane %v1411_v36, 1  ;;  %v5119_v36 = vld [vmem:[#allocation60_spill] sm:$0xff] }
  0x72   : >> { %3520 = vmatpush3.bf16.msra.mxu0 %v4561_v39  ;;  %3523 = vmatprep.mubr.msk.bf16.mxu0 %vm3851_vm2, %v5083_v7  ;;  %v3184_v25 = vcombine.low %v5120_v47, %v5119_v36 }
  0x73   : >> { %3521 = vmatprep.subr.bf16.mxu0 %v5083_v7  ;;  %3530 = vmatpush3.bf16.msra.mxu1 %v4570_v44  ;;  %v5115_v44 = vld [vmem:[#allocation48_spill] sm:$0xff] }
  0x74   : >> { %3543 = vmatprep.subr.bf16.mxu1 %v5083_v7  ;;  %v4606_v39 = vcombine.low %v5116_v57, %v5115_v44  ;;  %v1618_v44 = vrot.slane %v3175_v26, 2  ;;  %v1416_v57 = vrot.slane %v1414_v31, 2  ;;  %v4633_v26 = vld [vmem:[%s4234_s30 + $0x24] sm:$0x3] }
  0x75   : >> { %v3183_v30 = vcombine.low %v3177_v3, %v4633_v26 }
  0x76   : >> { %3522 = vmatpush3.bf16.msra.mxu0 %v4584_v61  ;;  %3532 = vmatmul.mubr.msk.bf16.vlgmr.msra.gmra.mrb[32].mxu1 %vm273_vm3, %v4579_v42  ;;  %5117 = vst [vmem:[#allocation77_spill] sm:$0xff] %v4606_v39  ;;  %v4637_v31 = vsel %vm268_vm0, %v1617_v43, %v1618_v44  ;;  %v1605_v61 = vshrl.u32 %v3173_v33, 16  ;;  %v1609_v43 = vrot.slane %v1607_v58, 1  ;;  %v1747_v33 = vrot.slane %v3184_v25, 2  ;;  %v5125_v25 = vld [vmem:[#allocation57_spill] sm:$0xff] }
  0x77   : >> { %3535 = vmatprep.subr.bf16.mxu0 %v5083_v7  ;;  %3544 = vmatpush3.bf16.msra.mxu1 %v4593_v38  ;;  %v4643_v38 = vor.u32 %v1416_v57, %v1413_v49  ;;  %v4659_v49 = vsel %vm277_vm1, %v1618_v44, 0  ;;  %v1734_v58 = vshrl.u32 %v3183_v30, 16  ;;  %v1737_v36 = vshll.u32 %v3183_v30, 16  ;;  %v5124_v30 = vld [vmem:[#allocation58_spill] sm:$0xff] }
  0x78   : >> { %3545 = vmatprep.subr.bf16.mxu1 %v5083_v7  ;;  %3547 = vmatprep.mubr.msk.bf16.mxu1 %vm3851_vm2, %v5083_v7  ;;  %v4668_v57 = vor.u32 %v1609_v43, %v1605_v61  ;;  %v4672_v44 = vsel %vm277_vm1, %v3169_v53, 0  ;;  %v4683_v61 = vld [vmem:[%s4234_s30 + $0x20] sm:$0xf] }
  0x79   : >> { %3524 = vmatmul.mubr.msk.bf16.vlgmr.msra.gmra.mrb[32].mxu0 %vm273_vm3, %v4599_v32  ;;  %v1736_v43 = vrot.slane %v1734_v58, 1  ;;  %v1739_v53 = vrot.slane %v1737_v36, 2  ;;  %v3178_v58 = vcombine.low %v3177_v3, %v4589_v34  ;;  %v5126_v34 = vld [vmem:[#allocation63_spill] sm:$0xff]  ;;  %v5127_v3 = vld [vmem:[#allocation62_spill] sm:$0xff] }
  0x7a   : >> { %3536 = vmatpush3.bf16.msra.mxu0 %v4606_v39  ;;  %3539 = vmatprep.mubr.msk.bf16.mxu0 %vm3851_vm2, %v5083_v7 }
  0x7b   : >> { %3537 = vmatprep.subr.bf16.mxu0 %v5083_v7  ;;  %3546 = vmatpush3.bf16.msra.mxu1 %v4615_v48  ;;  %v5123_v48 = vld [vmem:[#allocation52_spill] sm:$0xff]  ;;  %v4705_v36 = vor.u32 %v1739_v53, %v1736_v43  ;;  %v3187_v43 = vld [vmem:[%s4234_s30 + $0x20] sm:$0xc]  ;;  %v5128_v53 = vld [vmem:[#allocation67_spill] sm:$0xff] }
  0x7c   : >> { %3559 = vmatprep.subr.bf16.mxu1 %v5083_v7  ;;  %v4650_v39 = vcombine.low %v5123_v48, %v5122_v41  ;;  %v1748_v48 = vrot.slane %v3185_v54, 2  ;;  %v4687_v41 = vcombine.low %v5125_v25, %v5124_v30  ;;  %v4713_v30 = vrot.slane %v3178_v58, 1 }
  0x7d   : >> { %v4720_v25 = vcombine.low %v5127_v3, %v5126_v34  ;;  %v3188_v58 = vcombine.low %v3187_v43, %v4633_v26 }
  0x7e   : >> { %3538 = vmatpush3.bf16.msra.mxu0 %v4628_v40  ;;  %3548 = vmatmul.mubr.msk.bf16.vlgmr.msra.gmra.mrb[36].mxu1 %vm273_vm3, %v4624_v35  ;;  %v4677_v54 = vsel %vm268_vm0, %v1747_v33, %v1748_v48  ;;  %v3180_v33 = vcombine.low %v5120_v47, %v5120_v47  ;;  %v4695_v52 = vsel %vm277_vm1, %v1748_v48, 0 }
  0x7f   : >> { %3551 = vmatprep.subr.bf16.mxu0 %v5083_v7  ;;  %3560 = vmatpush3.bf16.msra.mxu1 %v4637_v31  ;;  %v4742_v3 = vrot.slane %v3188_v58, 2 }
  0x80   : >> { %3561 = vmatprep.subr.bf16.mxu1 %v5083_v7  ;;  %3563 = vmatprep.mubr.msk.bf16.mxu1 %vm3851_vm2, %v5083_v7  ;;  %v4709_v48 = vsel %vm277_vm1, %v3180_v33, 0  ;;  %v5129_v33 = vld [vmem:[#allocation64_spill] sm:$0xff] }
  0x81   : >> { %3540 = vmatmul.mubr.msk.bf16.vlgmr.msra.gmra.mrb[36].mxu0 %vm273_vm3, %v4643_v38  ;;  %v3190_v47 = vcombine.low %v5129_v33, %v5129_v33 }
  0x82   : >> { %3552 = vmatpush3.bf16.msra.mxu0 %v4650_v39  ;;  %3555 = vmatprep.mubr.msk.bf16.mxu0 %vm3851_vm2, %v5083_v7 }
  0x83   : >> { %3553 = vmatprep.subr.bf16.mxu0 %v5083_v7  ;;  %3562 = vmatpush3.bf16.msra.mxu1 %v4659_v49  ;;  %v4738_v34 = vsel %vm277_vm1, %v3190_v47, 0  ;;  %v3217_v47 = vld [vmem:[%s4234_s30 + $0x28] sm:$0xf] }
  0x84   : >> { %3575 = vmatprep.subr.bf16.mxu1 %v5083_v7 }
  0x86   : >> { %3554 = vmatpush3.bf16.msra.mxu0 %v4672_v44  ;;  %3564 = vmatmul.mubr.msk.bf16.vlgmr.msra.gmra.mrb[40].mxu1 %vm273_vm3, %v4668_v57 }
  0x87   : >> { %3567 = vmatprep.subr.bf16.mxu0 %v5083_v7  ;;  %3576 = vmatpush3.bf16.msra.mxu1 %v4677_v54 }
  0x88   : >> { %3577 = vmatprep.subr.bf16.mxu1 %v5083_v7  ;;  %3579 = vmatprep.mubr.msk.bf16.mxu1 %vm3851_vm2, %v5083_v7 }
  0x89   : >> { %3556 = vmatmul.mubr.msk.bf16.vlgmr.msra.gmra.mrb[40].mxu0 %vm273_vm3, %v4683_v61 }
  0x8a   : >> { %3568 = vmatpush3.bf16.msra.mxu0 %v4687_v41  ;;  %3571 = vmatprep.mubr.msk.bf16.mxu0 %vm3851_vm2, %v5083_v7 }
  0x8b   : >> { %3569 = vmatprep.subr.bf16.mxu0 %v5083_v7  ;;  %3578 = vmatpush3.bf16.msra.mxu1 %v4695_v52 }
  0x8c   : >> { %3591 = vmatprep.subr.bf16.mxu1 %v5083_v7 }
  0x8e   : >> { %3570 = vmatpush3.bf16.msra.mxu0 %v4709_v48  ;;  %3580 = vmatmul.mubr.msk.bf16.vlgmr.msra.gmra.mrb[44].mxu1 %vm273_vm3, %v4705_v36 }
  0x8f   : >> { %3583 = vmatprep.subr.bf16.mxu0 %v5083_v7  ;;  %3592 = vmatpush3.bf16.msra.mxu1 %v5128_v53 }
  0x90   : >> { %3593 = vmatprep.subr.bf16.mxu1 %v5083_v7  ;;  %3595 = vmatprep.mubr.msk.bf16.mxu1 %vm3851_vm2, %v5083_v7 }
  0x91   : >> { %3572 = vmatmul.mubr.msk.bf16.vlgmr.msra.gmra.mrb[44].mxu0 %vm273_vm3, %v4713_v30 }
  0x92   : >> { %3584 = vmatpush3.bf16.msra.mxu0 %v4720_v25  ;;  %3587 = vmatprep.mubr.msk.bf16.mxu0 %vm3851_vm2, %v5083_v7 }
  0x93   : >> { %3585 = vmatprep.subr.bf16.mxu0 %v5083_v7  ;;  %3594 = vmatpush3.bf16.msra.mxu1 %v4256_v8  ;;  %v5130_v8 = vld [vmem:[#allocation66_spill] sm:$0xff] }
  0x94   : >> { %3607 = vmatprep.subr.bf16.mxu1 %v5083_v7 }
  0x96   : >> { %3586 = vmatpush3.bf16.msra.mxu0 %v4738_v34  ;;  %3596 = vmatmul.mubr.msk.bf16.vlgmr.msra.gmra.mrb[48].mxu1 %vm273_vm3, %v4384_v45  ;;  %v3227_v45 = vld [vmem:[%s4234_s30 + $0x28] sm:$0xc] }
  0x97   : >> { %3599 = vmatprep.subr.bf16.mxu0 %v5083_v7  ;;  %3608 = vmatpush3.bf16.msra.mxu1 %v4273_v56 }
  0x98   : >> { %3609 = vmatprep.subr.bf16.mxu1 %v5083_v7  ;;  %3611 = vmatprep.mubr.msk.bf16.mxu1 %vm3851_vm2, %v5083_v7 }
  0x99   : >> { %3588 = vmatmul.mubr.msk.bf16.vlgmr.msra.gmra.mrb[48].mxu0 %vm273_vm3, %v4742_v3 }
  0x9a   : >> { %3600 = vmatpush3.bf16.msra.mxu0 %v5130_v8  ;;  %3603 = vmatprep.mubr.msk.bf16.mxu0 %vm3851_vm2, %v5083_v7 }
  0x9b   : >> { %3601 = vmatprep.subr.bf16.mxu0 %v5083_v7  ;;  %3610 = vmatpush3.bf16.msra.mxu1 %v4290_v59  ;;  %v3221_v59 = vld [vmem:[%s4234_s30 + $0x28] sm:$0xe] }
  0x9c   : >> { %3623 = vmatprep.subr.bf16.mxu1 %v5083_v7 }
  0x9e   : >> { %3602 = vmatpush3.bf16.msra.mxu0 %v4245_v1  ;;  %3612 = vmatmul.mubr.msk.bf16.vlgmr.msra.gmra.mrb[52].mxu1 %vm273_vm3, %v4364_v17  ;;  %v5131_v1 = vld [vmem:[#allocation71_spill] sm:$0xff]  ;;  %v5133_v17 = vld [vmem:[#allocation73_spill] sm:$0xff] }
  0x9f   : >> { %3615 = vmatprep.subr.bf16.mxu0 %v5083_v7  ;;  %3624 = vmatpush3.bf16.msra.mxu1 %v4306_v14  ;;  %v5141_v14 = vld [vmem:[#allocation78_spill] sm:$0xff] }
  0xa0   : >> { %3625 = vmatprep.subr.bf16.mxu1 %v5083_v7  ;;  %3627 = vmatprep.mubr.msk.bf16.mxu1 %vm3851_vm2, %v5083_v7 }
  0xa1   : >> { %3604 = vmatmul.mubr.msk.bf16.vlgmr.msra.gmra.mrb[52].mxu0 %vm273_vm3, %v4331_v13 }
  0xa2   : >> { %3616 = vmatpush3.bf16.msra.mxu0 %v4267_v60  ;;  %3619 = vmatprep.mubr.msk.bf16.mxu0 %vm3851_vm2, %v5083_v7  ;;  %v3218_v60 = vld [vmem:[%s4234_s30 + $0x2c] sm:$0x1] }
  0xa3   : >> { %3617 = vmatprep.subr.bf16.mxu0 %v5083_v7  ;;  %3626 = vmatpush3.bf16.msra.mxu1 %v4327_v9  ;;  %v3219_v56 = vcombine.low %v3217_v47, %v3218_v60  ;;  %v3224_v9 = vld [vmem:[%s4234_s30 + $0x2c] sm:$0x3] }
  0xa4   : >> { %3639 = vmatprep.subr.bf16.mxu1 %v5083_v7 }
  0xa5   : >> { %v2742_v13 = vshrl.u32 %v3219_v56, 16 }
  0xa6   : >> { %3618 = vmatpush3.bf16.msra.mxu0 %v4282_v2  ;;  %3628 = vmatmul.mubr.msk.bf16.vlgmr.msra.gmra.mrb[56].mxu1 %vm273_vm3, %v4409_v20  ;;  %v5136_v20 = vld [vmem:[#allocation70_spill] sm:$0xff]  ;;  %v5140_v2 = vld [vmem:[#allocation76_spill] sm:$0xff] }
  0xa7   : >> { %3631 = vmatprep.subr.bf16.mxu0 %v5083_v7  ;;  %3640 = vmatpush3.bf16.msra.mxu1 %v4347_v63  ;;  %v3225_v63 = vcombine.low %v3221_v59, %v3224_v9 }
  0xa8   : >> { %3641 = vmatprep.subr.bf16.mxu1 %v5083_v7  ;;  %3643 = vmatprep.mubr.msk.bf16.mxu1 %vm3851_vm2, %v5083_v7 }
  0xa9   : >> { %3620 = vmatmul.mubr.msk.bf16.vlgmr.msra.gmra.mrb[56].mxu0 %vm273_vm3, %v4428_v22  ;;  %v5137_v22 = vld [vmem:[#allocation77_spill] sm:$0xff] }
  0xaa   : >> { %3632 = vmatpush3.bf16.msra.mxu0 %v4295_v4  ;;  %3635 = vmatprep.mubr.msk.bf16.mxu0 %vm3851_vm2, %v5083_v7  ;;  %v2744_v4 = vshll.u32 %v3219_v56, 16 }
  0xab   : >> { %3633 = vmatprep.subr.bf16.mxu0 %v5083_v7  ;;  %3642 = vmatpush3.bf16.msra.mxu1 %v4369_v18  ;;  %v5134_v18 = vld [vmem:[#allocation69_spill] sm:$0xff] }
  0xac   : >> { %3655 = vmatprep.subr.bf16.mxu1 %v5083_v7 }
  0xae   : >> { %3634 = vmatpush3.bf16.msra.mxu0 %v4316_v62  ;;  %3644 = vmatmul.mubr.msk.bf16.vlgmr.msra.gmra.mrb[60].mxu1 %vm273_vm3, %v4453_v21  ;;  %v3222_v62 = vcombine.low %v3221_v59, %v3218_v60 }
  0xaf   : >> { %3647 = vmatprep.subr.bf16.mxu0 %v5083_v7  ;;  %3656 = vmatpush3.bf16.msra.mxu1 %v4391_v19  ;;  %v5135_v19 = vld [vmem:[#allocation75_spill] sm:$0xff] }
  0xb0   : >> { %3657 = vmatprep.subr.bf16.mxu1 %v5083_v7  ;;  %3659 = vmatprep.mubr.msk.bf16.mxu1 %vm3851_vm2, %v5083_v7 }
  0xb1   : >> { %3636 = vmatmul.mubr.msk.bf16.vlgmr.msra.gmra.mrb[60].mxu0 %vm273_vm3, %v4472_v28 }
  0xb2   : >> { %3648 = vmatpush3.bf16.msra.mxu0 %v4336_v51  ;;  %3651 = vmatprep.mubr.msk.bf16.mxu0 %vm3851_vm2, %v5083_v7  ;;  %v2746_v51 = vrot.slane %v2744_v4, 1 }
  0xb3   : >> { %3649 = vmatprep.subr.bf16.mxu0 %v5083_v7  ;;  %3658 = vmatpush3.bf16.msra.mxu1 %v4413_v11  ;;  %v2846_v11 = vshrl.u32 %v3225_v63, 16 }
  0xb4   : >> { %3671 = vmatprep.subr.bf16.mxu1 %v5083_v7 }
  0xb6   : >> { %3650 = vmatpush3.bf16.msra.mxu0 %v4356_v10  ;;  %3660 = vmatmul.mubr.msk.bf16.vlgmr.msra.gmra.mrb[64].mxu1 %vm273_vm3, %v4494_v27  ;;  %v5132_v10 = vld [vmem:[#allocation68_spill] sm:$0xff] }
  0xb7   : >> { %3663 = vmatprep.subr.bf16.mxu0 %v5083_v7  ;;  %3672 = vmatpush3.bf16.msra.mxu1 %v4435_v12  ;;  %v3228_v12 = vcombine.low %v3227_v45, %v3224_v9 }
  0xb8   : >> { %3673 = vmatprep.subr.bf16.mxu1 %v5083_v7  ;;  %3675 = vmatprep.mubr.msk.bf16.mxu1 %vm3851_vm2, %v5083_v7 }
  0xb9   : >> { %3652 = vmatmul.mubr.msk.bf16.vlgmr.msra.gmra.mrb[64].mxu0 %vm273_vm3, %v4509_v24 }
  0xba   : >> { %3664 = vmatpush3.bf16.msra.mxu0 %v4378_v5  ;;  %3667 = vmatprep.mubr.msk.bf16.mxu0 %vm3851_vm2, %v5083_v7  ;;  %v2796_v5 = vrot.slane %v3222_v62, 1 }
  0xbb   : >> { %3665 = vmatprep.subr.bf16.mxu0 %v5083_v7  ;;  %3674 = vmatpush3.bf16.msra.mxu1 %v4457_v0  ;;  %v2901_v0 = vrot.slane %v3228_v12, 2 }
  0xbc   : >> { %3687 = vmatprep.subr.bf16.mxu1 %v5083_v7 }
  0xbe   : >> { %3666 = vmatpush3.bf16.msra.mxu0 %v4400_v15  ;;  %3676 = vmatmul.mubr.msk.bf16.vlgmr.msra.gmra.mrb[68].mxu1 %vm273_vm3, %v4543_v6  ;;  %v2747_v15 = vor.u32 %v2746_v51, %v2742_v13 }
  0xbf   : >> { %3679 = vmatprep.subr.bf16.mxu0 %v5083_v7  ;;  %3688 = vmatpush3.bf16.msra.mxu1 %v4476_v16 }
  0xc0   : >> { %3689 = vmatprep.subr.bf16.mxu1 %v5083_v7  ;;  %3691 = vmatprep.mubr.msk.bf16.mxu1 %vm3851_vm2, %v5083_v7 }
  0xc1   : >> { %3668 = vmatmul.mubr.msk.bf16.vlgmr.msra.gmra.mrb[68].mxu0 %vm273_vm3, %v4554_v37  ;;  %v5138_v37 = vld [vmem:[#allocation72_spill] sm:$0xff] }
  0xc2   : >> { %3680 = vmatpush3.bf16.msra.mxu0 %v4422_v55  ;;  %3683 = vmatprep.mubr.msk.bf16.mxu0 %vm3851_vm2, %v5083_v7  ;;  %v2849_v55 = vshll.u32 %v3225_v63, 16 }
  0xc3   : >> { %3681 = vmatprep.subr.bf16.mxu0 %v5083_v7  ;;  %3690 = vmatpush3.bf16.msra.mxu1 %v4498_v23 }
  0xc4   : >> { %3703 = vmatprep.subr.bf16.mxu1 %v5083_v7  ;;  %v2851_v21 = vrot.slane %v2849_v55, 2 }
  0xc6   : >> { %3682 = vmatpush3.bf16.msra.mxu0 %v4444_v50  ;;  %3692 = vmatmul.mubr.msk.bf16.vlgmr.msra.gmra.mrb[72].mxu1 %vm273_vm3, %v4579_v42  ;;  %v5139_v42 = vld [vmem:[#allocation74_spill] sm:$0xff]  ;;  %v2848_v50 = vrot.slane %v2846_v11, 1 }
  0xc7   : >> { %3695 = vmatprep.subr.bf16.mxu0 %v5083_v7  ;;  %3704 = vmatpush3.bf16.msra.mxu1 %v4516_v29 }
  0xc8   : >> { %3705 = vmatprep.subr.bf16.mxu1 %v5083_v7  ;;  %3707 = vmatprep.mubr.msk.bf16.mxu1 %vm3851_vm2, %v5083_v7 }
  0xc9   : >> { %3684 = vmatmul.mubr.msk.bf16.vlgmr.msra.gmra.mrb[72].mxu0 %vm273_vm3, %v4599_v32 }
  0xca   : >> { %3696 = vmatpush3.bf16.msra.mxu0 %v4462_v46  ;;  %3699 = vmatprep.mubr.msk.bf16.mxu0 %vm3851_vm2, %v5083_v7  ;;  %v2852_v46 = vor.u32 %v2851_v21, %v2848_v50 }
  0xcb   : >> { %3697 = vmatprep.subr.bf16.mxu0 %v5083_v7  ;;  %3706 = vmatpush3.bf16.msra.mxu1 %v5131_v1 }
  0xcc   : >> { %3719 = vmatprep.subr.bf16.mxu1 %v5083_v7 }
  0xce   : >> { %3698 = vmatpush3.bf16.msra.mxu0 %v5132_v10  ;;  %3708 = vmatmul.mubr.msk.bf16.vlgmr.msra.gmra.mrb[76].mxu1 %vm273_vm3, %v4624_v35 }
  0xcf   : >> { %3711 = vmatprep.subr.bf16.mxu0 %v5083_v7  ;;  %3720 = vmatpush3.bf16.msra.mxu1 %v5133_v17 }
  0xd0   : >> { %3721 = vmatprep.subr.bf16.mxu1 %v5083_v7  ;;  %3723 = vmatprep.mubr.msk.bf16.mxu1 %vm3851_vm2, %v5083_v7 }
  0xd1   : >> { %3700 = vmatmul.mubr.msk.bf16.vlgmr.msra.gmra.mrb[76].mxu0 %vm273_vm3, %v4643_v38 }
  0xd2   : >> { %3712 = vmatpush3.bf16.msra.mxu0 %v5134_v18  ;;  %3715 = vmatprep.mubr.msk.bf16.mxu0 %vm3851_vm2, %v5083_v7 }
  0xd3   : >> { %3713 = vmatprep.subr.bf16.mxu0 %v5083_v7  ;;  %3722 = vmatpush3.bf16.msra.mxu1 %v5135_v19 }
  0xd4   : >> { %3735 = vmatprep.subr.bf16.mxu1 %v5083_v7 }
  0xd6   : >> { %3714 = vmatpush3.bf16.msra.mxu0 %v5136_v20  ;;  %3724 = vmatmul.mubr.msk.bf16.vlgmr.msra.gmra.mrb[80].mxu1 %vm273_vm3, %v4668_v57 }
  0xd7   : >> { %3727 = vmatprep.subr.bf16.mxu0 %v5083_v7  ;;  %3736 = vmatpush3.bf16.msra.mxu1 %v5137_v22 }
  0xd8   : >> { %3737 = vmatprep.subr.bf16.mxu1 %v5083_v7  ;;  %3739 = vmatprep.mubr.msk.bf16.mxu1 %vm3851_vm2, %v5083_v7 }
  0xd9   : >> { %3716 = vmatmul.mubr.msk.bf16.vlgmr.msra.gmra.mrb[80].mxu0 %vm273_vm3, %v4683_v61 }
  0xda   : >> { %3728 = vmatpush3.bf16.msra.mxu0 %v5138_v37  ;;  %3731 = vmatprep.mubr.msk.bf16.mxu0 %vm3851_vm2, %v5083_v7 }
  0xdb   : >> { %3729 = vmatprep.subr.bf16.mxu0 %v5083_v7  ;;  %3738 = vmatpush3.bf16.msra.mxu1 %v4628_v40 }
  0xdc   : >> { %3751 = vmatprep.subr.bf16.mxu1 %v5083_v7 }
  0xde   : >> { %3730 = vmatpush3.bf16.msra.mxu0 %v5139_v42  ;;  %3740 = vmatmul.mubr.msk.bf16.vlgmr.msra.gmra.mrb[84].mxu1 %vm273_vm3, %v4705_v36 }
  0xdf   : >> { %3743 = vmatprep.subr.bf16.mxu0 %v5083_v7  ;;  %3752 = vmatpush3.bf16.msra.mxu1 %v4650_v39  ;;  %v3215_v39 = vld [vmem:[%s4234_s30 + $0x28] sm:$0xf] }
  0xe0   : >> { %3753 = vmatprep.subr.bf16.mxu1 %v5083_v7  ;;  %3755 = vmatprep.mubr.msk.bf16.mxu1 %vm3851_vm2, %v5083_v7 }
  0xe1   : >> { %3732 = vmatmul.mubr.msk.bf16.vlgmr.msra.gmra.mrb[84].mxu0 %vm273_vm3, %v4713_v30 }
  0xe2   : >> { %3744 = vmatpush3.bf16.msra.mxu0 %v5140_v2  ;;  %3747 = vmatprep.mubr.msk.bf16.mxu0 %vm3851_vm2, %v5083_v7 }
  0xe3   : >> { %3745 = vmatprep.subr.bf16.mxu0 %v5083_v7  ;;  %3754 = vmatpush3.bf16.msra.mxu1 %v4672_v44 }
  0xe4   : >> { %3767 = vmatprep.subr.bf16.mxu1 %v5083_v7 }
  0xe6   : >> { %3746 = vmatpush3.bf16.msra.mxu0 %v5141_v14  ;;  %3756 = vmatmul.mubr.msk.bf16.vlgmr.msra.gmra.mrb[88].mxu1 %vm273_vm3, %v3215_v39 }
  0xe7   : >> { %3759 = vmatprep.subr.bf16.mxu0 %v5083_v7  ;;  %3768 = vmatpush3.bf16.msra.mxu1 %v4687_v41 }
  0xe8   : >> { %3769 = vmatprep.subr.bf16.mxu1 %v5083_v7  ;;  %3771 = vmatprep.mubr.msk.bf16.mxu1 %vm3851_vm2, %v5083_v7 }
  0xe9   : >> { %3748 = vmatmul.mubr.msk.bf16.vlgmr.msra.gmra.mrb[88].mxu0 %vm273_vm3, %v4742_v3 }
  0xea   : >> { %3760 = vmatpush3.bf16.msra.mxu0 %v4637_v31  ;;  %3763 = vmatprep.mubr.msk.bf16.mxu0 %vm3851_vm2, %v5083_v7 }
  0xeb   : >> { %3761 = vmatprep.subr.bf16.mxu0 %v5083_v7  ;;  %3770 = vmatpush3.bf16.msra.mxu1 %v4709_v48 }
  0xec   : >> { %3783 = vmatprep.subr.bf16.mxu1 %v5083_v7 }
  0xee   : >> { %3762 = vmatpush3.bf16.msra.mxu0 %v4659_v49  ;;  %3772 = vmatmul.mubr.msk.bf16.vlgmr.msra.gmra.mrb[92].mxu1 %vm273_vm3, %v2796_v5 }
  0xef   : >> { %3775 = vmatprep.subr.bf16.mxu0 %v5083_v7  ;;  %3784 = vmatpush3.bf16.msra.mxu1 %v4720_v25 }
  0xf0   : >> { %3785 = vmatprep.subr.bf16.mxu1 %v5083_v7  ;;  %3787 = vmatprep.mubr.msk.bf16.mxu1 %vm3851_vm2, %v5083_v7 }
  0xf1   : >> { %3764 = vmatmul.mubr.msk.bf16.vlgmr.msra.gmra.mrb[92].mxu0 %vm273_vm3, %v2747_v15 }
  0xf2   : >> { %3776 = vmatpush3.bf16.msra.mxu0 %v4677_v54  ;;  %3779 = vmatprep.mubr.msk.bf16.mxu0 %vm3851_vm2, %v5083_v7 }
  0xf3   : >> { %3777 = vmatprep.subr.bf16.mxu0 %v5083_v7  ;;  %3786 = vmatpush3.bf16.msra.mxu1 %v4738_v34 }
  0xf6   : >> { %3778 = vmatpush3.bf16.msra.mxu0 %v4695_v52  ;;  %3788 = vmatmul.mubr.msk.bf16.vlgmr.msra.gmra.mrb[96].mxu1 %vm273_vm3, %v2901_v0 }
  0xf9   : >> { %3780 = vmatmul.mubr.msk.bf16.vlgmr.msra.gmra.mrb[96].mxu0 %vm273_vm3, %v2852_v46 }
 0x109   : >> { %v368_v28 = vpop.f32.mrb[0].mxu1 }
 0x10a   : >> { %v3405_v16 = vpop.f32.mrb[1].mxu1 }
 0x10b   : >> { %v371_v27 = vpop.f32.mrb[2].mxu1 }
 0x10c   : >> { %v315_v23 = vpop.f32.mrb[0].mxu0  ;;  %v3406_v24 = vpop.f32.mrb[3].mxu1 }
 0x10d   : >> { %v369_v29 = vadd.f32 %v368_v28, %v315_v23  ;;  %v3397_v6 = vpop.f32.mrb[1].mxu0 }
 0x10e   : >> { %v318_v38 = vpop.f32.mrb[2].mxu0 }
 0x10f   : >> { %v3398_v32 = vpop.f32.mrb[3].mxu0 }
 0x111   : >> { %v497_v35 = vpop.f32.mrb[4].mxu1 }
 0x112   : >> { %v3421_v7 = vpop.f32.mrb[5].mxu1 }
 0x113   : >> { %v500_v40 = vpop.f32.mrb[6].mxu1 }
 0x114   : >> { %v428_v26 = vpop.f32.mrb[4].mxu0  ;;  %v3422_v31 = vpop.f32.mrb[7].mxu1 }
 0x115   : >> { %v434_v49 = vadd.f32 %v428_v26, %v369_v29  ;;  %v3413_v52 = vpop.f32.mrb[5].mxu0 }
 0x116   : >> { %v431_v57 = vpop.f32.mrb[6].mxu0 }
 0x117   : >> { %v3414_v44 = vpop.f32.mrb[7].mxu0  ;;  %v503_v54 = vadd.f32 %v497_v35, %v434_v49 }
 0x119   : >> { %v620_v61 = vpop.f32.mrb[8].mxu1 }
 0x11a   : >> { %v3437_v41 = vpop.f32.mrb[9].mxu1 }
 0x11b   : >> { %v623_v36 = vpop.f32.mrb[10].mxu1 }
 0x11c   : >> { %v558_v48 = vpop.f32.mrb[8].mxu0  ;;  %v3438_v30 = vpop.f32.mrb[11].mxu1 }
 0x11d   : >> { %v564_v25 = vadd.f32 %v558_v48, %v503_v54  ;;  %v3429_v43 = vpop.f32.mrb[9].mxu0 }
 0x11e   : >> { %v561_v53 = vpop.f32.mrb[10].mxu0 }
 0x11f   : >> { %v3430_v33 = vpop.f32.mrb[11].mxu0  ;;  %v626_v58 = vadd.f32 %v620_v61, %v564_v25 }
 0x121   : >> { %v752_v34 = vpop.f32.mrb[12].mxu1 }
 0x122   : >> { %v3453_v3 = vpop.f32.mrb[13].mxu1 }
 0x123   : >> { %v755_v8 = vpop.f32.mrb[14].mxu1 }
 0x124   : >> { %v690_v1 = vpop.f32.mrb[12].mxu0  ;;  %v3454_v10 = vpop.f32.mrb[15].mxu1 }
 0x125   : >> { %v696_v17 = vadd.f32 %v690_v1, %v626_v58  ;;  %v3445_v18 = vpop.f32.mrb[13].mxu0 }
 0x126   : >> { %v693_v19 = vpop.f32.mrb[14].mxu0 }
 0x127   : >> { %v3446_v20 = vpop.f32.mrb[15].mxu0  ;;  %v758_v22 = vadd.f32 %v752_v34, %v696_v17 }
 0x129   : >> { %v882_v37 = vpop.f32.mrb[16].mxu1 }
 0x12a   : >> { %v3469_v42 = vpop.f32.mrb[17].mxu1 }
 0x12b   : >> { %v885_v47 = vpop.f32.mrb[18].mxu1 }
 0x12c   : >> { %v820_v60 = vpop.f32.mrb[16].mxu0  ;;  %v3470_v56 = vpop.f32.mrb[19].mxu1 }
 0x12d   : >> { %v826_v2 = vadd.f32 %v820_v60, %v758_v22  ;;  %v3461_v39 = vpop.f32.mrb[17].mxu0 }
 0x12e   : >> { %v823_v59 = vpop.f32.mrb[18].mxu0 }
 0x12f   : >> { %v3462_v4 = vpop.f32.mrb[19].mxu0  ;;  %v888_v14 = vadd.f32 %v882_v37, %v826_v2 }
 0x131   : >> { %v1014_v62 = vpop.f32.mrb[20].mxu1 }
 0x132   : >> { %v3485_v9 = vpop.f32.mrb[21].mxu1 }
 0x133   : >> { %v1017_v13 = vpop.f32.mrb[22].mxu1 }
 0x134   : >> { %v943_v51 = vpop.f32.mrb[20].mxu0  ;;  %v3486_v63 = vpop.f32.mrb[23].mxu1 }
 0x135   : >> { %v949_v5 = vadd.f32 %v943_v51, %v888_v14  ;;  %v3477_v45 = vpop.f32.mrb[21].mxu0 }
 0x136   : >> { %v946_v15 = vpop.f32.mrb[22].mxu0 }
 0x137   : >> { %v3478_v11 = vpop.f32.mrb[23].mxu0  ;;  %v1020_v55 = vadd.f32 %v1014_v62, %v949_v5 }
 0x139   : >> { %v1144_v12 = vpop.f32.mrb[24].mxu1 }
 0x13a   : >> { %v3501_v50 = vpop.f32.mrb[25].mxu1 }
 0x13b   : >> { %v1147_v21 = vpop.f32.mrb[26].mxu1 }
 0x13c   : >> { %v1075_v0 = vpop.f32.mrb[24].mxu0  ;;  %v3502_v46 = vpop.f32.mrb[27].mxu1 }
 0x13d   : >> { %v1081_v28 = vadd.f32 %v1075_v0, %v1020_v55  ;;  %v3493_v16 = vpop.f32.mrb[25].mxu0 }
 0x13e   : >> { %v1078_v27 = vpop.f32.mrb[26].mxu0 }
 0x13f   : >> { %v3494_v23 = vpop.f32.mrb[27].mxu0  ;;  %v1150_v24 = vadd.f32 %v1144_v12, %v1081_v28 }
 0x141   : >> { %v1267_v29 = vpop.f32.mrb[28].mxu1 }
 0x142   : >> { %v3517_v6 = vpop.f32.mrb[29].mxu1 }
 0x143   : >> { %v1270_v38 = vpop.f32.mrb[30].mxu1 }
 0x144   : >> { %v1205_v32 = vpop.f32.mrb[28].mxu0  ;;  %v3518_v35 = vpop.f32.mrb[31].mxu1 }
 0x145   : >> { %v1211_v7 = vadd.f32 %v1205_v32, %v1150_v24  ;;  %v3509_v40 = vpop.f32.mrb[29].mxu0 }
 0x146   : >> { %v1208_v26 = vpop.f32.mrb[30].mxu0 }
 0x147   : >> { %v3510_v31 = vpop.f32.mrb[31].mxu0  ;;  %v1273_v49 = vadd.f32 %v1267_v29, %v1211_v7 }
 0x149   : >> { %v1399_v52 = vpop.f32.mrb[32].mxu1 }
 0x14a   : >> { %v3533_v57 = vpop.f32.mrb[33].mxu1 }
 0x14b   : >> { %v1402_v44 = vpop.f32.mrb[34].mxu1 }
 0x14c   : >> { %v1337_v54 = vpop.f32.mrb[32].mxu0  ;;  %v3534_v61 = vpop.f32.mrb[35].mxu1 }
 0x14d   : >> { %v1343_v41 = vadd.f32 %v1337_v54, %v1273_v49  ;;  %v3525_v36 = vpop.f32.mrb[33].mxu0 }
 0x14e   : >> { %v1340_v48 = vpop.f32.mrb[34].mxu0 }
 0x14f   : >> { %v3526_v30 = vpop.f32.mrb[35].mxu0  ;;  %v1405_v25 = vadd.f32 %v1399_v52, %v1343_v41 }
 0x151   : >> { %v1529_v43 = vpop.f32.mrb[36].mxu1 }
 0x152   : >> { %v3549_v53 = vpop.f32.mrb[37].mxu1 }
 0x153   : >> { %v1532_v33 = vpop.f32.mrb[38].mxu1 }
 0x154   : >> { %v1467_v58 = vpop.f32.mrb[36].mxu0  ;;  %v3550_v34 = vpop.f32.mrb[39].mxu1 }
 0x155   : >> { %v1473_v3 = vadd.f32 %v1467_v58, %v1405_v25  ;;  %v3541_v8 = vpop.f32.mrb[37].mxu0 }
 0x156   : >> { %v1470_v1 = vpop.f32.mrb[38].mxu0 }
 0x157   : >> { %v3542_v10 = vpop.f32.mrb[39].mxu0  ;;  %v1535_v17 = vadd.f32 %v1529_v43, %v1473_v3 }
 0x159   : >> { %v1661_v18 = vpop.f32.mrb[40].mxu1 }
 0x15a   : >> { %v3565_v19 = vpop.f32.mrb[41].mxu1 }
 0x15b   : >> { %v1664_v20 = vpop.f32.mrb[42].mxu1 }
 0x15c   : >> { %v1590_v22 = vpop.f32.mrb[40].mxu0  ;;  %v3566_v37 = vpop.f32.mrb[43].mxu1 }
 0x15d   : >> { %v1596_v42 = vadd.f32 %v1590_v22, %v1535_v17  ;;  %v3557_v47 = vpop.f32.mrb[41].mxu0 }
 0x15e   : >> { %v1593_v60 = vpop.f32.mrb[42].mxu0 }
 0x15f   : >> { %v3558_v56 = vpop.f32.mrb[43].mxu0  ;;  %v1667_v2 = vadd.f32 %v1661_v18, %v1596_v42 }
 0x161   : >> { %v1791_v39 = vpop.f32.mrb[44].mxu1 }
 0x162   : >> { %v3581_v59 = vpop.f32.mrb[45].mxu1 }
 0x163   : >> { %v1794_v4 = vpop.f32.mrb[46].mxu1 }
 0x164   : >> { %v1722_v14 = vpop.f32.mrb[44].mxu0  ;;  %v3582_v62 = vpop.f32.mrb[47].mxu1 }
 0x165   : >> { %v1728_v9 = vadd.f32 %v1722_v14, %v1667_v2  ;;  %v3573_v13 = vpop.f32.mrb[45].mxu0 }
 0x166   : >> { %v1725_v51 = vpop.f32.mrb[46].mxu0 }
 0x167   : >> { %v3574_v63 = vpop.f32.mrb[47].mxu0  ;;  %v1797_v5 = vadd.f32 %v1791_v39, %v1728_v9 }
 0x169   : >> { %v1901_v45 = vpop.f32.mrb[48].mxu1 }
 0x16a   : >> { %v3597_v15 = vpop.f32.mrb[49].mxu1 }
 0x16b   : >> { %v1904_v11 = vpop.f32.mrb[50].mxu1 }
 0x16c   : >> { %v1852_v55 = vpop.f32.mrb[48].mxu0  ;;  %v3598_v12 = vpop.f32.mrb[51].mxu1 }
 0x16d   : >> { %v4941_v50 = vadd.f32 %v1852_v55, %v1797_v5  ;;  %v3589_v21 = vpop.f32.mrb[49].mxu0 }
 0x16e   : >> { %v1855_v0 = vpop.f32.mrb[50].mxu0 }
 0x16f   : >> { %v3590_v46 = vpop.f32.mrb[51].mxu0 }
 0x171   : >> { %v1981_v28 = vpop.f32.mrb[52].mxu1 }
 0x172   : >> { %v3613_v16 = vpop.f32.mrb[53].mxu1 }
 0x173   : >> { %v1984_v27 = vpop.f32.mrb[54].mxu1 }
 0x174   : >> { %v1941_v23 = vpop.f32.mrb[52].mxu0  ;;  %v3614_v24 = vpop.f32.mrb[55].mxu1 }
 0x175   : >> { %v1942_v29 = vadd.f32 %v1941_v23, %v1901_v45  ;;  %v3605_v6 = vpop.f32.mrb[53].mxu0 }
 0x176   : >> { %v1944_v38 = vpop.f32.mrb[54].mxu0 }
 0x177   : >> { %v3606_v32 = vpop.f32.mrb[55].mxu0  ;;  %v1987_v35 = vadd.f32 %v1981_v28, %v1942_v29 }
 0x179   : >> { %v2063_v7 = vpop.f32.mrb[56].mxu1 }
 0x17a   : >> { %v3629_v40 = vpop.f32.mrb[57].mxu1 }
 0x17b   : >> { %v2066_v26 = vpop.f32.mrb[58].mxu1 }
 0x17c   : >> { %v2022_v31 = vpop.f32.mrb[56].mxu0  ;;  %v3630_v49 = vpop.f32.mrb[59].mxu1 }
 0x17d   : >> { %v2028_v52 = vadd.f32 %v2022_v31, %v1987_v35  ;;  %v3621_v57 = vpop.f32.mrb[57].mxu0 }
 0x17e   : >> { %v2025_v44 = vpop.f32.mrb[58].mxu0 }
 0x17f   : >> { %v3622_v54 = vpop.f32.mrb[59].mxu0  ;;  %v2069_v61 = vadd.f32 %v2063_v7, %v2028_v52 }
 0x181   : >> { %v2145_v41 = vpop.f32.mrb[60].mxu1 }
 0x182   : >> { %v3645_v36 = vpop.f32.mrb[61].mxu1 }
 0x183   : >> { %v2148_v48 = vpop.f32.mrb[62].mxu1 }
 0x184   : >> { %v2104_v30 = vpop.f32.mrb[60].mxu0  ;;  %v3646_v25 = vpop.f32.mrb[63].mxu1 }
 0x185   : >> { %v2110_v43 = vadd.f32 %v2104_v30, %v2069_v61  ;;  %v3637_v53 = vpop.f32.mrb[61].mxu0 }
 0x186   : >> { %v2107_v33 = vpop.f32.mrb[62].mxu0 }
 0x187   : >> { %v3638_v58 = vpop.f32.mrb[63].mxu0  ;;  %v2151_v34 = vadd.f32 %v2145_v41, %v2110_v43 }
 0x189   : >> { %v2227_v3 = vpop.f32.mrb[64].mxu1 }
 0x18a   : >> { %v3661_v8 = vpop.f32.mrb[65].mxu1 }
 0x18b   : >> { %v2230_v1 = vpop.f32.mrb[66].mxu1 }
 0x18c   : >> { %v2186_v10 = vpop.f32.mrb[64].mxu0  ;;  %v3662_v17 = vpop.f32.mrb[67].mxu1 }
 0x18d   : >> { %v2192_v18 = vadd.f32 %v2186_v10, %v2151_v34  ;;  %v3653_v19 = vpop.f32.mrb[65].mxu0 }
 0x18e   : >> { %v2189_v20 = vpop.f32.mrb[66].mxu0 }
 0x18f   : >> { %v3654_v22 = vpop.f32.mrb[67].mxu0  ;;  %v2233_v37 = vadd.f32 %v2227_v3, %v2192_v18 }
 0x191   : >> { %v2309_v42 = vpop.f32.mrb[68].mxu1 }
 0x192   : >> { %v3677_v47 = vpop.f32.mrb[69].mxu1 }
 0x193   : >> { %v2312_v60 = vpop.f32.mrb[70].mxu1 }
 0x194   : >> { %v2268_v56 = vpop.f32.mrb[68].mxu0  ;;  %v3678_v2 = vpop.f32.mrb[71].mxu1 }
 0x195   : >> { %v2274_v39 = vadd.f32 %v2268_v56, %v2233_v37  ;;  %v3669_v59 = vpop.f32.mrb[69].mxu0 }
 0x196   : >> { %v2271_v4 = vpop.f32.mrb[70].mxu0 }
 0x197   : >> { %v3670_v14 = vpop.f32.mrb[71].mxu0  ;;  %v2315_v62 = vadd.f32 %v2309_v42, %v2274_v39 }
 0x199   : >> { %v2391_v9 = vpop.f32.mrb[72].mxu1 }
 0x19a   : >> { %v3693_v13 = vpop.f32.mrb[73].mxu1 }
 0x19b   : >> { %v2394_v51 = vpop.f32.mrb[74].mxu1 }
 0x19c   : >> { %v2350_v63 = vpop.f32.mrb[72].mxu0  ;;  %v3694_v5 = vpop.f32.mrb[75].mxu1 }
 0x19d   : >> { %v2356_v45 = vadd.f32 %v2350_v63, %v2315_v62  ;;  %v3685_v15 = vpop.f32.mrb[73].mxu0 }
 0x19e   : >> { %v2353_v11 = vpop.f32.mrb[74].mxu0 }
 0x19f   : >> { %v3686_v55 = vpop.f32.mrb[75].mxu0  ;;  %v2397_v12 = vadd.f32 %v2391_v9, %v2356_v45  ;;  %v5142_v45 = vld [vmem:[#allocation65_spill] sm:$0xff] }
 0x1a0   : >> { %v1865_v15 = vadd.f32 %v5142_v45, %v4941_v50 }
 0x1a1   : >> { %v2473_v21 = vpop.f32.mrb[76].mxu1 }
 0x1a2   : >> { %v3709_v0 = vpop.f32.mrb[77].mxu1 }
 0x1a3   : >> { %v2476_v46 = vpop.f32.mrb[78].mxu1 }
 0x1a4   : >> { %v2432_v28 = vpop.f32.mrb[76].mxu0  ;;  %v3710_v16 = vpop.f32.mrb[79].mxu1 }
 0x1a5   : >> { %v2438_v27 = vadd.f32 %v2432_v28, %v2397_v12  ;;  %v3701_v23 = vpop.f32.mrb[77].mxu0 }
 0x1a6   : >> { %v2435_v24 = vpop.f32.mrb[78].mxu0 }
 0x1a7   : >> { %v3702_v29 = vpop.f32.mrb[79].mxu0  ;;  %v2479_v6 = vadd.f32 %v2473_v21, %v2438_v27  ;;  %v1866_v21 = vmax.f32 %v1865_v15, 0.0 }
 0x1a9   : >> { %v2555_v38 = vpop.f32.mrb[80].mxu1 }
 0x1aa   : >> { %v3725_v32 = vpop.f32.mrb[81].mxu1 }
 0x1ab   : >> { %v2558_v35 = vpop.f32.mrb[82].mxu1 }
 0x1ac   : >> { %v2514_v7 = vpop.f32.mrb[80].mxu0  ;;  %v3726_v40 = vpop.f32.mrb[83].mxu1 }
 0x1ad   : >> { %v2520_v26 = vadd.f32 %v2514_v7, %v2479_v6  ;;  %v3717_v31 = vpop.f32.mrb[81].mxu0 }
 0x1ae   : >> { %v2517_v49 = vpop.f32.mrb[82].mxu0 }
 0x1af   : >> { %v3718_v52 = vpop.f32.mrb[83].mxu0  ;;  %v2561_v57 = vadd.f32 %v2555_v38, %v2520_v26 }
 0x1b1   : >> { %v2637_v44 = vpop.f32.mrb[84].mxu1 }
 0x1b2   : >> { %v3741_v54 = vpop.f32.mrb[85].mxu1 }
 0x1b3   : >> { %v2640_v61 = vpop.f32.mrb[86].mxu1 }
 0x1b4   : >> { %v2596_v41 = vpop.f32.mrb[84].mxu0  ;;  %v3742_v36 = vpop.f32.mrb[87].mxu1 }
 0x1b5   : >> { %v2602_v48 = vadd.f32 %v2596_v41, %v2561_v57  ;;  %v3733_v30 = vpop.f32.mrb[85].mxu0 }
 0x1b6   : >> { %v2599_v25 = vpop.f32.mrb[86].mxu0 }
 0x1b7   : >> { %v3734_v43 = vpop.f32.mrb[87].mxu0  ;;  %v2643_v53 = vadd.f32 %v2637_v44, %v2602_v48 }
 0x1b9   : >> { %v2727_v33 = vpop.f32.mrb[88].mxu1 }
 0x1ba   : >> { %v3757_v58 = vpop.f32.mrb[89].mxu1 }
 0x1bb   : >> { %v2730_v34 = vpop.f32.mrb[90].mxu1 }
 0x1bc   : >> { %v2678_v3 = vpop.f32.mrb[88].mxu0  ;;  %v3758_v8 = vpop.f32.mrb[91].mxu1 }
 0x1bd   : >> { %v2684_v1 = vadd.f32 %v2678_v3, %v2643_v53  ;;  %v3749_v10 = vpop.f32.mrb[89].mxu0 }
 0x1be   : >> { %v2681_v17 = vpop.f32.mrb[90].mxu0 }
 0x1bf   : >> { %v3750_v18 = vpop.f32.mrb[91].mxu0  ;;  %v2733_v19 = vadd.f32 %v2727_v33, %v2684_v1 }
 0x1c1   : >> { %v2834_v20 = vpop.f32.mrb[92].mxu1 }
 0x1c2   : >> { %v3773_v22 = vpop.f32.mrb[93].mxu1 }
 0x1c3   : >> { %v2837_v37 = vpop.f32.mrb[94].mxu1 }
 0x1c4   : >> { %v2785_v42 = vpop.f32.mrb[92].mxu0  ;;  %v3774_v47 = vpop.f32.mrb[95].mxu1 }
 0x1c5   : >> { %v2791_v60 = vadd.f32 %v2785_v42, %v2733_v19  ;;  %v3765_v56 = vpop.f32.mrb[93].mxu0 }
 0x1c6   : >> { %v2788_v2 = vpop.f32.mrb[94].mxu0 }
 0x1c7   : >> { %v3766_v39 = vpop.f32.mrb[95].mxu0  ;;  %v2840_v59 = vadd.f32 %v2834_v20, %v2791_v60 }
 0x1c9   : >> { %v2939_v4 = vpop.f32.mrb[96].mxu1 }
 0x1ca   : >> { %v3789_v14 = vpop.f32.mrb[97].mxu1 }
 0x1cb   : >> { %v2942_v62 = vpop.f32.mrb[98].mxu1 }
 0x1cc   : >> { %v2890_v9 = vpop.f32.mrb[96].mxu0  ;;  %v3790_v13 = vpop.f32.mrb[99].mxu1 }
 0x1cd   : >> { %v2896_v51 = vadd.f32 %v2890_v9, %v2840_v59  ;;  %v3781_v63 = vpop.f32.mrb[97].mxu0 }
 0x1ce   : >> { %v2893_v5 = vpop.f32.mrb[98].mxu0 }
 0x1cf   : >> { %v2945_v11 = vadd.f32 %v2939_v4, %v2896_v51  ;;  %v3782_v55 = vpop.f32.mrb[99].mxu0 }
 0x1d1   : >> { %v2946_v12 = vadd.f32 %v5142_v45, %v2945_v11 }
 0x1d3   : >> { %v2947_v0 = vmax.f32 %v2946_v12, 0.0 }
 0x1d5   : >> { %v2948_v46 = vmax.f32 %v1866_v21, %v2947_v0 }
 0x1d7   : >> { %v2950_v28 = vrot.slane %v2948_v46, 1 }
 0x1d9   : >> { %v2952_v16 = vmax.f32 %v2948_v46, %v2950_v28 }
 0x1db   : >> { %v2954_v27 = vrot.slane %v2952_v16, 1  ;;  %v2956_v23 = vrot.slane %v2952_v16, 2  ;;  %v2958_v24 = vrot.slane %v2952_v16, 3 }
 0x1dc   : > { %240 = sbr.rel (!%p238_p4) target bundleno = 40 (0x28), region = 76 }
 0x1dd   : >> { %v2961_v29 = vsel %vm2960_vm4, %v2952_v16, %v2954_v27 }
 0x1de   : >> { %v2962_v6 = vsel %vm277_vm1, %v2961_v29, %v2956_v23 }
 0x1df   : >> { %v2964_v50 = vsel %vm2963_vm5, %v2962_v6, %v2958_v24 }
 0x1e0   : >> { %v2965_v38 = vpack.c.bf16 %v2964_v50, %v2964_v50 }
 0x1e2   : >> { %2969 = vst.msk [vmem:[%s2967_s5] sm:$0x3] %vm2968_vm6, %v2965_v38 }
 0x1e3 PF: > { %s13_s12 = sadd.s32 1, %s3844_s12  }
 0x1e4   : > { %p10_p5 = scmp.ge.s32.totalorder %s13_s12, 4  }
 0x1e6   :  { %12 = sbr.rel (!%p10_p5) target bundleno = 1 (0x1), region = 87 }

// kernel: classify_cnn_forward.5
= control target key start
LH: loop header
LB: loop body
LE: loop exit
PB: predicated region body
PF: predicated region fallthrough
CT: control target
= control target key end

     0   :  { %v225_v36 = vlaneseq  ;;  %v2672_v37 = vmov 1966171168   ;;  %s3445_s0 = inlined_call_operand.vmem [shape: bf16[2,800], index: 0, kind: input, shape index: {}]   ;;  %s3446_s1 = inlined_call_operand.vmem [shape: bf16[800,500], index: 1, kind: input, shape index: {}]   ;;  %s3447_s2 = inlined_call_operand.vmem [shape: f32[1,500], index: 2, kind: input, shape index: {}]   ;;  %s3448_s3 = inlined_call_operand.vmem [shape: bf16[500,10], index: 3, kind: input, shape index: {}]   ;;  %s3449_s4 = inlined_call_operand.vmem [shape: f32[1,10], index: 4, kind: input, shape index: {}]   ;;  %s3450_s5 = inlined_call_operand.hbm [shape: f32[2,10], index: 5, kind: output, shape index: {}]  }
   0x1   :  { %v2315_v0 = vld [vmem:[%s3446_s1 + $0x4] ss:$16 sps:$4 sm:$0xff]   ;;  %v2317_v1 = vld [vmem:[%s3446_s1 + $0xc] ss:$16 sps:$4 sm:$0xff]   ;;  %v2319_v2 = vld [vmem:[%s3446_s1] ss:$16 sps:$4 sm:$0xff]   ;;  %v248_v38 = vunpack.c.l.s4 %v2672_v37 }
   0x2   :  { %1304 = vmatprep.subr.bf16.mxu0 %v2315_v0  ;;  %v2320_v3 = vld [vmem:[%s3446_s1 + $0x8] ss:$16 sps:$4 sm:$0xff]   ;;  %1468 = vmatprep.subr.bf16.mxu1 %v2317_v1  ;;  %v2321_v4 = vld [vmem:[%s3446_s1 + $0x24] ss:$16 sps:$4 sm:$0xff]   ;;  %v2323_v5 = vld [vmem:[%s3446_s1 + $0x2c] ss:$16 sps:$4 sm:$0xff]  }
   0x3   :  { %1305 = vmatpush1.bf16.msra.mxu0 %v2319_v2  ;;  %1469 = vmatpush1.bf16.msra.mxu1 %v2320_v3  ;;  %v2325_v6 = vld [vmem:[%s3446_s1 + $0x20] ss:$16 sps:$4 sm:$0xff]   ;;  %v2326_v7 = vld [vmem:[%s3446_s1 + $0x28] ss:$16 sps:$4 sm:$0xff]   ;;  %v2327_v8 = vld [vmem:[%s3446_s1 + $0x44] ss:$16 sps:$4 sm:$0xff]   ;;  %v249_v43 = vunpack.c.0.s8 %v248_v38 }
   0x4   :  { %1306 = vmatprep.subr.bf16.mxu0 %v2321_v4  ;;  %1470 = vmatprep.subr.bf16.mxu1 %v2323_v5  ;;  %v2329_v9 = vld [vmem:[%s3446_s1 + $0x4c] ss:$16 sps:$4 sm:$0xff]   ;;  %v2331_v10 = vld [vmem:[%s3446_s1 + $0x40] ss:$16 sps:$4 sm:$0xff]   ;;  %v2332_v11 = vld [vmem:[%s3446_s1 + $0x48] ss:$16 sps:$4 sm:$0xff]  }
   0x5   :  { %v2333_v12 = vld [vmem:[%s3446_s1 + $0x64] ss:$16 sps:$4 sm:$0xff]   ;;  %v2335_v13 = vld [vmem:[%s3446_s1 + $0x6c] ss:$16 sps:$4 sm:$0xff]   ;;  %v2337_v14 = vld [vmem:[%s3446_s1 + $0x60] ss:$16 sps:$4 sm:$0xff]  }
   0x6   :  { %v2338_v15 = vld [vmem:[%s3446_s1 + $0x68] ss:$16 sps:$4 sm:$0xff]   ;;  %v2339_v16 = vld [vmem:[%s3446_s1 + $0x84] ss:$16 sps:$4 sm:$0xff]   ;;  %v2341_v17 = vld [vmem:[%s3446_s1 + $0x8c] ss:$16 sps:$4 sm:$0xff]  }
   0x7   :  { %1307 = vmatpush1.bf16.msra.mxu0 %v2325_v6  ;;  %1471 = vmatpush1.bf16.msra.mxu1 %v2326_v7  ;;  %v2343_v18 = vld [vmem:[%s3446_s1 + $0x80] ss:$16 sps:$4 sm:$0xff]   ;;  %v2344_v19 = vld [vmem:[%s3446_s1 + $0x88] ss:$16 sps:$4 sm:$0xff]   ;;  %v2345_v20 = vld [vmem:[%s3446_s1 + $0xa4] ss:$16 sps:$4 sm:$0xff]  }
   0x8   :  { %1308 = vmatprep.subr.bf16.mxu0 %v2327_v8  ;;  %1472 = vmatprep.subr.bf16.mxu1 %v2329_v9  ;;  %v2347_v21 = vld [vmem:[%s3446_s1 + $0xac] ss:$16 sps:$4 sm:$0xff]   ;;  %v2349_v22 = vld [vmem:[%s3446_s1 + $0xa0] ss:$16 sps:$4 sm:$0xff]   ;;  %v2350_v23 = vld [vmem:[%s3446_s1 + $0xa8] ss:$16 sps:$4 sm:$0xff]  }
   0x9   :  { %v2351_v24 = vld [vmem:[%s3446_s1 + $0xc4] ss:$16 sps:$4 sm:$0xff]   ;;  %v2353_v25 = vld [vmem:[%s3446_s1 + $0xcc] ss:$16 sps:$4 sm:$0xff]   ;;  %v2355_v26 = vld [vmem:[%s3446_s1 + $0xc0] ss:$16 sps:$4 sm:$0xff]  }
   0xa   :  { %v2356_v27 = vld [vmem:[%s3446_s1 + $0xc8] ss:$16 sps:$4 sm:$0xff]   ;;  %v2357_v28 = vld [vmem:[%s3446_s1 + $0xe4] ss:$16 sps:$4 sm:$0xff]   ;;  %v2359_v29 = vld [vmem:[%s3446_s1 + $0xec] ss:$16 sps:$4 sm:$0xff]  }
   0xb   :  { %1309 = vmatpush1.bf16.msra.mxu0 %v2331_v10  ;;  %1473 = vmatpush1.bf16.msra.mxu1 %v2332_v11  ;;  %v2361_v30 = vld [vmem:[%s3446_s1 + $0xe0] ss:$16 sps:$4 sm:$0xff]   ;;  %v2362_v31 = vld [vmem:[%s3446_s1 + $0xe8] ss:$16 sps:$4 sm:$0xff]   ;;  %v2363_v32 = vld [vmem:[%s3446_s1 + $0x104] ss:$16 sps:$4 sm:$0xff]  }
   0xc   :  { %1310 = vmatprep.subr.bf16.mxu0 %v2333_v12  ;;  %1474 = vmatprep.subr.bf16.mxu1 %v2335_v13  ;;  %v2365_v33 = vld [vmem:[%s3446_s1 + $0x10c] ss:$16 sps:$4 sm:$0xff]   ;;  %v2367_v34 = vld [vmem:[%s3446_s1 + $0x100] ss:$16 sps:$4 sm:$0xff]   ;;  %v2368_v35 = vld [vmem:[%s3446_s1 + $0x108] ss:$16 sps:$4 sm:$0xff]  }
   0xd   :  { %v2369_v39 = vld [vmem:[%s3446_s1 + $0x124] ss:$16 sps:$4 sm:$0xff]   ;;  %v2371_v40 = vld [vmem:[%s3446_s1 + $0x12c] ss:$16 sps:$4 sm:$0xff]   ;;  %v2373_v41 = vld [vmem:[%s3446_s1 + $0x120] ss:$16 sps:$4 sm:$0xff]  }
   0xe   :  { %v2822_v42 = vshrl.u32 %v225_v36, 7  ;;  %v2374_v44 = vld [vmem:[%s3446_s1 + $0x128] ss:$16 sps:$4 sm:$0xff]   ;;  %v2375_v45 = vld [vmem:[%s3446_s1 + $0x144] ss:$16 sps:$4 sm:$0xff]  }
   0xf   :  { %1311 = vmatpush1.bf16.msra.mxu0 %v2337_v14  ;;  %1475 = vmatpush1.bf16.msra.mxu1 %v2338_v15  ;;  %v2377_v46 = vld [vmem:[%s3446_s1 + $0x14c] ss:$16 sps:$4 sm:$0xff]   ;;  %v2379_v47 = vld [vmem:[%s3446_s1 + $0x140] ss:$16 sps:$4 sm:$0xff]   ;;  %v2380_v48 = vld [vmem:[%s3446_s1 + $0x148] ss:$16 sps:$4 sm:$0xff]  }
  0x10   :  { %1312 = vmatprep.subr.bf16.mxu0 %v2339_v16  ;;  %1476 = vmatprep.subr.bf16.mxu1 %v2341_v17  ;;  %v252_v49 = vsub.s32 %v249_v43, %v2822_v42  ;;  %v2381_v50 = vld [vmem:[%s3446_s1 + $0x164] ss:$16 sps:$4 sm:$0xff]   ;;  %v2383_v51 = vld [vmem:[%s3446_s1 + $0x16c] ss:$16 sps:$4 sm:$0xff]   ;;  %v2385_v53 = vld [vmem:[%s3446_s1 + $0x160] ss:$16 sps:$4 sm:$0xff]  }
  0x11   :  { %v22_v52 = vld [vmem:[%s3445_s0] sm:$0x7f]  ;;  %v2386_v55 = vld [vmem:[%s3446_s1 + $0x168] ss:$16 sps:$4 sm:$0xff]   ;;  %v2389_v57 = vld [vmem:[%s3446_s1 + $0x18c] ss:$16 sps:$4 sm:$0xff]  }
  0x12   :  { %v253_v54 = vrot.slane %v22_v52, %v252_v49  ;;  %v2387_v56 = vld [vmem:[%s3446_s1 + $0x184] ss:$16 sps:$4 sm:$0xff]   ;;  %v2391_v59 = vld [vmem:[%s3446_s1 + $0x180] ss:$16 sps:$4 sm:$0xff]   ;;  %v2392_v61 = vld [vmem:[%s3446_s1 + $0x188] ss:$16 sps:$4 sm:$0xff]   ;;  %v246_v8 = vcombine.high %v22_v52, %v22_v52 }
  0x13   :  { %1313 = vmatpush1.bf16.msra.mxu0 %v2343_v18  ;;  %1477 = vmatpush1.bf16.msra.mxu1 %v2344_v19  ;;  %v2393_v62 = vld [vmem:[%s3446_s1 + $0x1a4] ss:$16 sps:$4 sm:$0xff]   ;;  %v2395_v63 = vld [vmem:[%s3446_s1 + $0x1ac] ss:$16 sps:$4 sm:$0xff]   ;;  %v2397_v0 = vld [vmem:[%s3446_s1 + $0x1a0] ss:$16 sps:$4 sm:$0xff]  }
  0x14   :  { %1314 = vmatprep.subr.bf16.mxu0 %v2345_v20  ;;  %1478 = vmatprep.subr.bf16.mxu1 %v2347_v21  ;;  %v261_v58 = vcombine.high %v253_v54, %v253_v54  ;;  %v2398_v1 = vld [vmem:[%s3446_s1 + $0x1a8] ss:$16 sps:$4 sm:$0xff]   ;;  %v2399_v2 = vld [vmem:[%s3446_s1 + $0x1c4] ss:$16 sps:$4 sm:$0xff]   ;;  %v2401_v3 = vld [vmem:[%s3446_s1 + $0x1cc] ss:$16 sps:$4 sm:$0xff]   ;;  %v260_v11 = vrot.slane %v246_v8, %v252_v49  ;;  %v2912_v16 = vrot.slane %v253_v54, %v252_v49 }
  0x15   :  { %v2403_v4 = vld [vmem:[%s3446_s1 + $0x1c0] ss:$16 sps:$4 sm:$0xff]   ;;  %v2404_v5 = vld [vmem:[%s3446_s1 + $0x1c8] ss:$16 sps:$4 sm:$0xff]   ;;  %v2405_v6 = vld [vmem:[%s3446_s1 + $0x1e4] ss:$16 sps:$4 sm:$0xff]  }
  0x16   :  { %v283_v60 = vrot.slane %v261_v58, %v252_v49  ;;  %v2407_v7 = vld [vmem:[%s3446_s1 + $0x1ec] ss:$16 sps:$4 sm:$0xff]   ;;  %v2409_v9 = vld [vmem:[%s3446_s1 + $0x1e0] ss:$16 sps:$4 sm:$0xff]   ;;  %v2410_v10 = vld [vmem:[%s3446_s1 + $0x1e8] ss:$16 sps:$4 sm:$0xff]   ;;  %v262_v14 = vcombine.high %v260_v11, %v260_v11  ;;  %v2919_v19 = vrot.slane %v260_v11, %v252_v49 }
  0x17   :  { %1315 = vmatpush1.bf16.msra.mxu0 %v2349_v22  ;;  %1479 = vmatpush1.bf16.msra.mxu1 %v2350_v23  ;;  %v2413_v12 = vld [vmem:[%s3446_s1 + $0x204] ss:$16 sps:$4 sm:$0xff]   ;;  %v2416_v13 = vld [vmem:[%s3446_s1 + $0x20c] ss:$16 sps:$4 sm:$0xff]   ;;  %v2411_v15 = vld [vmem:[%s3446_s1 + $0x200] ss:$16 sps:$4 sm:$0xff]  }
  0x18   :  { %1316 = vmatprep.subr.bf16.mxu0 %v2351_v24  ;;  %1480 = vmatprep.subr.bf16.mxu1 %v2353_v25  ;;  %v2414_v17 = vld [vmem:[%s3446_s1 + $0x208] ss:$16 sps:$4 sm:$0xff]   ;;  %v2917_v18 = vrot.slane %v262_v14, %v252_v49  ;;  %v2419_v20 = vld [vmem:[%s3446_s1 + $0x224] ss:$16 sps:$4 sm:$0xff]   ;;  %v2422_v21 = vld [vmem:[%s3446_s1 + $0x22c] ss:$16 sps:$4 sm:$0xff]   ;;  %v293_v22 = vcombine.high %v283_v60, %v283_v60 }
  0x19   :  { %1336 = vmatprep.mubr.bf16.mxu0 %v283_v60  ;;  %1500 = vmatprep.mubr.bf16.mxu1 %v283_v60  ;;  %v2417_v23 = vld [vmem:[%s3446_s1 + $0x220] ss:$16 sps:$4 sm:$0xff]   ;;  %v2420_v24 = vld [vmem:[%s3446_s1 + $0x228] ss:$16 sps:$4 sm:$0xff]   ;;  %v2425_v25 = vld [vmem:[%s3446_s1 + $0x244] ss:$16 sps:$4 sm:$0xff]  }
  0x1a   :  { %v2438_v36 = vld [vmem:[%s3446_s1 + $0x288] ss:$16 sps:$4 sm:$0xff]   ;;  %v2443_v37 = vld [vmem:[%s3446_s1 + $0x2a4] ss:$16 sps:$4 sm:$0xff]   ;;  %v2446_v38 = vld [vmem:[%s3446_s1 + $0x2ac] ss:$16 sps:$4 sm:$0xff]  }
  0x1b   :  { %1317 = vmatpush1.bf16.msra.mxu0 %v2355_v26  ;;  %1481 = vmatpush1.bf16.msra.mxu1 %v2356_v27  ;;  %v2428_v26 = vld [vmem:[%s3446_s1 + $0x24c] ss:$16 sps:$4 sm:$0xff]   ;;  %v2423_v27 = vld [vmem:[%s3446_s1 + $0x240] ss:$16 sps:$4 sm:$0xff]   ;;  %v2456_v49 = vld [vmem:[%s3446_s1 + $0x2e8] ss:$16 sps:$4 sm:$0xff]  }
  0x1c   :  { %1318 = vmatprep.subr.bf16.mxu0 %v2357_v28  ;;  %1482 = vmatprep.subr.bf16.mxu1 %v2359_v29  ;;  %v2426_v28 = vld [vmem:[%s3446_s1 + $0x248] ss:$16 sps:$4 sm:$0xff]   ;;  %v2431_v29 = vld [vmem:[%s3446_s1 + $0x264] ss:$16 sps:$4 sm:$0xff]   ;;  %v2452_v43 = vld [vmem:[%s3446_s1 + $0x2cc] ss:$16 sps:$4 sm:$0xff]  }
  0x1d   :  { %v2459_v52 = vld [vmem:[%s3446_s1 + $0x300] ss:$16 sps:$4 sm:$0xff]   ;;  %v2467_v54 = vld [vmem:[%s3446_s1 + $0x324] ss:$16 sps:$4 sm:$0xff]   ;;  %v2500_v11 = vld [vmem:[%s3446_s1 + $0x3cc] ss:$16 sps:$4 sm:$0xff]  }
  0x1e   :  { %v2473_v58 = vld [vmem:[%s3446_s1 + $0x344] ss:$16 sps:$4 sm:$0xff]   ;;  %v2471_v60 = vld [vmem:[%s3446_s1 + $0x340] ss:$16 sps:$4 sm:$0xff]  }
  0x1f   :  { %1319 = vmatpush1.bf16.msra.mxu0 %v2361_v30  ;;  %1483 = vmatpush1.bf16.msra.mxu1 %v2362_v31  ;;  %v2434_v30 = vld [vmem:[%s3446_s1 + $0x26c] ss:$16 sps:$4 sm:$0xff]   ;;  %v2429_v31 = vld [vmem:[%s3446_s1 + $0x260] ss:$16 sps:$4 sm:$0xff]   ;;  %v2503_v14 = vld [vmem:[%s3446_s1 + $0x3e4] ss:$16 sps:$4 sm:$0xff]  }
  0x20   :  { %1320 = vmatprep.subr.bf16.mxu0 %v2363_v32  ;;  %1484 = vmatprep.subr.bf16.mxu1 %v2365_v33  ;;  %v2432_v32 = vld [vmem:[%s3446_s1 + $0x268] ss:$16 sps:$4 sm:$0xff]   ;;  %v2437_v33 = vld [vmem:[%s3446_s1 + $0x284] ss:$16 sps:$4 sm:$0xff]   ;;  %v2489_v8 = vld [vmem:[%s3446_s1 + $0x3a0] ss:$16 sps:$4 sm:$0xff]  }
  0x23   :  { %1321 = vmatpush1.bf16.msra.mxu0 %v2367_v34  ;;  %1485 = vmatpush1.bf16.msra.mxu1 %v2368_v35  ;;  %v2440_v34 = vld [vmem:[%s3446_s1 + $0x28c] ss:$16 sps:$4 sm:$0xff]   ;;  %v2435_v35 = vld [vmem:[%s3446_s1 + $0x280] ss:$16 sps:$4 sm:$0xff]  }
  0x24   :  { %1322 = vmatprep.subr.bf16.mxu0 %v2369_v39  ;;  %1486 = vmatprep.subr.bf16.mxu1 %v2371_v40  ;;  %v2441_v39 = vld [vmem:[%s3446_s1 + $0x2a0] ss:$16 sps:$4 sm:$0xff]   ;;  %v2444_v40 = vld [vmem:[%s3446_s1 + $0x2a8] ss:$16 sps:$4 sm:$0xff]  }
  0x27   :  { %1323 = vmatpush1.bf16.msra.mxu0 %v2373_v41  ;;  %1487 = vmatpush1.bf16.msra.mxu1 %v2374_v44  ;;  %v2449_v41 = vld [vmem:[%s3446_s1 + $0x2c4] ss:$16 sps:$4 sm:$0xff]   ;;  %v2447_v44 = vld [vmem:[%s3446_s1 + $0x2c0] ss:$16 sps:$4 sm:$0xff]  }
  0x28   :  { %1324 = vmatprep.subr.bf16.mxu0 %v2375_v45  ;;  %1488 = vmatprep.subr.bf16.mxu1 %v2377_v46  ;;  %v2450_v45 = vld [vmem:[%s3446_s1 + $0x2c8] ss:$16 sps:$4 sm:$0xff]   ;;  %v2455_v46 = vld [vmem:[%s3446_s1 + $0x2e4] ss:$16 sps:$4 sm:$0xff]  }
  0x2b   :  { %1325 = vmatpush1.bf16.msra.mxu0 %v2379_v47  ;;  %1489 = vmatpush1.bf16.msra.mxu1 %v2380_v48  ;;  %v2458_v47 = vld [vmem:[%s3446_s1 + $0x2ec] ss:$16 sps:$4 sm:$0xff]   ;;  %v2453_v48 = vld [vmem:[%s3446_s1 + $0x2e0] ss:$16 sps:$4 sm:$0xff]  }
  0x2c   :  { %1326 = vmatprep.subr.bf16.mxu0 %v2381_v50  ;;  %1490 = vmatprep.subr.bf16.mxu1 %v2383_v51  ;;  %v2461_v50 = vld [vmem:[%s3446_s1 + $0x304] ss:$16 sps:$4 sm:$0xff]   ;;  %v2464_v51 = vld [vmem:[%s3446_s1 + $0x30c] ss:$16 sps:$4 sm:$0xff]  }
  0x2f   :  { %1327 = vmatpush1.bf16.msra.mxu0 %v2385_v53  ;;  %1491 = vmatpush1.bf16.msra.mxu1 %v2386_v55  ;;  %v2462_v53 = vld [vmem:[%s3446_s1 + $0x308] ss:$16 sps:$4 sm:$0xff]   ;;  %v2470_v55 = vld [vmem:[%s3446_s1 + $0x32c] ss:$16 sps:$4 sm:$0xff]  }
  0x30   :  { %1328 = vmatprep.subr.bf16.mxu0 %v2387_v56  ;;  %1492 = vmatprep.subr.bf16.mxu1 %v2389_v57  ;;  %v2465_v56 = vld [vmem:[%s3446_s1 + $0x320] ss:$16 sps:$4 sm:$0xff]   ;;  %v2468_v57 = vld [vmem:[%s3446_s1 + $0x328] ss:$16 sps:$4 sm:$0xff]  }
  0x33   :  { %1329 = vmatpush1.bf16.msra.mxu0 %v2391_v59  ;;  %1493 = vmatpush1.bf16.msra.mxu1 %v2392_v61  ;;  %v2476_v59 = vld [vmem:[%s3446_s1 + $0x34c] ss:$16 sps:$4 sm:$0xff]   ;;  %v2474_v61 = vld [vmem:[%s3446_s1 + $0x348] ss:$16 sps:$4 sm:$0xff]  }
  0x34   :  { %1330 = vmatprep.subr.bf16.mxu0 %v2393_v62  ;;  %1494 = vmatprep.subr.bf16.mxu1 %v2395_v63  ;;  %v2479_v62 = vld [vmem:[%s3446_s1 + $0x364] ss:$16 sps:$4 sm:$0xff]   ;;  %v2482_v63 = vld [vmem:[%s3446_s1 + $0x36c] ss:$16 sps:$4 sm:$0xff]  }
  0x37   :  { %1331 = vmatpush1.bf16.msra.mxu0 %v2397_v0  ;;  %1495 = vmatpush1.bf16.msra.mxu1 %v2398_v1  ;;  %v2477_v0 = vld [vmem:[%s3446_s1 + $0x360] ss:$16 sps:$4 sm:$0xff]   ;;  %v2480_v1 = vld [vmem:[%s3446_s1 + $0x368] ss:$16 sps:$4 sm:$0xff]  }
  0x38   :  { %1332 = vmatprep.subr.bf16.mxu0 %v2399_v2  ;;  %1496 = vmatprep.subr.bf16.mxu1 %v2401_v3  ;;  %v2485_v2 = vld [vmem:[%s3446_s1 + $0x384] ss:$16 sps:$4 sm:$0xff]   ;;  %v2488_v3 = vld [vmem:[%s3446_s1 + $0x38c] ss:$16 sps:$4 sm:$0xff]  }
  0x3b   :  { %1333 = vmatpush1.bf16.msra.mxu0 %v2403_v4  ;;  %1497 = vmatpush1.bf16.msra.mxu1 %v2404_v5  ;;  %v2483_v4 = vld [vmem:[%s3446_s1 + $0x380] ss:$16 sps:$4 sm:$0xff]   ;;  %v2486_v5 = vld [vmem:[%s3446_s1 + $0x388] ss:$16 sps:$4 sm:$0xff]  }
  0x3c   :  { %1334 = vmatprep.subr.bf16.mxu0 %v2405_v6  ;;  %1498 = vmatprep.subr.bf16.mxu1 %v2407_v7  ;;  %v2491_v6 = vld [vmem:[%s3446_s1 + $0x3a4] ss:$16 sps:$4 sm:$0xff]   ;;  %v2494_v7 = vld [vmem:[%s3446_s1 + $0x3ac] ss:$16 sps:$4 sm:$0xff]  }
  0x3f   :  { %1335 = vmatpush1.bf16.msra.mxu0 %v2409_v9  ;;  %1499 = vmatpush1.bf16.msra.mxu1 %v2410_v10  ;;  %v2492_v9 = vld [vmem:[%s3446_s1 + $0x3a8] ss:$16 sps:$4 sm:$0xff]   ;;  %v2497_v10 = vld [vmem:[%s3446_s1 + $0x3c4] ss:$16 sps:$4 sm:$0xff]  }
  0x40   :  { %1345 = vmatprep.subr.bf16.mxu0 %v2413_v12  ;;  %1509 = vmatprep.subr.bf16.mxu1 %v2416_v13  ;;  %v2495_v12 = vld [vmem:[%s3446_s1 + $0x3c0] ss:$16 sps:$4 sm:$0xff]   ;;  %v2498_v13 = vld [vmem:[%s3446_s1 + $0x3c8] ss:$16 sps:$4 sm:$0xff]  }
  0x42   :  { %1337 = vmatmul.mubr.bf16.vlgmr.msra.gmra.mrb[0].mxu0 %v2912_v16  ;;  %1501 = vmatmul.mubr.bf16.vlgmr.msra.gmra.mrb[0].mxu1 %v2912_v16 }
  0x43   :  { %1346 = vmatpush1.bf16.msra.mxu0 %v2411_v15  ;;  %1510 = vmatpush1.bf16.msra.mxu1 %v2414_v17  ;;  %v2506_v15 = vld [vmem:[%s3446_s1 + $0x3ec] ss:$16 sps:$4 sm:$0xff]   ;;  %v2501_v17 = vld [vmem:[%s3446_s1 + $0x3e0] ss:$16 sps:$4 sm:$0xff]  }
  0x44   :  { %1347 = vmatprep.subr.bf16.mxu0 %v2419_v20  ;;  %1511 = vmatprep.subr.bf16.mxu1 %v2422_v21  ;;  %v2504_v20 = vld [vmem:[%s3446_s1 + $0x3e8] ss:$16 sps:$4 sm:$0xff]   ;;  %v2509_v21 = vld [vmem:[%s3446_s1 + $0x404] ss:$16 sps:$4 sm:$0xff]  }
  0x45   :  { %1377 = vmatprep.mubr.bf16.mxu0 %v293_v22  ;;  %1541 = vmatprep.mubr.bf16.mxu1 %v293_v22  ;;  %v2512_v22 = vld [vmem:[%s3446_s1 + $0x40c] ss:$16 sps:$4 sm:$0xff]  }
  0x47   :  { %1348 = vmatpush1.bf16.msra.mxu0 %v2417_v23  ;;  %1512 = vmatpush1.bf16.msra.mxu1 %v2420_v24  ;;  %v2507_v23 = vld [vmem:[%s3446_s1 + $0x400] ss:$16 sps:$4 sm:$0xff]   ;;  %v291_v24 = vcombine.high %v2912_v16, %v2912_v16 }
  0x48   :  { %1349 = vmatprep.subr.bf16.mxu0 %v2425_v25  ;;  %1513 = vmatprep.subr.bf16.mxu1 %v2428_v26  ;;  %v2510_v25 = vld [vmem:[%s3446_s1 + $0x408] ss:$16 sps:$4 sm:$0xff]   ;;  %v2515_v26 = vld [vmem:[%s3446_s1 + $0x424] ss:$16 sps:$4 sm:$0xff]   ;;  %v2513_v16 = vld [vmem:[%s3446_s1 + $0x420] ss:$16 sps:$4 sm:$0xff]  }
  0x4b   :  { %1350 = vmatpush1.bf16.msra.mxu0 %v2423_v27  ;;  %1514 = vmatpush1.bf16.msra.mxu1 %v2426_v28  ;;  %v2518_v27 = vld [vmem:[%s3446_s1 + $0x42c] ss:$16 sps:$4 sm:$0xff]   ;;  %v2516_v28 = vld [vmem:[%s3446_s1 + $0x428] ss:$16 sps:$4 sm:$0xff]  }
  0x4c   :  { %1351 = vmatprep.subr.bf16.mxu0 %v2431_v29  ;;  %1515 = vmatprep.subr.bf16.mxu1 %v2434_v30  ;;  %v2521_v29 = vld [vmem:[%s3446_s1 + $0x444] ss:$16 sps:$4 sm:$0xff]   ;;  %v2524_v30 = vld [vmem:[%s3446_s1 + $0x44c] ss:$16 sps:$4 sm:$0xff]  }
  0x4f   :  { %1352 = vmatpush1.bf16.msra.mxu0 %v2429_v31  ;;  %1516 = vmatpush1.bf16.msra.mxu1 %v2432_v32  ;;  %v2519_v31 = vld [vmem:[%s3446_s1 + $0x440] ss:$16 sps:$4 sm:$0xff]   ;;  %v2522_v32 = vld [vmem:[%s3446_s1 + $0x448] ss:$16 sps:$4 sm:$0xff]  }
  0x50   :  { %1353 = vmatprep.subr.bf16.mxu0 %v2437_v33  ;;  %1517 = vmatprep.subr.bf16.mxu1 %v2440_v34  ;;  %v2527_v33 = vld [vmem:[%s3446_s1 + $0x464] ss:$16 sps:$4 sm:$0xff]   ;;  %v2530_v34 = vld [vmem:[%s3446_s1 + $0x46c] ss:$16 sps:$4 sm:$0xff]  }
  0x53   :  { %1354 = vmatpush1.bf16.msra.mxu0 %v2435_v35  ;;  %1518 = vmatpush1.bf16.msra.mxu1 %v2438_v36  ;;  %v2528_v35 = vld [vmem:[%s3446_s1 + $0x468] ss:$16 sps:$4 sm:$0xff]   ;;  %v2533_v36 = vld [vmem:[%s3446_s1 + $0x484] ss:$16 sps:$4 sm:$0xff]  }
  0x54   :  { %1355 = vmatprep.subr.bf16.mxu0 %v2443_v37  ;;  %1519 = vmatprep.subr.bf16.mxu1 %v2446_v38  ;;  %v2536_v37 = vld [vmem:[%s3446_s1 + $0x48c] ss:$16 sps:$4 sm:$0xff]   ;;  %v2531_v38 = vld [vmem:[%s3446_s1 + $0x480] ss:$16 sps:$4 sm:$0xff]  }
  0x57   :  { %1356 = vmatpush1.bf16.msra.mxu0 %v2441_v39  ;;  %1520 = vmatpush1.bf16.msra.mxu1 %v2444_v40  ;;  %v2534_v39 = vld [vmem:[%s3446_s1 + $0x488] ss:$16 sps:$4 sm:$0xff]   ;;  %v2539_v40 = vld [vmem:[%s3446_s1 + $0x4a4] ss:$16 sps:$4 sm:$0xff]  }
  0x58   :  { %1357 = vmatprep.subr.bf16.mxu0 %v2449_v41  ;;  %1521 = vmatprep.subr.bf16.mxu1 %v2452_v43  ;;  %v2542_v41 = vld [vmem:[%s3446_s1 + $0x4ac] ss:$16 sps:$4 sm:$0xff]   ;;  %v2537_v43 = vld [vmem:[%s3446_s1 + $0x4a0] ss:$16 sps:$4 sm:$0xff]  }
  0x5b   :  { %1358 = vmatpush1.bf16.msra.mxu0 %v2447_v44  ;;  %1522 = vmatpush1.bf16.msra.mxu1 %v2450_v45  ;;  %v2540_v44 = vld [vmem:[%s3446_s1 + $0x4a8] ss:$16 sps:$4 sm:$0xff]   ;;  %v2545_v45 = vld [vmem:[%s3446_s1 + $0x4c4] ss:$16 sps:$4 sm:$0xff]  }
  0x5c   :  { %1359 = vmatprep.subr.bf16.mxu0 %v2455_v46  ;;  %1523 = vmatprep.subr.bf16.mxu1 %v2458_v47  ;;  %v2548_v46 = vld [vmem:[%s3446_s1 + $0x4cc] ss:$16 sps:$4 sm:$0xff]   ;;  %v2543_v47 = vld [vmem:[%s3446_s1 + $0x4c0] ss:$16 sps:$4 sm:$0xff]  }
  0x5f   :  { %1360 = vmatpush1.bf16.msra.mxu0 %v2453_v48  ;;  %1524 = vmatpush1.bf16.msra.mxu1 %v2456_v49  ;;  %v2546_v48 = vld [vmem:[%s3446_s1 + $0x4c8] ss:$16 sps:$4 sm:$0xff]   ;;  %v2551_v49 = vld [vmem:[%s3446_s1 + $0x4e4] ss:$16 sps:$4 sm:$0xff]  }
  0x60   :  { %1361 = vmatprep.subr.bf16.mxu0 %v2461_v50  ;;  %1525 = vmatprep.subr.bf16.mxu1 %v2464_v51  ;;  %v2554_v50 = vld [vmem:[%s3446_s1 + $0x4ec] ss:$16 sps:$4 sm:$0xff]   ;;  %v2549_v51 = vld [vmem:[%s3446_s1 + $0x4e0] ss:$16 sps:$4 sm:$0xff]  }
  0x63   :  { %1362 = vmatpush1.bf16.msra.mxu0 %v2459_v52  ;;  %1526 = vmatpush1.bf16.msra.mxu1 %v2462_v53  ;;  %v2552_v52 = vld [vmem:[%s3446_s1 + $0x4e8] ss:$16 sps:$4 sm:$0xff]   ;;  %v2557_v53 = vld [vmem:[%s3446_s1 + $0x504] ss:$16 sps:$4 sm:$0xff]  }
  0x64   :  { %1363 = vmatprep.subr.bf16.mxu0 %v2467_v54  ;;  %1527 = vmatprep.subr.bf16.mxu1 %v2470_v55  ;;  %v2560_v54 = vld [vmem:[%s3446_s1 + $0x50c] ss:$16 sps:$4 sm:$0xff]   ;;  %v2555_v55 = vld [vmem:[%s3446_s1 + $0x500] ss:$16 sps:$4 sm:$0xff]  }
  0x67   :  { %1364 = vmatpush1.bf16.msra.mxu0 %v2465_v56  ;;  %1528 = vmatpush1.bf16.msra.mxu1 %v2468_v57  ;;  %v2558_v56 = vld [vmem:[%s3446_s1 + $0x508] ss:$16 sps:$4 sm:$0xff]   ;;  %v2563_v57 = vld [vmem:[%s3446_s1 + $0x524] ss:$16 sps:$4 sm:$0xff]  }
  0x68   :  { %1365 = vmatprep.subr.bf16.mxu0 %v2473_v58  ;;  %1529 = vmatprep.subr.bf16.mxu1 %v2476_v59  ;;  %v2566_v58 = vld [vmem:[%s3446_s1 + $0x52c] ss:$16 sps:$4 sm:$0xff]  }
  0x6b   :  { %1366 = vmatpush1.bf16.msra.mxu0 %v2471_v60  ;;  %1530 = vmatpush1.bf16.msra.mxu1 %v2474_v61 }
  0x6c   :  { %1367 = vmatprep.subr.bf16.mxu0 %v2479_v62  ;;  %1531 = vmatprep.subr.bf16.mxu1 %v2482_v63 }
  0x6f   :  { %1368 = vmatpush1.bf16.msra.mxu0 %v2477_v0  ;;  %1532 = vmatpush1.bf16.msra.mxu1 %v2480_v1 }
  0x70   :  { %1369 = vmatprep.subr.bf16.mxu0 %v2485_v2  ;;  %1533 = vmatprep.subr.bf16.mxu1 %v2488_v3 }
  0x73   :  { %1370 = vmatpush1.bf16.msra.mxu0 %v2483_v4  ;;  %1534 = vmatpush1.bf16.msra.mxu1 %v2486_v5 }
  0x74   :  { %1371 = vmatprep.subr.bf16.mxu0 %v2491_v6  ;;  %1535 = vmatprep.subr.bf16.mxu1 %v2494_v7 }
  0x77   :  { %1372 = vmatpush1.bf16.msra.mxu0 %v2489_v8  ;;  %1536 = vmatpush1.bf16.msra.mxu1 %v2492_v9 }
  0x78   :  { %1373 = vmatprep.subr.bf16.mxu0 %v2497_v10  ;;  %1537 = vmatprep.subr.bf16.mxu1 %v2500_v11 }
  0x7b   :  { %1374 = vmatpush1.bf16.msra.mxu0 %v2495_v12  ;;  %1538 = vmatpush1.bf16.msra.mxu1 %v2498_v13 }
  0x7c   :  { %1375 = vmatprep.subr.bf16.mxu0 %v2503_v14  ;;  %1539 = vmatprep.subr.bf16.mxu1 %v2506_v15 }
  0x7f   :  { %1376 = vmatpush1.bf16.msra.mxu0 %v2501_v17  ;;  %1540 = vmatpush1.bf16.msra.mxu1 %v2504_v20 }
  0x80   :  { %1386 = vmatprep.subr.bf16.mxu0 %v2509_v21  ;;  %1550 = vmatprep.subr.bf16.mxu1 %v2512_v22 }
  0x82   :  { %1378 = vmatmul.mubr.bf16.vlgmr.msra.gmra.mrb[0].mxu0 %v291_v24  ;;  %1542 = vmatmul.mubr.bf16.vlgmr.msra.gmra.mrb[0].mxu1 %v291_v24 }
  0x83   :  { %1387 = vmatpush1.bf16.msra.mxu0 %v2507_v23  ;;  %1551 = vmatpush1.bf16.msra.mxu1 %v2510_v25 }
  0x84   :  { %1388 = vmatprep.subr.bf16.mxu0 %v2515_v26  ;;  %1552 = vmatprep.subr.bf16.mxu1 %v2518_v27 }
  0x85   :  { %1418 = vmatprep.mubr.bf16.mxu0 %v2917_v18  ;;  %1582 = vmatprep.mubr.bf16.mxu1 %v2917_v18  ;;  %v2525_v18 = vld [vmem:[%s3446_s1 + $0x460] ss:$16 sps:$4 sm:$0xff]  }
  0x87   :  { %1389 = vmatpush1.bf16.msra.mxu0 %v2513_v16  ;;  %1553 = vmatpush1.bf16.msra.mxu1 %v2516_v28 }
  0x88   :  { %1390 = vmatprep.subr.bf16.mxu0 %v2521_v29  ;;  %1554 = vmatprep.subr.bf16.mxu1 %v2524_v30 }
  0x8b   :  { %1391 = vmatpush1.bf16.msra.mxu0 %v2519_v31  ;;  %1555 = vmatpush1.bf16.msra.mxu1 %v2522_v32 }
  0x8c   :  { %1392 = vmatprep.subr.bf16.mxu0 %v2527_v33  ;;  %1556 = vmatprep.subr.bf16.mxu1 %v2530_v34 }
  0x8f   :  { %1393 = vmatpush1.bf16.msra.mxu0 %v2525_v18  ;;  %1557 = vmatpush1.bf16.msra.mxu1 %v2528_v35 }
  0x90   :  { %1394 = vmatprep.subr.bf16.mxu0 %v2533_v36  ;;  %1558 = vmatprep.subr.bf16.mxu1 %v2536_v37 }
  0x93   :  { %1395 = vmatpush1.bf16.msra.mxu0 %v2531_v38  ;;  %1559 = vmatpush1.bf16.msra.mxu1 %v2534_v39 }
  0x94   :  { %1396 = vmatprep.subr.bf16.mxu0 %v2539_v40  ;;  %1560 = vmatprep.subr.bf16.mxu1 %v2542_v41 }
  0x97   :  { %1397 = vmatpush1.bf16.msra.mxu0 %v2537_v43  ;;  %1561 = vmatpush1.bf16.msra.mxu1 %v2540_v44 }
  0x98   :  { %1398 = vmatprep.subr.bf16.mxu0 %v2545_v45  ;;  %1562 = vmatprep.subr.bf16.mxu1 %v2548_v46 }
  0x9b   :  { %1399 = vmatpush1.bf16.msra.mxu0 %v2543_v47  ;;  %1563 = vmatpush1.bf16.msra.mxu1 %v2546_v48 }
  0x9c   :  { %1400 = vmatprep.subr.bf16.mxu0 %v2551_v49  ;;  %1564 = vmatprep.subr.bf16.mxu1 %v2554_v50 }
  0x9f   :  { %1401 = vmatpush1.bf16.msra.mxu0 %v2549_v51  ;;  %1565 = vmatpush1.bf16.msra.mxu1 %v2552_v52 }
  0xa0   :  { %1402 = vmatprep.subr.bf16.mxu0 %v2557_v53  ;;  %1566 = vmatprep.subr.bf16.mxu1 %v2560_v54 }
  0xa1   :  { %10 = vsyncpa [#allocation3], 0  ;;  %v2561_v59 = vld [vmem:[%s3446_s1 + $0x520] ss:$16 sps:$4 sm:$0xff]   ;;  %v2564_v60 = vld [vmem:[%s3446_s1 + $0x528] ss:$16 sps:$4 sm:$0xff]   ;;  %v292_v34 = vcombine.high %v2919_v19, %v2919_v19 }
  0xa2   :  { %v2569_v61 = vld [vmem:[%s3446_s1 + $0x544] ss:$16 sps:$4 sm:$0xff]   ;;  %v2572_v62 = vld [vmem:[%s3446_s1 + $0x54c] ss:$16 sps:$4 sm:$0xff]   ;;  %v2567_v63 = vld [vmem:[%s3446_s1 + $0x540] ss:$16 sps:$4 sm:$0xff]  }
  0xa3   :  { %1403 = vmatpush1.bf16.msra.mxu0 %v2555_v55  ;;  %1567 = vmatpush1.bf16.msra.mxu1 %v2558_v56  ;;  %v2570_v0 = vld [vmem:[%s3446_s1 + $0x548] ss:$16 sps:$4 sm:$0xff]   ;;  %v2575_v1 = vld [vmem:[%s3446_s1 + $0x564] ss:$16 sps:$4 sm:$0xff]   ;;  %v2578_v2 = vld [vmem:[%s3446_s1 + $0x56c] ss:$16 sps:$4 sm:$0xff]  }
  0xa4   :  { %1404 = vmatprep.subr.bf16.mxu0 %v2563_v57  ;;  %1568 = vmatprep.subr.bf16.mxu1 %v2566_v58  ;;  %v2573_v3 = vld [vmem:[%s3446_s1 + $0x560] ss:$16 sps:$4 sm:$0xff]   ;;  %v2576_v4 = vld [vmem:[%s3446_s1 + $0x568] ss:$16 sps:$4 sm:$0xff]   ;;  %v2581_v5 = vld [vmem:[%s3446_s1 + $0x584] ss:$16 sps:$4 sm:$0xff]  }
  0xa5   :  { %v2584_v6 = vld [vmem:[%s3446_s1 + $0x58c] ss:$16 sps:$4 sm:$0xff]   ;;  %v2579_v7 = vld [vmem:[%s3446_s1 + $0x580] ss:$16 sps:$4 sm:$0xff]   ;;  %v2582_v8 = vld [vmem:[%s3446_s1 + $0x588] ss:$16 sps:$4 sm:$0xff]  }
  0xa6   :  { %v2587_v9 = vld [vmem:[%s3446_s1 + $0x5a4] ss:$16 sps:$4 sm:$0xff]   ;;  %v2590_v10 = vld [vmem:[%s3446_s1 + $0x5ac] ss:$16 sps:$4 sm:$0xff]   ;;  %v2585_v11 = vld [vmem:[%s3446_s1 + $0x5a0] ss:$16 sps:$4 sm:$0xff]  }
  0xa7   :  { %1405 = vmatpush1.bf16.msra.mxu0 %v2561_v59  ;;  %1569 = vmatpush1.bf16.msra.mxu1 %v2564_v60  ;;  %v2588_v12 = vld [vmem:[%s3446_s1 + $0x5a8] ss:$16 sps:$4 sm:$0xff]   ;;  %v2593_v13 = vld [vmem:[%s3446_s1 + $0x5c4] ss:$16 sps:$4 sm:$0xff]   ;;  %v2596_v14 = vld [vmem:[%s3446_s1 + $0x5cc] ss:$16 sps:$4 sm:$0xff]  }
  0xa8   :  { %1406 = vmatprep.subr.bf16.mxu0 %v2569_v61  ;;  %1570 = vmatprep.subr.bf16.mxu1 %v2572_v62  ;;  %v2591_v15 = vld [vmem:[%s3446_s1 + $0x5c0] ss:$16 sps:$4 sm:$0xff]   ;;  %v2594_v17 = vld [vmem:[%s3446_s1 + $0x5c8] ss:$16 sps:$4 sm:$0xff]   ;;  %v2599_v20 = vld [vmem:[%s3446_s1 + $0x5e4] ss:$16 sps:$4 sm:$0xff]  }
  0xa9   :  { %v2602_v21 = vld [vmem:[%s3446_s1 + $0x5ec] ss:$16 sps:$4 sm:$0xff]   ;;  %v2597_v22 = vld [vmem:[%s3446_s1 + $0x5e0] ss:$16 sps:$4 sm:$0xff]   ;;  %v2600_v23 = vld [vmem:[%s3446_s1 + $0x5e8] ss:$16 sps:$4 sm:$0xff]  }
  0xaa   :  { %v2606_v24 = vld [vmem:[%s3446_s1 + $0x604] ss:$16 sps:$4 sm:$0xff]   ;;  %v2609_v25 = vld [vmem:[%s3446_s1 + $0x60c] ss:$16 sps:$4 sm:$0xff]   ;;  %v2604_v26 = vld [vmem:[%s3446_s1 + $0x600] ss:$16 sps:$4 sm:$0xff]  }
  0xab   :  { %1407 = vmatpush1.bf16.msra.mxu0 %v2567_v63  ;;  %1571 = vmatpush1.bf16.msra.mxu1 %v2570_v0  ;;  %v2607_v27 = vld [vmem:[%s3446_s1 + $0x608] ss:$16 sps:$4 sm:$0xff]   ;;  %v2612_v16 = vld [vmem:[%s3446_s1 + $0x624] ss:$16 sps:$4 sm:$0xff]   ;;  %v2615_v28 = vld [vmem:[%s3446_s1 + $0x62c] ss:$16 sps:$4 sm:$0xff]  }
  0xac   :  { %1408 = vmatprep.subr.bf16.mxu0 %v2575_v1  ;;  %1572 = vmatprep.subr.bf16.mxu1 %v2578_v2  ;;  %v2610_v29 = vld [vmem:[%s3446_s1 + $0x620] ss:$16 sps:$4 sm:$0xff]   ;;  %v2613_v30 = vld [vmem:[%s3446_s1 + $0x628] ss:$16 sps:$4 sm:$0xff]   ;;  %v2673_v33 = vmov 0   ;;  %vm1300_vm0 = vcmask 261120  }
  0xad   :  { %v2616_v31 = vld [vmem:[%s3448_s3 + $0x40] sm:$0xff]   ;;  %v2620_v36 = vld [vmem:[%s3448_s3 + $0x48] sm:$0xff]   ;;  %v2624_v39 = vld [vmem:[%s3448_s3 + $0x50] sm:$0xff]   ;;  %vm1903_vm1 = vcmask 1041408   ;;  %v227_v0 = vsub.s32 0, %v2822_v42  ;;  %v235_v1 = vsub.s32 2, %v2822_v42 }
  0xae   :  { %v2617_v32 = vld [vmem:[%s3448_s3 + $0xc0] sm:$0xff]   ;;  %v2621_v37 = vld [vmem:[%s3448_s3 + $0xc8] sm:$0xff]   ;;  %v2625_v40 = vld [vmem:[%s3448_s3 + $0xd0] sm:$0xff]   ;;  %vm1899_vm2 = vcmask 949248   ;;  %s2674_s19 = smov [#allocation2]   ;;  %vm1987_vm3 = vcmask 74752  }
  0xaf   :  { %1409 = vmatpush1.bf16.msra.mxu0 %v2573_v3  ;;  %1573 = vmatpush1.bf16.msra.mxu1 %v2576_v4  ;;  %v2618_v18 = vld [vmem:[%s3448_s3] sm:$0xff]   ;;  %v2623_v38 = vld [vmem:[%s3448_s3 + $0x88] sm:$0xff]   ;;  %v2626_v41 = vld [vmem:[%s3448_s3 + $0x10] sm:$0xff]   ;;  %v231_v3 = vsub.s32 1, %v2822_v42  ;;  %v239_v4 = vsub.s32 3, %v2822_v42  ;;  %s1995_s0 = sshll.u32 %s2674_s19, 4  ;;  %s1996_s0 = int_to_ptr.vmem [resolvable:$true] %s1995_s0 }
  0xb0   :  { %1410 = vmatprep.subr.bf16.mxu0 %v2581_v5  ;;  %1574 = vmatprep.subr.bf16.mxu1 %v2584_v6  ;;  %v2619_v35 = vld [vmem:[%s3448_s3 + $0x80] sm:$0xff]   ;;  %v2627_v43 = vld [vmem:[%s3448_s3 + $0x90] sm:$0xff]   ;;  %v2628_v44 = vld [vmem:[%s3448_s3 + $0x58] sm:$0xff]   ;;  %s2648_s20 = scalar_lea.vmem %s1996_s0, 32  ;;  %p2653_p1 = scmp.lt.s32.totalorder %s1996_s0, %s1996_s0 }
  0xb1   :  { %v2629_v45 = vld [vmem:[%s3448_s3 + $0xd8] sm:$0xff]   ;;  %v2632_v48 = vld [vmem:[%s3448_s3 + $0x60] sm:$0xff]   ;;  %v2636_v52 = vld [vmem:[%s3448_s3 + $0x68] sm:$0xff]   ;;  %p2649_p0 = scmp.ne.s32.totalorder %s1996_s0, %s2648_s20  ;;  %p2654_p2 = scmp.lt.s32.totalorder %s2648_s20, %s2648_s20 }
  0xb2   :  { %v2630_v46 = vld [vmem:[%s3448_s3 + $0x18] sm:$0xff]   ;;  %v2633_v49 = vld [vmem:[%s3448_s3 + $0xe0] sm:$0xff]   ;;  %v2637_v53 = vld [vmem:[%s3448_s3 + $0xe8] sm:$0xff]  }
  0xb3   :  { %1411 = vmatpush1.bf16.msra.mxu0 %v2579_v7  ;;  %1575 = vmatpush1.bf16.msra.mxu1 %v2582_v8  ;;  %v2631_v47 = vld [vmem:[%s3448_s3 + $0x98] sm:$0xff]   ;;  %v2634_v50 = vld [vmem:[%s3448_s3 + $0x20] sm:$0xff]   ;;  %v2638_v54 = vld [vmem:[%s3448_s3 + $0x28] sm:$0xff]   ;;  %p2655_p3 = por %p2654_p2, %p2653_p1 }
  0xb4   :  { %1412 = vmatprep.subr.bf16.mxu0 %v2587_v9  ;;  %1576 = vmatprep.subr.bf16.mxu1 %v2590_v10  ;;  %v2635_v51 = vld [vmem:[%s3448_s3 + $0xa0] sm:$0xff]   ;;  %v2639_v55 = vld [vmem:[%s3448_s3 + $0xa8] sm:$0xff]   ;;  %v2640_v56 = vld [vmem:[%s3448_s3 + $0x70] sm:$0xff]  }
  0xb5   :  { %v2641_v57 = vld [vmem:[%s3448_s3 + $0xf0] sm:$0xff]   ;;  %v2644_v60 = vld [vmem:[%s3448_s3 + $0x78] sm:$0xff]   ;;  %v223_v2 = vld [vmem:[%s3447_s2] sm:$0xf]  ;;  %p2656_p4 = pnand %p2655_p3, %p2649_p0 }
  0xb6   :  { %v2642_v58 = vld [vmem:[%s3448_s3 + $0x30] sm:$0xff]   ;;  %v2645_v61 = vld [vmem:[%s3448_s3 + $0xf8] ss:$0 sps:$4 sm:$0x33]   ;;  %v228_v5 = vrot.slane %v223_v2, %v227_v0  ;;  %v236_v6 = vrot.slane %v223_v2, %v235_v1  ;;  %v232_v7 = vrot.slane %v223_v2, %v231_v3  ;;  %v240_v8 = vrot.slane %v223_v2, %v239_v4 }
  0xb7   :  { %1413 = vmatpush1.bf16.msra.mxu0 %v2585_v11  ;;  %1577 = vmatpush1.bf16.msra.mxu1 %v2588_v12  ;;  %v2643_v59 = vld [vmem:[%s3448_s3 + $0xb0] sm:$0xff]   ;;  %v2646_v62 = vld [vmem:[%s3448_s3 + $0x38] sm:$0xff]  }
  0xb8   :  { %1414 = vmatprep.subr.bf16.mxu0 %v2593_v13  ;;  %1578 = vmatprep.subr.bf16.mxu1 %v2596_v14  ;;  %v2647_v63 = vld [vmem:[%s3448_s3 + $0xb8] sm:$0xff]  }
  0xbb   :  { %1415 = vmatpush1.bf16.msra.mxu0 %v2591_v15  ;;  %1579 = vmatpush1.bf16.msra.mxu1 %v2594_v17 }
  0xbc   :  { %1416 = vmatprep.subr.bf16.mxu0 %v2599_v20  ;;  %1580 = vmatprep.subr.bf16.mxu1 %v2602_v21 }
  0xbf   :  { %1417 = vmatpush1.bf16.msra.mxu0 %v2597_v22  ;;  %1581 = vmatpush1.bf16.msra.mxu1 %v2600_v23 }
  0xc0   :  { %1427 = vmatprep.subr.bf16.mxu0 %v2606_v24  ;;  %1591 = vmatprep.subr.bf16.mxu1 %v2609_v25 }
  0xc2   :  { %1419 = vmatmul.mubr.bf16.vlgmr.msra.gmra.mrb[0].mxu0 %v2919_v19  ;;  %1583 = vmatmul.mubr.bf16.vlgmr.msra.gmra.mrb[0].mxu1 %v2919_v19  ;;  %v2622_v19 = vld [vmem:[%s3448_s3 + $0x8] sm:$0xff]  }
  0xc3   :  { %1428 = vmatpush1.bf16.msra.mxu0 %v2604_v26  ;;  %1592 = vmatpush1.bf16.msra.mxu1 %v2607_v27 }
  0xc4   :  { %1429 = vmatprep.subr.bf16.mxu0 %v2612_v16  ;;  %1593 = vmatprep.subr.bf16.mxu1 %v2615_v28 }
  0xc5   :  { %1459 = vmatprep.mubr.bf16.mxu0 %v2673_v33  ;;  %1623 = vmatprep.mubr.bf16.mxu1 %v2673_v33 }
  0xc7   :  { %1430 = vmatpush1.bf16.msra.mxu0 %v2610_v29  ;;  %1594 = vmatpush1.bf16.msra.mxu1 %v2613_v30 }
  0xc8   :  { %2239 = vmatprep.subr.bf16.mxu0 %v2616_v31  ;;  %2261 = vmatprep.subr.bf16.mxu1 %v2617_v32  ;;  %v2205_v32 = vld [vmem:[%s3449_s4] ss:$0 sm:$0xff] }
  0xce   :  { %2203 = vmatmul.mubr.msk.bf16.vlgmr.msra.gmra.mrb[0].mxu0 %vm1300_vm0, %v292_v34  ;;  %2204 = vmatmul.mubr.msk.bf16.vlgmr.msra.gmra.mrb[0].mxu1 %vm1300_vm0, %v292_v34 }
  0xcf   :  { %2240 = vmatpush3.bf16.msra.mxu0 %v2618_v18  ;;  %2262 = vmatpush3.bf16.msra.mxu1 %v2619_v35 }
  0xd0   :  { %2241 = vmatprep.subr.bf16.mxu0 %v2620_v36  ;;  %2263 = vmatprep.subr.bf16.mxu1 %v2621_v37 }
  0xd3   :  { %2242 = vmatpush3.bf16.msra.mxu0 %v2622_v19  ;;  %2264 = vmatpush3.bf16.msra.mxu1 %v2623_v38 }
  0xd4   :  { %2243 = vmatprep.subr.bf16.mxu0 %v2624_v39  ;;  %2265 = vmatprep.subr.bf16.mxu1 %v2625_v40 }
  0xd7   :  { %2244 = vmatpush3.bf16.msra.mxu0 %v2626_v41  ;;  %2266 = vmatpush3.bf16.msra.mxu1 %v2627_v43 }
  0xd8   :  { %2245 = vmatprep.subr.bf16.mxu0 %v2628_v44  ;;  %2267 = vmatprep.subr.bf16.mxu1 %v2629_v45 }
  0xdb   :  { %2246 = vmatpush3.bf16.msra.mxu0 %v2630_v46  ;;  %2268 = vmatpush3.bf16.msra.mxu1 %v2631_v47 }
  0xdc   :  { %2247 = vmatprep.subr.bf16.mxu0 %v2632_v48  ;;  %2269 = vmatprep.subr.bf16.mxu1 %v2633_v49 }
  0xdf   :  { %2248 = vmatpush3.bf16.msra.mxu0 %v2634_v50  ;;  %2270 = vmatpush3.bf16.msra.mxu1 %v2635_v51 }
  0xe0   :  { %2249 = vmatprep.subr.bf16.mxu0 %v2636_v52  ;;  %2271 = vmatprep.subr.bf16.mxu1 %v2637_v53 }
  0xe3   :  { %2250 = vmatpush3.bf16.msra.mxu0 %v2638_v54  ;;  %2272 = vmatpush3.bf16.msra.mxu1 %v2639_v55 }
  0xe4   :  { %2251 = vmatprep.subr.bf16.mxu0 %v2640_v56  ;;  %2273 = vmatprep.subr.bf16.mxu1 %v2641_v57 }
  0xe7   :  { %2252 = vmatpush3.bf16.msra.mxu0 %v2642_v58  ;;  %2274 = vmatpush3.bf16.msra.mxu1 %v2643_v59 }
  0xe8   :  { %2253 = vmatprep.subr.bf16.mxu0 %v2644_v60  ;;  %2311 = vmatprep.subr.msk.bf16.mxu1 %vm1903_vm1, %v2645_v61 }
  0xeb   :  { %2254 = vmatpush3.bf16.msra.mxu0 %v2646_v62  ;;  %2276 = vmatpush3.bf16.msra.mxu1 %v2647_v63 }
 0x1a1   :  { %v1461_v9 = vpop.f32.mrb[0].mxu0  ;;  %v1625_v10 = vpop.f32.mrb[0].mxu1 }
 0x1a2   :  { %v2283_v11 = vadd.f32 %v1461_v9, %v228_v5  ;;  %v2285_v12 = vadd.f32 %v1625_v10, %v236_v6  ;;  %v1463_v13 = vpop.f32.mrb[1].mxu0  ;;  %v1627_v14 = vpop.f32.mrb[1].mxu1 }
 0x1a3   :  { %v2284_v15 = vadd.f32 %v1463_v13, %v232_v7  ;;  %v2286_v17 = vadd.f32 %v1627_v14, %v240_v8  ;;  %v1465_v20 = vpop.f32.mrb[2].mxu0  ;;  %v1629_v21 = vpop.f32.mrb[2].mxu1 }
 0x1a4   :  { %v1632_v22 = vmax.f32 %v2283_v11, 0.0  ;;  %v1634_v23 = vmax.f32 %v2285_v12, 0.0  ;;  %v1466_v24 = vpop.f32.mrb[3].mxu0  ;;  %v1630_v25 = vpop.f32.mrb[3].mxu1 }
 0x1a5   :  { %v1633_v26 = vmax.f32 %v2284_v15, 0.0  ;;  %v1635_v42 = vmax.f32 %v2286_v17, 0.0 }
 0x1a6   :  { %v1636_v28 = vpack.c.bf16 %v1632_v22, %v1632_v22  ;;  %v1638_v29 = vpack.c.bf16 %v1634_v23, %v1634_v23 }
 0x1a7   :  { %v1637_v27 = vpack.c.bf16 %v1633_v26, %v1633_v26  ;;  %v1639_v16 = vpack.c.bf16 %v1635_v42, %v1635_v42 }
 0x1a9   :  { %1939 = vmatprep.mubr.bf16.mxu0 %v1637_v27  ;;  %2238 = vmatprep.mubr.msk.bf16.mxu1 %vm1899_vm2, %v1639_v16 }
 0x1aa   :  { %1940 = vmatmul.mubr.bf16.vlgmr.msra.gmra.mrb[4].mxu0 %v1636_v28  ;;  %1980 = vmatmul.mubr.bf16.vlgmr.msra.gmra.mrb[4].mxu1 %v1638_v29 }
 0x27d   :  { %v2255_v30 = vpop.f32.mrb[4].mxu0  ;;  %v2277_v31 = vpop.f32.mrb[4].mxu1 }
 0x27e   :  { %v2256_v33 = vpop.f32.mrb[5].mxu0  ;;  %v2278_v34 = vpop.f32.mrb[5].mxu1 }
 0x27f   :  { %v2257_v18 = vadd.f32 %v2256_v33, %v2255_v30  ;;  %v2279_v35 = vadd.f32 %v2278_v34, %v2277_v31  ;;  %v2258_v36 = vpop.f32.mrb[6].mxu0  ;;  %v2280_v37 = vpop.f32.mrb[6].mxu1 }
 0x280   :  { %v2259_v19 = vpop.f32.mrb[7].mxu0  ;;  %v2281_v38 = vpop.f32.mrb[7].mxu1 }
 0x281   :  { %v1942_v39 = vadd.f32 %v2257_v18, %v2205_v32 }
 0x283   :  { %v1982_v40 = vadd.f32 %v2279_v35, %v1942_v39 }
 0x285   :  { %1988 = vst.msk [vmem:[#allocation2] sm:$0x3] %vm1987_vm3, %v1982_v40 }
 0x286   :  { %2659 = shalt.err (!%p2656_p4)
}
 0x287   :  { %s2660_s22 = scalar_lea.hbm %s3450_s5, 32 }
 0x288   :  { %p2661_p5 = scmp.ne.s32.totalorder %s3450_s5, %s2660_s22  ;;  %p2664_p6 = scmp.lt.u32.totalorder %s2660_s22, %s3450_s5 }
 0x28a   :  { %p2666_p7 = pnand %p2664_p6, %p2661_p5 }
 0x28c   :  { %2669 = shalt.err (!%p2666_p7)
}
 0x28d   :  { %1998 = dma.vmem_to_hbm [thread:$0]  %s1996_s0, 32, %s3450_s5, [#allocation3]  }
 0x28e   :  { %2670 = dma.done.wait [#allocation3], 32  }
 0x28f   :  { %2671 = vsyncadd [#allocation3], 4294967264 }
 0x290   :  { %2002 = vsyncpa [#allocation3], 1 }

</bundles_post_ra>
